<compile_context>
chip_gen: v7x
topology: tpu7x:2x2x1
jax: 0.10.0
libtpu: 0.0.40
codegen_flags: <defaults>
</compile_context>

<pallas_src>
import functools

import jax
import jax.numpy as jnp
from jax import lax
from jax.experimental import pallas as pl
from jax.experimental.pallas import tpu as pltpu


def _round_up(x, m):
    return ((x + m - 1) // m) * m


# ----------------------------- Pallas kernel --------------------------------

def rnn_net_kernel(n_rest, Bp, x_ref, wih0_ref, whh0_ref, b0_ref,
                   wih_r_ref, whh_r_ref, b_r_ref, fcw_ref, fcb_ref,
                   out_ref, seq_ref, gin_ref):
    TB = x_ref.shape[0]                  # T * Bp (time-major, batch-padded)
    Hp = whh0_ref.shape[0]               # hidden padded to a multiple of 128
    T = TB // Bp

    def lstm_layer(whh):
        """Recurrence for one layer.

        Input-gate pre-activations for all timesteps already live in gin_ref
        (hoisted out of the serial chain); only h @ W_hh remains per step.
        Each timestep's hidden state is written to seq_ref.
        """
        def step(t, carry):
            h, c = carry
            r = pl.multiple_of(t * Bp, Bp)
            gates = gin_ref[pl.ds(r, Bp), :] + jnp.dot(
                h, whh, preferred_element_type=jnp.float32)
            # Gate blocks are padded to Hp lanes -> every slice is vreg-aligned.
            i = jax.nn.sigmoid(gates[:, 0 * Hp:1 * Hp])
            f = jax.nn.sigmoid(gates[:, 1 * Hp:2 * Hp])
            g = jnp.tanh(gates[:, 2 * Hp:3 * Hp])
            o = jax.nn.sigmoid(gates[:, 3 * Hp:4 * Hp])
            c_new = f * c + i * g
            h_new = o * jnp.tanh(c_new)
            seq_ref[pl.ds(r, Bp), :] = h_new
            return (h_new, c_new)

        init = (jnp.zeros((Bp, Hp), jnp.float32),
                jnp.zeros((Bp, Hp), jnp.float32))
        return lax.fori_loop(0, T, step, init, unroll=True)

    # ---- layer 0: input_size == 1, so the input projection is a pure
    # broadcast: one vectorized VPU pass over all timesteps, off the chain.
    gin_ref[...] = x_ref[...] * wih0_ref[...] + b0_ref[...]
    h, _ = lstm_layer(whh0_ref[...])

    # ---- layers 1..L-1: batched input projection (single MXU matmul over
    # all T*Bp rows of the previous layer's outputs), then the recurrence.
    for l in range(n_rest):
        gin_ref[...] = (jnp.dot(seq_ref[...], wih_r_ref[l],
                                preferred_element_type=jnp.float32)
                        + b_r_ref[l])
        h, _ = lstm_layer(whh_r_ref[l])

    # ---- final Linear on the last timestep's hidden state (lane-padded out).
    out_ref[...] = (jnp.dot(h, fcw_ref[...], preferred_element_type=jnp.float32)
                    + fcb_ref[...])


# ------------------------------ Wrapper --------------------------------------

def _pad_gate_axis(w, H, Hp):
    """(..., 4H) gate-ordered [i,f,g,o] -> (..., 4*Hp), each gate zero-padded."""
    lead = w.shape[:-1]
    w4 = w.reshape(lead + (4, H))
    pad = [(0, 0)] * (w4.ndim - 1) + [(0, Hp - H)]
    return jnp.pad(w4, pad).reshape(lead + (4 * Hp,))


def _pad_axis(w, axis, new_size):
    pad = [(0, 0)] * w.ndim
    pad[axis] = (0, new_size - w.shape[axis])
    return jnp.pad(w, pad)


def rnn_net_forward(x, params):
    wih0, whh0, b0, wih_r, whh_r, b_r, fcw, fcb = params
    B, T = x.shape
    H = whh0.shape[0]
    O = fcw.shape[1]
    Lr = wih_r.shape[0]                      # num_layers - 1

    Hp = _round_up(H, 128)                   # lane-align gate/hidden blocks
    Bp = _round_up(B, 8)                     # sublane-align batch
    Op = _round_up(O, 128)                   # lane-align the fc output
    G = 4 * Hp

    # x: (B, T) -> time-major, batch-padded, flattened to (T*Bp, 1).
    x_p = jnp.pad(x.T, ((0, 0), (0, Bp - B))).reshape(T * Bp, 1)

    # Padded weights: zero pad per gate block (lanes) and hidden rows, so the
    # padded lanes stay exactly zero through the recurrence.
    wih0_p = _pad_gate_axis(wih0, H, Hp)                         # (1, G)
    b0_p = _pad_gate_axis(b0, H, Hp)                             # (1, G)
    whh0_p = _pad_axis(_pad_gate_axis(whh0, H, Hp), 0, Hp)       # (Hp, G)
    fcw_p = _pad_axis(_pad_axis(fcw, 0, Hp), 1, Op)              # (Hp, Op)
    fcb_p = _pad_axis(fcb, 1, Op)                                # (1, Op)

    if Lr > 0:
        wih_r_p = _pad_axis(_pad_gate_axis(wih_r, H, Hp), 1, Hp)  # (Lr, Hp, G)
        whh_r_p = _pad_axis(_pad_gate_axis(whh_r, H, Hp), 1, Hp)  # (Lr, Hp, G)
        b_r_p = _pad_gate_axis(b_r, H, Hp)                        # (Lr, 1, G)
    else:
        # num_layers == 1: pass never-read dummies instead of zero-sized arrays.
        wih_r_p = jnp.zeros((1, Hp, G), jnp.float32)
        whh_r_p = jnp.zeros((1, Hp, G), jnp.float32)
        b_r_p = jnp.zeros((1, 1, G), jnp.float32)

    vmem = functools.partial(pl.BlockSpec, memory_space=pltpu.MemorySpace.VMEM)
    kernel = functools.partial(rnn_net_kernel, Lr, Bp)
    out_p = pl.pallas_call(
        kernel,
        out_shape=jax.ShapeDtypeStruct((Bp, Op), jnp.float32),
        in_specs=[vmem()] * 9,
        out_specs=vmem(),
        scratch_shapes=[
            pltpu.VMEM((T * Bp, Hp), jnp.float32),   # seq: hidden states, all t
            pltpu.VMEM((T * Bp, G), jnp.float32),    # gin: precomputed input gates
        ],
        compiler_params=pltpu.CompilerParams(
            vmem_limit_bytes=32 * 1024 * 1024),
    )(x_p, wih0_p, whh0_p, b0_p, wih_r_p, whh_r_p, b_r_p, fcw_p, fcb_p)
    return out_p[:B, :O]


# ------------------------- Pure-JAX reference --------------------------------

def rnn_net_reference(x, params):
    wih0, whh0, b0, wih_r, whh_r, b_r, fcw, fcb = params
    B, T = x.shape
    H = whh0.shape[0]

    def cell(gates, c):
        i = jax.nn.sigmoid(gates[:, 0 * H:1 * H])
        f = jax.nn.sigmoid(gates[:, 1 * H:2 * H])
        g = jnp.tanh(gates[:, 2 * H:3 * H])
        o = jax.nn.sigmoid(gates[:, 3 * H:4 * H])
        c = f * c + i * g
        return o * jnp.tanh(c), c

    h = jnp.zeros((B, H)); c = jnp.zeros((B, H)); seq = []
    for t in range(T):
        gates = x[:, t:t + 1] * wih0 + h @ whh0 + b0
        h, c = cell(gates, c)
        seq.append(h)
    for l in range(wih_r.shape[0]):
        h = jnp.zeros((B, H)); c = jnp.zeros((B, H)); new_seq = []
        for t in range(T):
            gates = seq[t] @ wih_r[l] + h @ whh_r[l] + b_r[l]
            h, c = cell(gates, c)
            new_seq.append(h)
        seq = new_seq
    return seq[-1] @ fcw + fcb


# ------------------------------ Main ------------------------------------------

def init_params(key, hidden, num_layers, output_size):
    """Deterministic uniform(-1/sqrt(H), 1/sqrt(H)) init, like nn.LSTM."""
    H = hidden
    bound = 1.0 / jnp.sqrt(jnp.float32(H))
    ks = jax.random.split(key, 10)
    u = lambda k, shape: jax.random.uniform(k, shape, jnp.float32, -bound, bound)

    # layer 0 (input feature dim = 1), stored transposed: (in, 4H)
    wih0 = u(ks[0], (1, 4 * H))
    whh0 = u(ks[1], (H, 4 * H))
    b0 = u(ks[2], (1, 4 * H)) + u(ks[3], (1, 4 * H))   # b_ih + b_hh

    # layers 1..L-1 stacked
    Lr = num_layers - 1
    wih_r = u(ks[4], (max(Lr, 1), H, 4 * H))
    whh_r = u(ks[5], (max(Lr, 1), H, 4 * H))
    b_r = u(ks[6], (max(Lr, 1), 1, 4 * H)) + u(ks[7], (max(Lr, 1), 1, 4 * H))
    if Lr == 0:
        wih_r = wih_r[:0]; whh_r = whh_r[:0]; b_r = b_r[:0]

    # final fc: Linear(H, output_size), stored transposed (H, O)
    fcw = u(ks[8], (H, output_size))
    fcb = u(ks[9], (1, output_size))
    return (wih0, whh0, b0, wih_r, whh_r, b_r, fcw, fcb)


if __name__ == "__main__":
    batch, seq_len = 2, 8
    hidden, num_layers, output_size = 32, 2, 4

    key = jax.random.PRNGKey(0)
    k_x, k_p = jax.random.split(key)
    x = jax.random.normal(k_x, (batch, seq_len), jnp.float32)
    params = init_params(k_p, hidden, num_layers, output_size)

    out = jax.block_until_ready(rnn_net_forward(x, params))
    ref = rnn_net_reference(x, params)

    assert out.shape == (batch, output_size)
    assert jnp.allclose(out, ref, atol=1e-4, rtol=1e-4), "mismatch vs reference"
    print("KERNEL_OK")
</pallas_src>

<mosaic_0001>
module attributes {stable_mosaic.version = 11 : i64} {
  func.func @rnn_net_kernel(%arg0: memref<64x1xf32, #tpu.memory_space<vmem>>, %arg1: memref<1x512xf32, #tpu.memory_space<vmem>>, %arg2: memref<128x512xf32, #tpu.memory_space<vmem>>, %arg3: memref<1x512xf32, #tpu.memory_space<vmem>>, %arg4: memref<1x128x512xf32, #tpu.memory_space<vmem>>, %arg5: memref<1x128x512xf32, #tpu.memory_space<vmem>>, %arg6: memref<1x1x512xf32, #tpu.memory_space<vmem>>, %arg7: memref<128x128xf32, #tpu.memory_space<vmem>>, %arg8: memref<1x128xf32, #tpu.memory_space<vmem>>, %arg9: memref<8x128xf32, #tpu.memory_space<vmem>>, %arg10: memref<64x128xf32, #tpu.memory_space<vmem>>, %arg11: memref<64x512xf32, #tpu.memory_space<vmem>>) attributes {dimension_semantics = [], scalar_prefetch = 0 : i64, scratch_operands = 2 : i64, tpu.core_type = #tpu.core_type<tc>} {
    %c0 = arith.constant 0 : index
    %c0_0 = arith.constant 0 : index
    %0 = vector.load %arg0[%c0, %c0_0] : memref<64x1xf32, #tpu.memory_space<vmem>>, vector<64x1xf32>
    %c0_1 = arith.constant 0 : index
    %c0_2 = arith.constant 0 : index
    %1 = vector.load %arg1[%c0_1, %c0_2] : memref<1x512xf32, #tpu.memory_space<vmem>>, vector<1x512xf32>
    %2 = vector.broadcast %0 : vector<64x1xf32> to vector<64x512xf32>
    %3 = vector.broadcast %1 : vector<1x512xf32> to vector<64x512xf32>
    %4 = arith.mulf %2, %3 : vector<64x512xf32>
    %c0_3 = arith.constant 0 : index
    %c0_4 = arith.constant 0 : index
    %5 = vector.load %arg3[%c0_3, %c0_4] : memref<1x512xf32, #tpu.memory_space<vmem>>, vector<1x512xf32>
    %6 = vector.broadcast %5 : vector<1x512xf32> to vector<64x512xf32>
    %7 = arith.addf %4, %6 : vector<64x512xf32>
    %c0_5 = arith.constant 0 : index
    %c0_6 = arith.constant 0 : index
    %8 = vector.load %arg11[%c0_5, %c0_6] : memref<64x512xf32, #tpu.memory_space<vmem>>, vector<64x512xf32>
    tpu.vector_store %arg11[%c0_5, %c0_6], %7 {strides = array<i32>} : memref<64x512xf32, #tpu.memory_space<vmem>>, vector<64x512xf32>,
    %c0_7 = arith.constant 0 : index
    %c0_8 = arith.constant 0 : index
    %9 = vector.load %arg2[%c0_7, %c0_8] : memref<128x512xf32, #tpu.memory_space<vmem>>, vector<128x512xf32>
    %cst = arith.constant 0.000000e+00 : f32
    %10 = vector.broadcast %cst : f32 to vector<8x128xf32>
    %cst_9 = arith.constant 0.000000e+00 : f32
    %11 = vector.broadcast %cst_9 : f32 to vector<8x128xf32>
    %c0_i32 = arith.constant 0 : i32
    %c8_i32 = arith.constant 8 : i32
    %12 = arith.muli %c0_i32, %c8_i32 : i32
    %13 = tpu.assume_multiple %12, 8 : i32
    %14 = arith.index_cast %13 : i32 to index
    %c0_10 = arith.constant 0 : index
    %15 = vector.load %arg11[%14, %c0_10] : memref<64x512xf32, #tpu.memory_space<vmem>>, vector<8x512xf32>
    %cst_11 = arith.constant dense<0.000000e+00> : vector<8x512xf32>
    %16 = tpu.matmul %10, %9, %cst_11 {dimension_numbers = #tpu.dot_dimension_numbers<[1], [0], [0], [1], [0, 0, 1, 1], [], []>} : vector<8x128xf32>, vector<128x512xf32>, vector<8x512xf32> -> vector<8x512xf32>
    %17 = arith.addf %15, %16 : vector<8x512xf32>
    %18 = vector.extract_strided_slice %17 {offsets = [0, 0], sizes = [8, 128], strides = [1, 1]} : vector<8x512xf32> to vector<8x128xf32>
    %19 = arith.negf %18 : vector<8x128xf32>
    %20 = math.exp %19 : vector<8x128xf32>
    %cst_12 = arith.constant 1.000000e+00 : f32
    %21 = vector.broadcast %cst_12 : f32 to vector<8x128xf32>
    %22 = arith.addf %21, %20 : vector<8x128xf32>
    %23 = arith.divf %21, %22 : vector<8x128xf32>
    %24 = vector.extract_strided_slice %17 {offsets = [0, 128], sizes = [8, 128], strides = [1, 1]} : vector<8x512xf32> to vector<8x128xf32>
    %25 = arith.negf %24 : vector<8x128xf32>
    %26 = math.exp %25 : vector<8x128xf32>
    %cst_13 = arith.constant 1.000000e+00 : f32
    %27 = vector.broadcast %cst_13 : f32 to vector<8x128xf32>
    %28 = arith.addf %27, %26 : vector<8x128xf32>
    %29 = arith.divf %27, %28 : vector<8x128xf32>
    %30 = vector.extract_strided_slice %17 {offsets = [0, 256], sizes = [8, 128], strides = [1, 1]} : vector<8x512xf32> to vector<8x128xf32>
    %31 = math.tanh %30 : vector<8x128xf32>
    %32 = vector.extract_strided_slice %17 {offsets = [0, 384], sizes = [8, 128], strides = [1, 1]} : vector<8x512xf32> to vector<8x128xf32>
    %33 = arith.negf %32 : vector<8x128xf32>
    %34 = math.exp %33 : vector<8x128xf32>
    %cst_14 = arith.constant 1.000000e+00 : f32
    %35 = vector.broadcast %cst_14 : f32 to vector<8x128xf32>
    %36 = arith.addf %35, %34 : vector<8x128xf32>
    %37 = arith.divf %35, %36 : vector<8x128xf32>
    %38 = arith.mulf %29, %11 : vector<8x128xf32>
    %39 = arith.mulf %23, %31 : vector<8x128xf32>
    %40 = arith.addf %38, %39 : vector<8x128xf32>
    %41 = math.tanh %40 : vector<8x128xf32>
    %42 = arith.mulf %37, %41 : vector<8x128xf32>
    %43 = arith.index_cast %13 : i32 to index
    %c0_15 = arith.constant 0 : index
    %44 = vector.load %arg10[%43, %c0_15] : memref<64x128xf32, #tpu.memory_space<vmem>>, vector<8x128xf32>
    tpu.vector_store %arg10[%43, %c0_15], %42 {strides = array<i32>} : memref<64x128xf32, #tpu.memory_space<vmem>>, vector<8x128xf32>,
    %c1_i32 = arith.constant 1 : i32
    %c8_i32_16 = arith.constant 8 : i32
    %45 = arith.muli %c1_i32, %c8_i32_16 : i32
    %46 = tpu.assume_multiple %45, 8 : i32
    %47 = arith.index_cast %46 : i32 to index
    %c0_17 = arith.constant 0 : index
    %48 = vector.load %arg11[%47, %c0_17] : memref<64x512xf32, #tpu.memory_space<vmem>>, vector<8x512xf32>
    %cst_18 = arith.constant dense<0.000000e+00> : vector<8x512xf32>
    %49 = tpu.matmul %42, %9, %cst_18 {dimension_numbers = #tpu.dot_dimension_numbers<[1], [0], [0], [1], [0, 0, 1, 1], [], []>} : vector<8x128xf32>, vector<128x512xf32>, vector<8x512xf32> -> vector<8x512xf32>
    %50 = arith.addf %48, %49 : vector<8x512xf32>
    %51 = vector.extract_strided_slice %50 {offsets = [0, 0], sizes = [8, 128], strides = [1, 1]} : vector<8x512xf32> to vector<8x128xf32>
    %52 = arith.negf %51 : vector<8x128xf32>
    %53 = math.exp %52 : vector<8x128xf32>
    %cst_19 = arith.constant 1.000000e+00 : f32
    %54 = vector.broadcast %cst_19 : f32 to vector<8x128xf32>
    %55 = arith.addf %54, %53 : vector<8x128xf32>
    %56 = arith.divf %54, %55 : vector<8x128xf32>
    %57 = vector.extract_strided_slice %50 {offsets = [0, 128], sizes = [8, 128], strides = [1, 1]} : vector<8x512xf32> to vector<8x128xf32>
    %58 = arith.negf %57 : vector<8x128xf32>
    %59 = math.exp %58 : vector<8x128xf32>
    %cst_20 = arith.constant 1.000000e+00 : f32
    %60 = vector.broadcast %cst_20 : f32 to vector<8x128xf32>
    %61 = arith.addf %60, %59 : vector<8x128xf32>
    %62 = arith.divf %60, %61 : vector<8x128xf32>
    %63 = vector.extract_strided_slice %50 {offsets = [0, 256], sizes = [8, 128], strides = [1, 1]} : vector<8x512xf32> to vector<8x128xf32>
    %64 = math.tanh %63 : vector<8x128xf32>
    %65 = vector.extract_strided_slice %50 {offsets = [0, 384], sizes = [8, 128], strides = [1, 1]} : vector<8x512xf32> to vector<8x128xf32>
    %66 = arith.negf %65 : vector<8x128xf32>
    %67 = math.exp %66 : vector<8x128xf32>
    %cst_21 = arith.constant 1.000000e+00 : f32
    %68 = vector.broadcast %cst_21 : f32 to vector<8x128xf32>
    %69 = arith.addf %68, %67 : vector<8x128xf32>
    %70 = arith.divf %68, %69 : vector<8x128xf32>
    %71 = arith.mulf %62, %40 : vector<8x128xf32>
    %72 = arith.mulf %56, %64 : vector<8x128xf32>
    %73 = arith.addf %71, %72 : vector<8x128xf32>
    %74 = math.tanh %73 : vector<8x128xf32>
    %75 = arith.mulf %70, %74 : vector<8x128xf32>
    %76 = arith.index_cast %46 : i32 to index
    %c0_22 = arith.constant 0 : index
    %77 = vector.load %arg10[%76, %c0_22] : memref<64x128xf32, #tpu.memory_space<vmem>>, vector<8x128xf32>
    tpu.vector_store %arg10[%76, %c0_22], %75 {strides = array<i32>} : memref<64x128xf32, #tpu.memory_space<vmem>>, vector<8x128xf32>,
    %c2_i32 = arith.constant 2 : i32
    %c8_i32_23 = arith.constant 8 : i32
    %78 = arith.muli %c2_i32, %c8_i32_23 : i32
    %79 = tpu.assume_multiple %78, 8 : i32
    %80 = arith.index_cast %79 : i32 to index
    %c0_24 = arith.constant 0 : index
    %81 = vector.load %arg11[%80, %c0_24] : memref<64x512xf32, #tpu.memory_space<vmem>>, vector<8x512xf32>
    %cst_25 = arith.constant dense<0.000000e+00> : vector<8x512xf32>
    %82 = tpu.matmul %75, %9, %cst_25 {dimension_numbers = #tpu.dot_dimension_numbers<[1], [0], [0], [1], [0, 0, 1, 1], [], []>} : vector<8x128xf32>, vector<128x512xf32>, vector<8x512xf32> -> vector<8x512xf32>
    %83 = arith.addf %81, %82 : vector<8x512xf32>
    %84 = vector.extract_strided_slice %83 {offsets = [0, 0], sizes = [8, 128], strides = [1, 1]} : vector<8x512xf32> to vector<8x128xf32>
    %85 = arith.negf %84 : vector<8x128xf32>
    %86 = math.exp %85 : vector<8x128xf32>
    %cst_26 = arith.constant 1.000000e+00 : f32
    %87 = vector.broadcast %cst_26 : f32 to vector<8x128xf32>
    %88 = arith.addf %87, %86 : vector<8x128xf32>
    %89 = arith.divf %87, %88 : vector<8x128xf32>
    %90 = vector.extract_strided_slice %83 {offsets = [0, 128], sizes = [8, 128], strides = [1, 1]} : vector<8x512xf32> to vector<8x128xf32>
    %91 = arith.negf %90 : vector<8x128xf32>
    %92 = math.exp %91 : vector<8x128xf32>
    %cst_27 = arith.constant 1.000000e+00 : f32
    %93 = vector.broadcast %cst_27 : f32 to vector<8x128xf32>
    %94 = arith.addf %93, %92 : vector<8x128xf32>
    %95 = arith.divf %93, %94 : vector<8x128xf32>
    %96 = vector.extract_strided_slice %83 {offsets = [0, 256], sizes = [8, 128], strides = [1, 1]} : vector<8x512xf32> to vector<8x128xf32>
    %97 = math.tanh %96 : vector<8x128xf32>
    %98 = vector.extract_strided_slice %83 {offsets = [0, 384], sizes = [8, 128], strides = [1, 1]} : vector<8x512xf32> to vector<8x128xf32>
    %99 = arith.negf %98 : vector<8x128xf32>
    %100 = math.exp %99 : vector<8x128xf32>
    %cst_28 = arith.constant 1.000000e+00 : f32
    %101 = vector.broadcast %cst_28 : f32 to vector<8x128xf32>
    %102 = arith.addf %101, %100 : vector<8x128xf32>
    %103 = arith.divf %101, %102 : vector<8x128xf32>
    %104 = arith.mulf %95, %73 : vector<8x128xf32>
    %105 = arith.mulf %89, %97 : vector<8x128xf32>
    %106 = arith.addf %104, %105 : vector<8x128xf32>
    %107 = math.tanh %106 : vector<8x128xf32>
    %108 = arith.mulf %103, %107 : vector<8x128xf32>
    %109 = arith.index_cast %79 : i32 to index
    %c0_29 = arith.constant 0 : index
    %110 = vector.load %arg10[%109, %c0_29] : memref<64x128xf32, #tpu.memory_space<vmem>>, vector<8x128xf32>
    tpu.vector_store %arg10[%109, %c0_29], %108 {strides = array<i32>} : memref<64x128xf32, #tpu.memory_space<vmem>>, vector<8x128xf32>,
    %c3_i32 = arith.constant 3 : i32
    %c8_i32_30 = arith.constant 8 : i32
    %111 = arith.muli %c3_i32, %c8_i32_30 : i32
    %112 = tpu.assume_multiple %111, 8 : i32
    %113 = arith.index_cast %112 : i32 to index
    %c0_31 = arith.constant 0 : index
    %114 = vector.load %arg11[%113, %c0_31] : memref<64x512xf32, #tpu.memory_space<vmem>>, vector<8x512xf32>
    %cst_32 = arith.constant dense<0.000000e+00> : vector<8x512xf32>
    %115 = tpu.matmul %108, %9, %cst_32 {dimension_numbers = #tpu.dot_dimension_numbers<[1], [0], [0], [1], [0, 0, 1, 1], [], []>} : vector<8x128xf32>, vector<128x512xf32>, vector<8x512xf32> -> vector<8x512xf32>
    %116 = arith.addf %114, %115 : vector<8x512xf32>
    %117 = vector.extract_strided_slice %116 {offsets = [0, 0], sizes = [8, 128], strides = [1, 1]} : vector<8x512xf32> to vector<8x128xf32>
    %118 = arith.negf %117 : vector<8x128xf32>
    %119 = math.exp %118 : vector<8x128xf32>
    %cst_33 = arith.constant 1.000000e+00 : f32
    %120 = vector.broadcast %cst_33 : f32 to vector<8x128xf32>
    %121 = arith.addf %120, %119 : vector<8x128xf32>
    %122 = arith.divf %120, %121 : vector<8x128xf32>
    %123 = vector.extract_strided_slice %116 {offsets = [0, 128], sizes = [8, 128], strides = [1, 1]} : vector<8x512xf32> to vector<8x128xf32>
    %124 = arith.negf %123 : vector<8x128xf32>
    %125 = math.exp %124 : vector<8x128xf32>
    %cst_34 = arith.constant 1.000000e+00 : f32
    %126 = vector.broadcast %cst_34 : f32 to vector<8x128xf32>
    %127 = arith.addf %126, %125 : vector<8x128xf32>
    %128 = arith.divf %126, %127 : vector<8x128xf32>
    %129 = vector.extract_strided_slice %116 {offsets = [0, 256], sizes = [8, 128], strides = [1, 1]} : vector<8x512xf32> to vector<8x128xf32>
    %130 = math.tanh %129 : vector<8x128xf32>
    %131 = vector.extract_strided_slice %116 {offsets = [0, 384], sizes = [8, 128], strides = [1, 1]} : vector<8x512xf32> to vector<8x128xf32>
    %132 = arith.negf %131 : vector<8x128xf32>
    %133 = math.exp %132 : vector<8x128xf32>
    %cst_35 = arith.constant 1.000000e+00 : f32
    %134 = vector.broadcast %cst_35 : f32 to vector<8x128xf32>
    %135 = arith.addf %134, %133 : vector<8x128xf32>
    %136 = arith.divf %134, %135 : vector<8x128xf32>
    %137 = arith.mulf %128, %106 : vector<8x128xf32>
    %138 = arith.mulf %122, %130 : vector<8x128xf32>
    %139 = arith.addf %137, %138 : vector<8x128xf32>
    %140 = math.tanh %139 : vector<8x128xf32>
    %141 = arith.mulf %136, %140 : vector<8x128xf32>
    %142 = arith.index_cast %112 : i32 to index
    %c0_36 = arith.constant 0 : index
    %143 = vector.load %arg10[%142, %c0_36] : memref<64x128xf32, #tpu.memory_space<vmem>>, vector<8x128xf32>
    tpu.vector_store %arg10[%142, %c0_36], %141 {strides = array<i32>} : memref<64x128xf32, #tpu.memory_space<vmem>>, vector<8x128xf32>,
    %c4_i32 = arith.constant 4 : i32
    %c8_i32_37 = arith.constant 8 : i32
    %144 = arith.muli %c4_i32, %c8_i32_37 : i32
    %145 = tpu.assume_multiple %144, 8 : i32
    %146 = arith.index_cast %145 : i32 to index
    %c0_38 = arith.constant 0 : index
    %147 = vector.load %arg11[%146, %c0_38] : memref<64x512xf32, #tpu.memory_space<vmem>>, vector<8x512xf32>
    %cst_39 = arith.constant dense<0.000000e+00> : vector<8x512xf32>
    %148 = tpu.matmul %141, %9, %cst_39 {dimension_numbers = #tpu.dot_dimension_numbers<[1], [0], [0], [1], [0, 0, 1, 1], [], []>} : vector<8x128xf32>, vector<128x512xf32>, vector<8x512xf32> -> vector<8x512xf32>
    %149 = arith.addf %147, %148 : vector<8x512xf32>
    %150 = vector.extract_strided_slice %149 {offsets = [0, 0], sizes = [8, 128], strides = [1, 1]} : vector<8x512xf32> to vector<8x128xf32>
    %151 = arith.negf %150 : vector<8x128xf32>
    %152 = math.exp %151 : vector<8x128xf32>
    %cst_40 = arith.constant 1.000000e+00 : f32
    %153 = vector.broadcast %cst_40 : f32 to vector<8x128xf32>
    %154 = arith.addf %153, %152 : vector<8x128xf32>
    %155 = arith.divf %153, %154 : vector<8x128xf32>
    %156 = vector.extract_strided_slice %149 {offsets = [0, 128], sizes = [8, 128], strides = [1, 1]} : vector<8x512xf32> to vector<8x128xf32>
    %157 = arith.negf %156 : vector<8x128xf32>
    %158 = math.exp %157 : vector<8x128xf32>
    %cst_41 = arith.constant 1.000000e+00 : f32
    %159 = vector.broadcast %cst_41 : f32 to vector<8x128xf32>
    %160 = arith.addf %159, %158 : vector<8x128xf32>
    %161 = arith.divf %159, %160 : vector<8x128xf32>
    %162 = vector.extract_strided_slice %149 {offsets = [0, 256], sizes = [8, 128], strides = [1, 1]} : vector<8x512xf32> to vector<8x128xf32>
    %163 = math.tanh %162 : vector<8x128xf32>
    %164 = vector.extract_strided_slice %149 {offsets = [0, 384], sizes = [8, 128], strides = [1, 1]} : vector<8x512xf32> to vector<8x128xf32>
    %165 = arith.negf %164 : vector<8x128xf32>
    %166 = math.exp %165 : vector<8x128xf32>
    %cst_42 = arith.constant 1.000000e+00 : f32
    %167 = vector.broadcast %cst_42 : f32 to vector<8x128xf32>
    %168 = arith.addf %167, %166 : vector<8x128xf32>
    %169 = arith.divf %167, %168 : vector<8x128xf32>
    %170 = arith.mulf %161, %139 : vector<8x128xf32>
    %171 = arith.mulf %155, %163 : vector<8x128xf32>
    %172 = arith.addf %170, %171 : vector<8x128xf32>
    %173 = math.tanh %172 : vector<8x128xf32>
    %174 = arith.mulf %169, %173 : vector<8x128xf32>
    %175 = arith.index_cast %145 : i32 to index
    %c0_43 = arith.constant 0 : index
    %176 = vector.load %arg10[%175, %c0_43] : memref<64x128xf32, #tpu.memory_space<vmem>>, vector<8x128xf32>
    tpu.vector_store %arg10[%175, %c0_43], %174 {strides = array<i32>} : memref<64x128xf32, #tpu.memory_space<vmem>>, vector<8x128xf32>,
    %c5_i32 = arith.constant 5 : i32
    %c8_i32_44 = arith.constant 8 : i32
    %177 = arith.muli %c5_i32, %c8_i32_44 : i32
    %178 = tpu.assume_multiple %177, 8 : i32
    %179 = arith.index_cast %178 : i32 to index
    %c0_45 = arith.constant 0 : index
    %180 = vector.load %arg11[%179, %c0_45] : memref<64x512xf32, #tpu.memory_space<vmem>>, vector<8x512xf32>
    %cst_46 = arith.constant dense<0.000000e+00> : vector<8x512xf32>
    %181 = tpu.matmul %174, %9, %cst_46 {dimension_numbers = #tpu.dot_dimension_numbers<[1], [0], [0], [1], [0, 0, 1, 1], [], []>} : vector<8x128xf32>, vector<128x512xf32>, vector<8x512xf32> -> vector<8x512xf32>
    %182 = arith.addf %180, %181 : vector<8x512xf32>
    %183 = vector.extract_strided_slice %182 {offsets = [0, 0], sizes = [8, 128], strides = [1, 1]} : vector<8x512xf32> to vector<8x128xf32>
    %184 = arith.negf %183 : vector<8x128xf32>
    %185 = math.exp %184 : vector<8x128xf32>
    %cst_47 = arith.constant 1.000000e+00 : f32
    %186 = vector.broadcast %cst_47 : f32 to vector<8x128xf32>
    %187 = arith.addf %186, %185 : vector<8x128xf32>
    %188 = arith.divf %186, %187 : vector<8x128xf32>
    %189 = vector.extract_strided_slice %182 {offsets = [0, 128], sizes = [8, 128], strides = [1, 1]} : vector<8x512xf32> to vector<8x128xf32>
    %190 = arith.negf %189 : vector<8x128xf32>
    %191 = math.exp %190 : vector<8x128xf32>
    %cst_48 = arith.constant 1.000000e+00 : f32
    %192 = vector.broadcast %cst_48 : f32 to vector<8x128xf32>
    %193 = arith.addf %192, %191 : vector<8x128xf32>
    %194 = arith.divf %192, %193 : vector<8x128xf32>
    %195 = vector.extract_strided_slice %182 {offsets = [0, 256], sizes = [8, 128], strides = [1, 1]} : vector<8x512xf32> to vector<8x128xf32>
    %196 = math.tanh %195 : vector<8x128xf32>
    %197 = vector.extract_strided_slice %182 {offsets = [0, 384], sizes = [8, 128], strides = [1, 1]} : vector<8x512xf32> to vector<8x128xf32>
    %198 = arith.negf %197 : vector<8x128xf32>
    %199 = math.exp %198 : vector<8x128xf32>
    %cst_49 = arith.constant 1.000000e+00 : f32
    %200 = vector.broadcast %cst_49 : f32 to vector<8x128xf32>
    %201 = arith.addf %200, %199 : vector<8x128xf32>
    %202 = arith.divf %200, %201 : vector<8x128xf32>
    %203 = arith.mulf %194, %172 : vector<8x128xf32>
    %204 = arith.mulf %188, %196 : vector<8x128xf32>
    %205 = arith.addf %203, %204 : vector<8x128xf32>
    %206 = math.tanh %205 : vector<8x128xf32>
    %207 = arith.mulf %202, %206 : vector<8x128xf32>
    %208 = arith.index_cast %178 : i32 to index
    %c0_50 = arith.constant 0 : index
    %209 = vector.load %arg10[%208, %c0_50] : memref<64x128xf32, #tpu.memory_space<vmem>>, vector<8x128xf32>
    tpu.vector_store %arg10[%208, %c0_50], %207 {strides = array<i32>} : memref<64x128xf32, #tpu.memory_space<vmem>>, vector<8x128xf32>,
    %c6_i32 = arith.constant 6 : i32
    %c8_i32_51 = arith.constant 8 : i32
    %210 = arith.muli %c6_i32, %c8_i32_51 : i32
    %211 = tpu.assume_multiple %210, 8 : i32
    %212 = arith.index_cast %211 : i32 to index
    %c0_52 = arith.constant 0 : index
    %213 = vector.load %arg11[%212, %c0_52] : memref<64x512xf32, #tpu.memory_space<vmem>>, vector<8x512xf32>
    %cst_53 = arith.constant dense<0.000000e+00> : vector<8x512xf32>
    %214 = tpu.matmul %207, %9, %cst_53 {dimension_numbers = #tpu.dot_dimension_numbers<[1], [0], [0], [1], [0, 0, 1, 1], [], []>} : vector<8x128xf32>, vector<128x512xf32>, vector<8x512xf32> -> vector<8x512xf32>
    %215 = arith.addf %213, %214 : vector<8x512xf32>
    %216 = vector.extract_strided_slice %215 {offsets = [0, 0], sizes = [8, 128], strides = [1, 1]} : vector<8x512xf32> to vector<8x128xf32>
    %217 = arith.negf %216 : vector<8x128xf32>
    %218 = math.exp %217 : vector<8x128xf32>
    %cst_54 = arith.constant 1.000000e+00 : f32
    %219 = vector.broadcast %cst_54 : f32 to vector<8x128xf32>
    %220 = arith.addf %219, %218 : vector<8x128xf32>
    %221 = arith.divf %219, %220 : vector<8x128xf32>
    %222 = vector.extract_strided_slice %215 {offsets = [0, 128], sizes = [8, 128], strides = [1, 1]} : vector<8x512xf32> to vector<8x128xf32>
    %223 = arith.negf %222 : vector<8x128xf32>
    %224 = math.exp %223 : vector<8x128xf32>
    %cst_55 = arith.constant 1.000000e+00 : f32
    %225 = vector.broadcast %cst_55 : f32 to vector<8x128xf32>
    %226 = arith.addf %225, %224 : vector<8x128xf32>
    %227 = arith.divf %225, %226 : vector<8x128xf32>
    %228 = vector.extract_strided_slice %215 {offsets = [0, 256], sizes = [8, 128], strides = [1, 1]} : vector<8x512xf32> to vector<8x128xf32>
    %229 = math.tanh %228 : vector<8x128xf32>
    %230 = vector.extract_strided_slice %215 {offsets = [0, 384], sizes = [8, 128], strides = [1, 1]} : vector<8x512xf32> to vector<8x128xf32>
    %231 = arith.negf %230 : vector<8x128xf32>
    %232 = math.exp %231 : vector<8x128xf32>
    %cst_56 = arith.constant 1.000000e+00 : f32
    %233 = vector.broadcast %cst_56 : f32 to vector<8x128xf32>
    %234 = arith.addf %233, %232 : vector<8x128xf32>
    %235 = arith.divf %233, %234 : vector<8x128xf32>
    %236 = arith.mulf %227, %205 : vector<8x128xf32>
    %237 = arith.mulf %221, %229 : vector<8x128xf32>
    %238 = arith.addf %236, %237 : vector<8x128xf32>
    %239 = math.tanh %238 : vector<8x128xf32>
    %240 = arith.mulf %235, %239 : vector<8x128xf32>
    %241 = arith.index_cast %211 : i32 to index
    %c0_57 = arith.constant 0 : index
    %242 = vector.load %arg10[%241, %c0_57] : memref<64x128xf32, #tpu.memory_space<vmem>>, vector<8x128xf32>
    tpu.vector_store %arg10[%241, %c0_57], %240 {strides = array<i32>} : memref<64x128xf32, #tpu.memory_space<vmem>>, vector<8x128xf32>,
    %c7_i32 = arith.constant 7 : i32
    %c8_i32_58 = arith.constant 8 : i32
    %243 = arith.muli %c7_i32, %c8_i32_58 : i32
    %244 = tpu.assume_multiple %243, 8 : i32
    %245 = arith.index_cast %244 : i32 to index
    %c0_59 = arith.constant 0 : index
    %246 = vector.load %arg11[%245, %c0_59] : memref<64x512xf32, #tpu.memory_space<vmem>>, vector<8x512xf32>
    %cst_60 = arith.constant dense<0.000000e+00> : vector<8x512xf32>
    %247 = tpu.matmul %240, %9, %cst_60 {dimension_numbers = #tpu.dot_dimension_numbers<[1], [0], [0], [1], [0, 0, 1, 1], [], []>} : vector<8x128xf32>, vector<128x512xf32>, vector<8x512xf32> -> vector<8x512xf32>
    %248 = arith.addf %246, %247 : vector<8x512xf32>
    %249 = vector.extract_strided_slice %248 {offsets = [0, 0], sizes = [8, 128], strides = [1, 1]} : vector<8x512xf32> to vector<8x128xf32>
    %250 = arith.negf %249 : vector<8x128xf32>
    %251 = math.exp %250 : vector<8x128xf32>
    %cst_61 = arith.constant 1.000000e+00 : f32
    %252 = vector.broadcast %cst_61 : f32 to vector<8x128xf32>
    %253 = arith.addf %252, %251 : vector<8x128xf32>
    %254 = arith.divf %252, %253 : vector<8x128xf32>
    %255 = vector.extract_strided_slice %248 {offsets = [0, 128], sizes = [8, 128], strides = [1, 1]} : vector<8x512xf32> to vector<8x128xf32>
    %256 = arith.negf %255 : vector<8x128xf32>
    %257 = math.exp %256 : vector<8x128xf32>
    %cst_62 = arith.constant 1.000000e+00 : f32
    %258 = vector.broadcast %cst_62 : f32 to vector<8x128xf32>
    %259 = arith.addf %258, %257 : vector<8x128xf32>
    %260 = arith.divf %258, %259 : vector<8x128xf32>
    %261 = vector.extract_strided_slice %248 {offsets = [0, 256], sizes = [8, 128], strides = [1, 1]} : vector<8x512xf32> to vector<8x128xf32>
    %262 = math.tanh %261 : vector<8x128xf32>
    %263 = vector.extract_strided_slice %248 {offsets = [0, 384], sizes = [8, 128], strides = [1, 1]} : vector<8x512xf32> to vector<8x128xf32>
    %264 = arith.negf %263 : vector<8x128xf32>
    %265 = math.exp %264 : vector<8x128xf32>
    %cst_63 = arith.constant 1.000000e+00 : f32
    %266 = vector.broadcast %cst_63 : f32 to vector<8x128xf32>
    %267 = arith.addf %266, %265 : vector<8x128xf32>
    %268 = arith.divf %266, %267 : vector<8x128xf32>
    %269 = arith.mulf %260, %238 : vector<8x128xf32>
    %270 = arith.mulf %254, %262 : vector<8x128xf32>
    %271 = arith.addf %269, %270 : vector<8x128xf32>
    %272 = math.tanh %271 : vector<8x128xf32>
    %273 = arith.mulf %268, %272 : vector<8x128xf32>
    %274 = arith.index_cast %244 : i32 to index
    %c0_64 = arith.constant 0 : index
    %275 = vector.load %arg10[%274, %c0_64] : memref<64x128xf32, #tpu.memory_space<vmem>>, vector<8x128xf32>
    tpu.vector_store %arg10[%274, %c0_64], %273 {strides = array<i32>} : memref<64x128xf32, #tpu.memory_space<vmem>>, vector<8x128xf32>,
    %c8_i32_65 = arith.constant 8 : i32
    %c0_66 = arith.constant 0 : index
    %c0_67 = arith.constant 0 : index
    %276 = vector.load %arg10[%c0_66, %c0_67] : memref<64x128xf32, #tpu.memory_space<vmem>>, vector<64x128xf32>
    %c0_68 = arith.constant 0 : index
    %c0_69 = arith.constant 0 : index
    %c0_70 = arith.constant 0 : index
    %277 = vector.load %arg4[%c0_68, %c0_69, %c0_70] : memref<1x128x512xf32, #tpu.memory_space<vmem>>, vector<1x128x512xf32>
    %278 = vector.shape_cast %277 : vector<1x128x512xf32> to vector<128x512xf32>
    %cst_71 = arith.constant dense<0.000000e+00> : vector<64x512xf32>
    %279 = tpu.matmul %276, %278, %cst_71 {dimension_numbers = #tpu.dot_dimension_numbers<[1], [0], [0], [1], [0, 0, 1, 1], [], []>} : vector<64x128xf32>, vector<128x512xf32>, vector<64x512xf32> -> vector<64x512xf32>
    %c0_72 = arith.constant 0 : index
    %c0_73 = arith.constant 0 : index
    %c0_74 = arith.constant 0 : index
    %280 = vector.load %arg6[%c0_72, %c0_73, %c0_74] : memref<1x1x512xf32, #tpu.memory_space<vmem>>, vector<1x1x512xf32>
    %281 = vector.shape_cast %280 : vector<1x1x512xf32> to vector<1x512xf32>
    %282 = vector.broadcast %281 : vector<1x512xf32> to vector<64x512xf32>
    %283 = arith.addf %279, %282 : vector<64x512xf32>
    %c0_75 = arith.constant 0 : index
    %c0_76 = arith.constant 0 : index
    %284 = vector.load %arg11[%c0_75, %c0_76] : memref<64x512xf32, #tpu.memory_space<vmem>>, vector<64x512xf32>
    tpu.vector_store %arg11[%c0_75, %c0_76], %283 {strides = array<i32>} : memref<64x512xf32, #tpu.memory_space<vmem>>, vector<64x512xf32>,
    %c0_77 = arith.constant 0 : index
    %c0_78 = arith.constant 0 : index
    %c0_79 = arith.constant 0 : index
    %285 = vector.load %arg5[%c0_77, %c0_78, %c0_79] : memref<1x128x512xf32, #tpu.memory_space<vmem>>, vector<1x128x512xf32>
    %286 = vector.shape_cast %285 : vector<1x128x512xf32> to vector<128x512xf32>
    %cst_80 = arith.constant 0.000000e+00 : f32
    %287 = vector.broadcast %cst_80 : f32 to vector<8x128xf32>
    %cst_81 = arith.constant 0.000000e+00 : f32
    %288 = vector.broadcast %cst_81 : f32 to vector<8x128xf32>
    %c0_i32_82 = arith.constant 0 : i32
    %c8_i32_83 = arith.constant 8 : i32
    %289 = arith.muli %c0_i32_82, %c8_i32_83 : i32
    %290 = tpu.assume_multiple %289, 8 : i32
    %291 = arith.index_cast %290 : i32 to index
    %c0_84 = arith.constant 0 : index
    %292 = vector.load %arg11[%291, %c0_84] : memref<64x512xf32, #tpu.memory_space<vmem>>, vector<8x512xf32>
    %cst_85 = arith.constant dense<0.000000e+00> : vector<8x512xf32>
    %293 = tpu.matmul %287, %286, %cst_85 {dimension_numbers = #tpu.dot_dimension_numbers<[1], [0], [0], [1], [0, 0, 1, 1], [], []>} : vector<8x128xf32>, vector<128x512xf32>, vector<8x512xf32> -> vector<8x512xf32>
    %294 = arith.addf %292, %293 : vector<8x512xf32>
    %295 = vector.extract_strided_slice %294 {offsets = [0, 0], sizes = [8, 128], strides = [1, 1]} : vector<8x512xf32> to vector<8x128xf32>
    %296 = arith.negf %295 : vector<8x128xf32>
    %297 = math.exp %296 : vector<8x128xf32>
    %cst_86 = arith.constant 1.000000e+00 : f32
    %298 = vector.broadcast %cst_86 : f32 to vector<8x128xf32>
    %299 = arith.addf %298, %297 : vector<8x128xf32>
    %300 = arith.divf %298, %299 : vector<8x128xf32>
    %301 = vector.extract_strided_slice %294 {offsets = [0, 128], sizes = [8, 128], strides = [1, 1]} : vector<8x512xf32> to vector<8x128xf32>
    %302 = arith.negf %301 : vector<8x128xf32>
    %303 = math.exp %302 : vector<8x128xf32>
    %cst_87 = arith.constant 1.000000e+00 : f32
    %304 = vector.broadcast %cst_87 : f32 to vector<8x128xf32>
    %305 = arith.addf %304, %303 : vector<8x128xf32>
    %306 = arith.divf %304, %305 : vector<8x128xf32>
    %307 = vector.extract_strided_slice %294 {offsets = [0, 256], sizes = [8, 128], strides = [1, 1]} : vector<8x512xf32> to vector<8x128xf32>
    %308 = math.tanh %307 : vector<8x128xf32>
    %309 = vector.extract_strided_slice %294 {offsets = [0, 384], sizes = [8, 128], strides = [1, 1]} : vector<8x512xf32> to vector<8x128xf32>
    %310 = arith.negf %309 : vector<8x128xf32>
    %311 = math.exp %310 : vector<8x128xf32>
    %cst_88 = arith.constant 1.000000e+00 : f32
    %312 = vector.broadcast %cst_88 : f32 to vector<8x128xf32>
    %313 = arith.addf %312, %311 : vector<8x128xf32>
    %314 = arith.divf %312, %313 : vector<8x128xf32>
    %315 = arith.mulf %306, %288 : vector<8x128xf32>
    %316 = arith.mulf %300, %308 : vector<8x128xf32>
    %317 = arith.addf %315, %316 : vector<8x128xf32>
    %318 = math.tanh %317 : vector<8x128xf32>
    %319 = arith.mulf %314, %318 : vector<8x128xf32>
    %320 = arith.index_cast %290 : i32 to index
    %c0_89 = arith.constant 0 : index
    %321 = vector.load %arg10[%320, %c0_89] : memref<64x128xf32, #tpu.memory_space<vmem>>, vector<8x128xf32>
    tpu.vector_store %arg10[%320, %c0_89], %319 {strides = array<i32>} : memref<64x128xf32, #tpu.memory_space<vmem>>, vector<8x128xf32>,
    %c1_i32_90 = arith.constant 1 : i32
    %c8_i32_91 = arith.constant 8 : i32
    %322 = arith.muli %c1_i32_90, %c8_i32_91 : i32
    %323 = tpu.assume_multiple %322, 8 : i32
    %324 = arith.index_cast %323 : i32 to index
    %c0_92 = arith.constant 0 : index
    %325 = vector.load %arg11[%324, %c0_92] : memref<64x512xf32, #tpu.memory_space<vmem>>, vector<8x512xf32>
    %cst_93 = arith.constant dense<0.000000e+00> : vector<8x512xf32>
    %326 = tpu.matmul %319, %286, %cst_93 {dimension_numbers = #tpu.dot_dimension_numbers<[1], [0], [0], [1], [0, 0, 1, 1], [], []>} : vector<8x128xf32>, vector<128x512xf32>, vector<8x512xf32> -> vector<8x512xf32>
    %327 = arith.addf %325, %326 : vector<8x512xf32>
    %328 = vector.extract_strided_slice %327 {offsets = [0, 0], sizes = [8, 128], strides = [1, 1]} : vector<8x512xf32> to vector<8x128xf32>
    %329 = arith.negf %328 : vector<8x128xf32>
    %330 = math.exp %329 : vector<8x128xf32>
    %cst_94 = arith.constant 1.000000e+00 : f32
    %331 = vector.broadcast %cst_94 : f32 to vector<8x128xf32>
    %332 = arith.addf %331, %330 : vector<8x128xf32>
    %333 = arith.divf %331, %332 : vector<8x128xf32>
    %334 = vector.extract_strided_slice %327 {offsets = [0, 128], sizes = [8, 128], strides = [1, 1]} : vector<8x512xf32> to vector<8x128xf32>
    %335 = arith.negf %334 : vector<8x128xf32>
    %336 = math.exp %335 : vector<8x128xf32>
    %cst_95 = arith.constant 1.000000e+00 : f32
    %337 = vector.broadcast %cst_95 : f32 to vector<8x128xf32>
    %338 = arith.addf %337, %336 : vector<8x128xf32>
    %339 = arith.divf %337, %338 : vector<8x128xf32>
    %340 = vector.extract_strided_slice %327 {offsets = [0, 256], sizes = [8, 128], strides = [1, 1]} : vector<8x512xf32> to vector<8x128xf32>
    %341 = math.tanh %340 : vector<8x128xf32>
    %342 = vector.extract_strided_slice %327 {offsets = [0, 384], sizes = [8, 128], strides = [1, 1]} : vector<8x512xf32> to vector<8x128xf32>
    %343 = arith.negf %342 : vector<8x128xf32>
    %344 = math.exp %343 : vector<8x128xf32>
    %cst_96 = arith.constant 1.000000e+00 : f32
    %345 = vector.broadcast %cst_96 : f32 to vector<8x128xf32>
    %346 = arith.addf %345, %344 : vector<8x128xf32>
    %347 = arith.divf %345, %346 : vector<8x128xf32>
    %348 = arith.mulf %339, %317 : vector<8x128xf32>
    %349 = arith.mulf %333, %341 : vector<8x128xf32>
    %350 = arith.addf %348, %349 : vector<8x128xf32>
    %351 = math.tanh %350 : vector<8x128xf32>
    %352 = arith.mulf %347, %351 : vector<8x128xf32>
    %353 = arith.index_cast %323 : i32 to index
    %c0_97 = arith.constant 0 : index
    %354 = vector.load %arg10[%353, %c0_97] : memref<64x128xf32, #tpu.memory_space<vmem>>, vector<8x128xf32>
    tpu.vector_store %arg10[%353, %c0_97], %352 {strides = array<i32>} : memref<64x128xf32, #tpu.memory_space<vmem>>, vector<8x128xf32>,
    %c2_i32_98 = arith.constant 2 : i32
    %c8_i32_99 = arith.constant 8 : i32
    %355 = arith.muli %c2_i32_98, %c8_i32_99 : i32
    %356 = tpu.assume_multiple %355, 8 : i32
    %357 = arith.index_cast %356 : i32 to index
    %c0_100 = arith.constant 0 : index
    %358 = vector.load %arg11[%357, %c0_100] : memref<64x512xf32, #tpu.memory_space<vmem>>, vector<8x512xf32>
    %cst_101 = arith.constant dense<0.000000e+00> : vector<8x512xf32>
    %359 = tpu.matmul %352, %286, %cst_101 {dimension_numbers = #tpu.dot_dimension_numbers<[1], [0], [0], [1], [0, 0, 1, 1], [], []>} : vector<8x128xf32>, vector<128x512xf32>, vector<8x512xf32> -> vector<8x512xf32>
    %360 = arith.addf %358, %359 : vector<8x512xf32>
    %361 = vector.extract_strided_slice %360 {offsets = [0, 0], sizes = [8, 128], strides = [1, 1]} : vector<8x512xf32> to vector<8x128xf32>
    %362 = arith.negf %361 : vector<8x128xf32>
    %363 = math.exp %362 : vector<8x128xf32>
    %cst_102 = arith.constant 1.000000e+00 : f32
    %364 = vector.broadcast %cst_102 : f32 to vector<8x128xf32>
    %365 = arith.addf %364, %363 : vector<8x128xf32>
    %366 = arith.divf %364, %365 : vector<8x128xf32>
    %367 = vector.extract_strided_slice %360 {offsets = [0, 128], sizes = [8, 128], strides = [1, 1]} : vector<8x512xf32> to vector<8x128xf32>
    %368 = arith.negf %367 : vector<8x128xf32>
    %369 = math.exp %368 : vector<8x128xf32>
    %cst_103 = arith.constant 1.000000e+00 : f32
    %370 = vector.broadcast %cst_103 : f32 to vector<8x128xf32>
    %371 = arith.addf %370, %369 : vector<8x128xf32>
    %372 = arith.divf %370, %371 : vector<8x128xf32>
    %373 = vector.extract_strided_slice %360 {offsets = [0, 256], sizes = [8, 128], strides = [1, 1]} : vector<8x512xf32> to vector<8x128xf32>
    %374 = math.tanh %373 : vector<8x128xf32>
    %375 = vector.extract_strided_slice %360 {offsets = [0, 384], sizes = [8, 128], strides = [1, 1]} : vector<8x512xf32> to vector<8x128xf32>
    %376 = arith.negf %375 : vector<8x128xf32>
    %377 = math.exp %376 : vector<8x128xf32>
    %cst_104 = arith.constant 1.000000e+00 : f32
    %378 = vector.broadcast %cst_104 : f32 to vector<8x128xf32>
    %379 = arith.addf %378, %377 : vector<8x128xf32>
    %380 = arith.divf %378, %379 : vector<8x128xf32>
    %381 = arith.mulf %372, %350 : vector<8x128xf32>
    %382 = arith.mulf %366, %374 : vector<8x128xf32>
    %383 = arith.addf %381, %382 : vector<8x128xf32>
    %384 = math.tanh %383 : vector<8x128xf32>
    %385 = arith.mulf %380, %384 : vector<8x128xf32>
    %386 = arith.index_cast %356 : i32 to index
    %c0_105 = arith.constant 0 : index
    %387 = vector.load %arg10[%386, %c0_105] : memref<64x128xf32, #tpu.memory_space<vmem>>, vector<8x128xf32>
    tpu.vector_store %arg10[%386, %c0_105], %385 {strides = array<i32>} : memref<64x128xf32, #tpu.memory_space<vmem>>, vector<8x128xf32>,
    %c3_i32_106 = arith.constant 3 : i32
    %c8_i32_107 = arith.constant 8 : i32
    %388 = arith.muli %c3_i32_106, %c8_i32_107 : i32
    %389 = tpu.assume_multiple %388, 8 : i32
    %390 = arith.index_cast %389 : i32 to index
    %c0_108 = arith.constant 0 : index
    %391 = vector.load %arg11[%390, %c0_108] : memref<64x512xf32, #tpu.memory_space<vmem>>, vector<8x512xf32>
    %cst_109 = arith.constant dense<0.000000e+00> : vector<8x512xf32>
    %392 = tpu.matmul %385, %286, %cst_109 {dimension_numbers = #tpu.dot_dimension_numbers<[1], [0], [0], [1], [0, 0, 1, 1], [], []>} : vector<8x128xf32>, vector<128x512xf32>, vector<8x512xf32> -> vector<8x512xf32>
    %393 = arith.addf %391, %392 : vector<8x512xf32>
    %394 = vector.extract_strided_slice %393 {offsets = [0, 0], sizes = [8, 128], strides = [1, 1]} : vector<8x512xf32> to vector<8x128xf32>
    %395 = arith.negf %394 : vector<8x128xf32>
    %396 = math.exp %395 : vector<8x128xf32>
    %cst_110 = arith.constant 1.000000e+00 : f32
    %397 = vector.broadcast %cst_110 : f32 to vector<8x128xf32>
    %398 = arith.addf %397, %396 : vector<8x128xf32>
    %399 = arith.divf %397, %398 : vector<8x128xf32>
    %400 = vector.extract_strided_slice %393 {offsets = [0, 128], sizes = [8, 128], strides = [1, 1]} : vector<8x512xf32> to vector<8x128xf32>
    %401 = arith.negf %400 : vector<8x128xf32>
    %402 = math.exp %401 : vector<8x128xf32>
    %cst_111 = arith.constant 1.000000e+00 : f32
    %403 = vector.broadcast %cst_111 : f32 to vector<8x128xf32>
    %404 = arith.addf %403, %402 : vector<8x128xf32>
    %405 = arith.divf %403, %404 : vector<8x128xf32>
    %406 = vector.extract_strided_slice %393 {offsets = [0, 256], sizes = [8, 128], strides = [1, 1]} : vector<8x512xf32> to vector<8x128xf32>
    %407 = math.tanh %406 : vector<8x128xf32>
    %408 = vector.extract_strided_slice %393 {offsets = [0, 384], sizes = [8, 128], strides = [1, 1]} : vector<8x512xf32> to vector<8x128xf32>
    %409 = arith.negf %408 : vector<8x128xf32>
    %410 = math.exp %409 : vector<8x128xf32>
    %cst_112 = arith.constant 1.000000e+00 : f32
    %411 = vector.broadcast %cst_112 : f32 to vector<8x128xf32>
    %412 = arith.addf %411, %410 : vector<8x128xf32>
    %413 = arith.divf %411, %412 : vector<8x128xf32>
    %414 = arith.mulf %405, %383 : vector<8x128xf32>
    %415 = arith.mulf %399, %407 : vector<8x128xf32>
    %416 = arith.addf %414, %415 : vector<8x128xf32>
    %417 = math.tanh %416 : vector<8x128xf32>
    %418 = arith.mulf %413, %417 : vector<8x128xf32>
    %419 = arith.index_cast %389 : i32 to index
    %c0_113 = arith.constant 0 : index
    %420 = vector.load %arg10[%419, %c0_113] : memref<64x128xf32, #tpu.memory_space<vmem>>, vector<8x128xf32>
    tpu.vector_store %arg10[%419, %c0_113], %418 {strides = array<i32>} : memref<64x128xf32, #tpu.memory_space<vmem>>, vector<8x128xf32>,
    %c4_i32_114 = arith.constant 4 : i32
    %c8_i32_115 = arith.constant 8 : i32
    %421 = arith.muli %c4_i32_114, %c8_i32_115 : i32
    %422 = tpu.assume_multiple %421, 8 : i32
    %423 = arith.index_cast %422 : i32 to index
    %c0_116 = arith.constant 0 : index
    %424 = vector.load %arg11[%423, %c0_116] : memref<64x512xf32, #tpu.memory_space<vmem>>, vector<8x512xf32>
    %cst_117 = arith.constant dense<0.000000e+00> : vector<8x512xf32>
    %425 = tpu.matmul %418, %286, %cst_117 {dimension_numbers = #tpu.dot_dimension_numbers<[1], [0], [0], [1], [0, 0, 1, 1], [], []>} : vector<8x128xf32>, vector<128x512xf32>, vector<8x512xf32> -> vector<8x512xf32>
    %426 = arith.addf %424, %425 : vector<8x512xf32>
    %427 = vector.extract_strided_slice %426 {offsets = [0, 0], sizes = [8, 128], strides = [1, 1]} : vector<8x512xf32> to vector<8x128xf32>
    %428 = arith.negf %427 : vector<8x128xf32>
    %429 = math.exp %428 : vector<8x128xf32>
    %cst_118 = arith.constant 1.000000e+00 : f32
    %430 = vector.broadcast %cst_118 : f32 to vector<8x128xf32>
    %431 = arith.addf %430, %429 : vector<8x128xf32>
    %432 = arith.divf %430, %431 : vector<8x128xf32>
    %433 = vector.extract_strided_slice %426 {offsets = [0, 128], sizes = [8, 128], strides = [1, 1]} : vector<8x512xf32> to vector<8x128xf32>
    %434 = arith.negf %433 : vector<8x128xf32>
    %435 = math.exp %434 : vector<8x128xf32>
    %cst_119 = arith.constant 1.000000e+00 : f32
    %436 = vector.broadcast %cst_119 : f32 to vector<8x128xf32>
    %437 = arith.addf %436, %435 : vector<8x128xf32>
    %438 = arith.divf %436, %437 : vector<8x128xf32>
    %439 = vector.extract_strided_slice %426 {offsets = [0, 256], sizes = [8, 128], strides = [1, 1]} : vector<8x512xf32> to vector<8x128xf32>
    %440 = math.tanh %439 : vector<8x128xf32>
    %441 = vector.extract_strided_slice %426 {offsets = [0, 384], sizes = [8, 128], strides = [1, 1]} : vector<8x512xf32> to vector<8x128xf32>
    %442 = arith.negf %441 : vector<8x128xf32>
    %443 = math.exp %442 : vector<8x128xf32>
    %cst_120 = arith.constant 1.000000e+00 : f32
    %444 = vector.broadcast %cst_120 : f32 to vector<8x128xf32>
    %445 = arith.addf %444, %443 : vector<8x128xf32>
    %446 = arith.divf %444, %445 : vector<8x128xf32>
    %447 = arith.mulf %438, %416 : vector<8x128xf32>
    %448 = arith.mulf %432, %440 : vector<8x128xf32>
    %449 = arith.addf %447, %448 : vector<8x128xf32>
    %450 = math.tanh %449 : vector<8x128xf32>
    %451 = arith.mulf %446, %450 : vector<8x128xf32>
    %452 = arith.index_cast %422 : i32 to index
    %c0_121 = arith.constant 0 : index
    %453 = vector.load %arg10[%452, %c0_121] : memref<64x128xf32, #tpu.memory_space<vmem>>, vector<8x128xf32>
    tpu.vector_store %arg10[%452, %c0_121], %451 {strides = array<i32>} : memref<64x128xf32, #tpu.memory_space<vmem>>, vector<8x128xf32>,
    %c5_i32_122 = arith.constant 5 : i32
    %c8_i32_123 = arith.constant 8 : i32
    %454 = arith.muli %c5_i32_122, %c8_i32_123 : i32
    %455 = tpu.assume_multiple %454, 8 : i32
    %456 = arith.index_cast %455 : i32 to index
    %c0_124 = arith.constant 0 : index
    %457 = vector.load %arg11[%456, %c0_124] : memref<64x512xf32, #tpu.memory_space<vmem>>, vector<8x512xf32>
    %cst_125 = arith.constant dense<0.000000e+00> : vector<8x512xf32>
    %458 = tpu.matmul %451, %286, %cst_125 {dimension_numbers = #tpu.dot_dimension_numbers<[1], [0], [0], [1], [0, 0, 1, 1], [], []>} : vector<8x128xf32>, vector<128x512xf32>, vector<8x512xf32> -> vector<8x512xf32>
    %459 = arith.addf %457, %458 : vector<8x512xf32>
    %460 = vector.extract_strided_slice %459 {offsets = [0, 0], sizes = [8, 128], strides = [1, 1]} : vector<8x512xf32> to vector<8x128xf32>
    %461 = arith.negf %460 : vector<8x128xf32>
    %462 = math.exp %461 : vector<8x128xf32>
    %cst_126 = arith.constant 1.000000e+00 : f32
    %463 = vector.broadcast %cst_126 : f32 to vector<8x128xf32>
    %464 = arith.addf %463, %462 : vector<8x128xf32>
    %465 = arith.divf %463, %464 : vector<8x128xf32>
    %466 = vector.extract_strided_slice %459 {offsets = [0, 128], sizes = [8, 128], strides = [1, 1]} : vector<8x512xf32> to vector<8x128xf32>
    %467 = arith.negf %466 : vector<8x128xf32>
    %468 = math.exp %467 : vector<8x128xf32>
    %cst_127 = arith.constant 1.000000e+00 : f32
    %469 = vector.broadcast %cst_127 : f32 to vector<8x128xf32>
    %470 = arith.addf %469, %468 : vector<8x128xf32>
    %471 = arith.divf %469, %470 : vector<8x128xf32>
    %472 = vector.extract_strided_slice %459 {offsets = [0, 256], sizes = [8, 128], strides = [1, 1]} : vector<8x512xf32> to vector<8x128xf32>
    %473 = math.tanh %472 : vector<8x128xf32>
    %474 = vector.extract_strided_slice %459 {offsets = [0, 384], sizes = [8, 128], strides = [1, 1]} : vector<8x512xf32> to vector<8x128xf32>
    %475 = arith.negf %474 : vector<8x128xf32>
    %476 = math.exp %475 : vector<8x128xf32>
    %cst_128 = arith.constant 1.000000e+00 : f32
    %477 = vector.broadcast %cst_128 : f32 to vector<8x128xf32>
    %478 = arith.addf %477, %476 : vector<8x128xf32>
    %479 = arith.divf %477, %478 : vector<8x128xf32>
    %480 = arith.mulf %471, %449 : vector<8x128xf32>
    %481 = arith.mulf %465, %473 : vector<8x128xf32>
    %482 = arith.addf %480, %481 : vector<8x128xf32>
    %483 = math.tanh %482 : vector<8x128xf32>
    %484 = arith.mulf %479, %483 : vector<8x128xf32>
    %485 = arith.index_cast %455 : i32 to index
    %c0_129 = arith.constant 0 : index
    %486 = vector.load %arg10[%485, %c0_129] : memref<64x128xf32, #tpu.memory_space<vmem>>, vector<8x128xf32>
    tpu.vector_store %arg10[%485, %c0_129], %484 {strides = array<i32>} : memref<64x128xf32, #tpu.memory_space<vmem>>, vector<8x128xf32>,
    %c6_i32_130 = arith.constant 6 : i32
    %c8_i32_131 = arith.constant 8 : i32
    %487 = arith.muli %c6_i32_130, %c8_i32_131 : i32
    %488 = tpu.assume_multiple %487, 8 : i32
    %489 = arith.index_cast %488 : i32 to index
    %c0_132 = arith.constant 0 : index
    %490 = vector.load %arg11[%489, %c0_132] : memref<64x512xf32, #tpu.memory_space<vmem>>, vector<8x512xf32>
    %cst_133 = arith.constant dense<0.000000e+00> : vector<8x512xf32>
    %491 = tpu.matmul %484, %286, %cst_133 {dimension_numbers = #tpu.dot_dimension_numbers<[1], [0], [0], [1], [0, 0, 1, 1], [], []>} : vector<8x128xf32>, vector<128x512xf32>, vector<8x512xf32> -> vector<8x512xf32>
    %492 = arith.addf %490, %491 : vector<8x512xf32>
    %493 = vector.extract_strided_slice %492 {offsets = [0, 0], sizes = [8, 128], strides = [1, 1]} : vector<8x512xf32> to vector<8x128xf32>
    %494 = arith.negf %493 : vector<8x128xf32>
    %495 = math.exp %494 : vector<8x128xf32>
    %cst_134 = arith.constant 1.000000e+00 : f32
    %496 = vector.broadcast %cst_134 : f32 to vector<8x128xf32>
    %497 = arith.addf %496, %495 : vector<8x128xf32>
    %498 = arith.divf %496, %497 : vector<8x128xf32>
    %499 = vector.extract_strided_slice %492 {offsets = [0, 128], sizes = [8, 128], strides = [1, 1]} : vector<8x512xf32> to vector<8x128xf32>
    %500 = arith.negf %499 : vector<8x128xf32>
    %501 = math.exp %500 : vector<8x128xf32>
    %cst_135 = arith.constant 1.000000e+00 : f32
    %502 = vector.broadcast %cst_135 : f32 to vector<8x128xf32>
    %503 = arith.addf %502, %501 : vector<8x128xf32>
    %504 = arith.divf %502, %503 : vector<8x128xf32>
    %505 = vector.extract_strided_slice %492 {offsets = [0, 256], sizes = [8, 128], strides = [1, 1]} : vector<8x512xf32> to vector<8x128xf32>
    %506 = math.tanh %505 : vector<8x128xf32>
    %507 = vector.extract_strided_slice %492 {offsets = [0, 384], sizes = [8, 128], strides = [1, 1]} : vector<8x512xf32> to vector<8x128xf32>
    %508 = arith.negf %507 : vector<8x128xf32>
    %509 = math.exp %508 : vector<8x128xf32>
    %cst_136 = arith.constant 1.000000e+00 : f32
    %510 = vector.broadcast %cst_136 : f32 to vector<8x128xf32>
    %511 = arith.addf %510, %509 : vector<8x128xf32>
    %512 = arith.divf %510, %511 : vector<8x128xf32>
    %513 = arith.mulf %504, %482 : vector<8x128xf32>
    %514 = arith.mulf %498, %506 : vector<8x128xf32>
    %515 = arith.addf %513, %514 : vector<8x128xf32>
    %516 = math.tanh %515 : vector<8x128xf32>
    %517 = arith.mulf %512, %516 : vector<8x128xf32>
    %518 = arith.index_cast %488 : i32 to index
    %c0_137 = arith.constant 0 : index
    %519 = vector.load %arg10[%518, %c0_137] : memref<64x128xf32, #tpu.memory_space<vmem>>, vector<8x128xf32>
    tpu.vector_store %arg10[%518, %c0_137], %517 {strides = array<i32>} : memref<64x128xf32, #tpu.memory_space<vmem>>, vector<8x128xf32>,
    %c7_i32_138 = arith.constant 7 : i32
    %c8_i32_139 = arith.constant 8 : i32
    %520 = arith.muli %c7_i32_138, %c8_i32_139 : i32
    %521 = tpu.assume_multiple %520, 8 : i32
    %522 = arith.index_cast %521 : i32 to index
    %c0_140 = arith.constant 0 : index
    %523 = vector.load %arg11[%522, %c0_140] : memref<64x512xf32, #tpu.memory_space<vmem>>, vector<8x512xf32>
    %cst_141 = arith.constant dense<0.000000e+00> : vector<8x512xf32>
    %524 = tpu.matmul %517, %286, %cst_141 {dimension_numbers = #tpu.dot_dimension_numbers<[1], [0], [0], [1], [0, 0, 1, 1], [], []>} : vector<8x128xf32>, vector<128x512xf32>, vector<8x512xf32> -> vector<8x512xf32>
    %525 = arith.addf %523, %524 : vector<8x512xf32>
    %526 = vector.extract_strided_slice %525 {offsets = [0, 0], sizes = [8, 128], strides = [1, 1]} : vector<8x512xf32> to vector<8x128xf32>
    %527 = arith.negf %526 : vector<8x128xf32>
    %528 = math.exp %527 : vector<8x128xf32>
    %cst_142 = arith.constant 1.000000e+00 : f32
    %529 = vector.broadcast %cst_142 : f32 to vector<8x128xf32>
    %530 = arith.addf %529, %528 : vector<8x128xf32>
    %531 = arith.divf %529, %530 : vector<8x128xf32>
    %532 = vector.extract_strided_slice %525 {offsets = [0, 128], sizes = [8, 128], strides = [1, 1]} : vector<8x512xf32> to vector<8x128xf32>
    %533 = arith.negf %532 : vector<8x128xf32>
    %534 = math.exp %533 : vector<8x128xf32>
    %cst_143 = arith.constant 1.000000e+00 : f32
    %535 = vector.broadcast %cst_143 : f32 to vector<8x128xf32>
    %536 = arith.addf %535, %534 : vector<8x128xf32>
    %537 = arith.divf %535, %536 : vector<8x128xf32>
    %538 = vector.extract_strided_slice %525 {offsets = [0, 256], sizes = [8, 128], strides = [1, 1]} : vector<8x512xf32> to vector<8x128xf32>
    %539 = math.tanh %538 : vector<8x128xf32>
    %540 = vector.extract_strided_slice %525 {offsets = [0, 384], sizes = [8, 128], strides = [1, 1]} : vector<8x512xf32> to vector<8x128xf32>
    %541 = arith.negf %540 : vector<8x128xf32>
    %542 = math.exp %541 : vector<8x128xf32>
    %cst_144 = arith.constant 1.000000e+00 : f32
    %543 = vector.broadcast %cst_144 : f32 to vector<8x128xf32>
    %544 = arith.addf %543, %542 : vector<8x128xf32>
    %545 = arith.divf %543, %544 : vector<8x128xf32>
    %546 = arith.mulf %537, %515 : vector<8x128xf32>
    %547 = arith.mulf %531, %539 : vector<8x128xf32>
    %548 = arith.addf %546, %547 : vector<8x128xf32>
    %549 = math.tanh %548 : vector<8x128xf32>
    %550 = arith.mulf %545, %549 : vector<8x128xf32>
    %551 = arith.index_cast %521 : i32 to index
    %c0_145 = arith.constant 0 : index
    %552 = vector.load %arg10[%551, %c0_145] : memref<64x128xf32, #tpu.memory_space<vmem>>, vector<8x128xf32>
    tpu.vector_store %arg10[%551, %c0_145], %550 {strides = array<i32>} : memref<64x128xf32, #tpu.memory_space<vmem>>, vector<8x128xf32>,
    %c8_i32_146 = arith.constant 8 : i32
    %c0_147 = arith.constant 0 : index
    %c0_148 = arith.constant 0 : index
    %553 = vector.load %arg7[%c0_147, %c0_148] : memref<128x128xf32, #tpu.memory_space<vmem>>, vector<128x128xf32>
    %cst_149 = arith.constant dense<0.000000e+00> : vector<8x128xf32>
    %554 = tpu.matmul %550, %553, %cst_149 {dimension_numbers = #tpu.dot_dimension_numbers<[1], [0], [0], [1], [0, 0, 1, 1], [], []>} : vector<8x128xf32>, vector<128x128xf32>, vector<8x128xf32> -> vector<8x128xf32>
    %c0_150 = arith.constant 0 : index
    %c0_151 = arith.constant 0 : index
    %555 = vector.load %arg8[%c0_150, %c0_151] : memref<1x128xf32, #tpu.memory_space<vmem>>, vector<1x128xf32>
    %556 = vector.broadcast %555 : vector<1x128xf32> to vector<8x128xf32>
    %557 = arith.addf %554, %556 : vector<8x128xf32>
    %c0_152 = arith.constant 0 : index
    %c0_153 = arith.constant 0 : index
    %558 = vector.load %arg9[%c0_152, %c0_153] : memref<8x128xf32, #tpu.memory_space<vmem>>, vector<8x128xf32>
    tpu.vector_store %arg9[%c0_152, %c0_153], %557 {strides = array<i32>} : memref<8x128xf32, #tpu.memory_space<vmem>>, vector<8x128xf32>,
    return
  }
}

</mosaic_0001>

<bundles_post_ra>
// kernel: tpu_custom_call.1
= control target key start
LH: loop header
LB: loop body
LE: loop exit
PB: predicated region body
PF: predicated region fallthrough
CT: control target
= control target key end

     0   :  { %14 = vsyncpa [#allocation5], 0  ;;  %s6484_s0 = inlined_call_operand.vmem [shape: f32[64,1], index: 0, kind: input, shape index: {}]   ;;  %s6485_s1 = inlined_call_operand.vmem [shape: f32[1,512], index: 1, kind: input, shape index: {}]   ;;  %s6486_s2 = inlined_call_operand.hbm [shape: f32[128,512], index: 2, kind: input, shape index: {}]   ;;  %s6487_s3 = inlined_call_operand.vmem [shape: f32[1,512], index: 3, kind: input, shape index: {}]   ;;  %s6488_s4 = inlined_call_operand.hbm [shape: f32[1,128,512], index: 4, kind: input, shape index: {}]   ;;  %s6489_s5 = inlined_call_operand.hbm [shape: f32[1,128,512], index: 5, kind: input, shape index: {}]   ;;  %s6490_s6 = inlined_call_operand.vmem [shape: f32[1,1,512], index: 6, kind: input, shape index: {}]   ;;  %s6491_s7 = inlined_call_operand.hbm [shape: f32[128,128], index: 7, kind: input, shape index: {}]   ;;  %s6492_s8 = inlined_call_operand.vmem [shape: f32[1,128], index: 8, kind: input, shape index: {}]   ;;  %s6493_s9 = inlined_call_operand.hbm [shape: f32[8,128], index: 9, kind: output, shape index: {}]  }
   0x1   :  { %15 = vsyncpa [#allocation8], 0 }
   0x2   :  { %16 = vsyncpa [#allocation11], 0 }
   0x3   :  { %17 = vsyncpa [#allocation6], 0  ;;  %s5371_s30 = smov [#allocation7]   ;;  %s5372_s11 = smov [#allocation4]  }
   0x4   :  { %s41_s10 = sshll.u32 %s5371_s30, 4  ;;  %s27_s12 = sshll.u32 %s5372_s11, 4  ;;  %s42_s10 = int_to_ptr.vmem [resolvable:$true] %s41_s10  ;;  %s5434_s12 = int_to_ptr.vmem [resolvable:$true] %s27_s12 }
   0x5   :  { %s5253_s15 = scalar_lea.hbm %s6488_s4, 8192 }
   0x6   :  { %p5254_p0 = scmp.ne.s32.totalorder %s6488_s4, %s5253_s15  ;;  %p5257_p1 = scmp.lt.u32.totalorder %s5253_s15, %s6488_s4 }
   0x8   :  { %p5259_p2 = pnand %p5257_p1, %p5254_p0 }
   0xa   :  { %5262 = shalt.err (!%p5259_p2)
}
   0xb   :  { %s5263_s20 = scalar_lea.vmem %s42_s10, 8192  ;;  %p5268_p4 = scmp.lt.s32.totalorder %s42_s10, %s42_s10 }
   0xc   :  { %p5264_p3 = scmp.ne.s32.totalorder %s42_s10, %s5263_s20  ;;  %p5269_p5 = scmp.lt.s32.totalorder %s5263_s20, %s5263_s20 }
   0xe   :  { %p5270_p6 = por %p5269_p5, %p5268_p4 }
  0x10   :  { %p5271_p7 = pnand %p5270_p6, %p5264_p3 }
  0x12   :  { %5274 = shalt.err (!%p5271_p7)
}
  0x13   :  { %s5373_s21 = smov 512   ;;  %s5374_s22 = smov 32  }
  0x14   :  { %47 = dma.hbm_to_vmem [thread:$0]  %s6488_s4, 8192, %s42_s10, [#allocation8], %s5373_s21, %s5373_s21, %s5374_s22  }
  0x15   :  { %s5275_s27 = scalar_lea.hbm %s6486_s2, 8192 }
  0x16   :  { %p5276_p8 = scmp.ne.s32.totalorder %s6486_s2, %s5275_s27  ;;  %p5279_p9 = scmp.lt.u32.totalorder %s5275_s27, %s6486_s2 }
  0x18   :  { %p5281_p10 = pnand %p5279_p9, %p5276_p8 }
  0x1a   :  { %5284 = shalt.err (!%p5281_p10)
}
  0x1b   :  { %s5285_s13 = scalar_lea.vmem %s5434_s12, 8192  ;;  %p5290_p12 = scmp.lt.s32.totalorder %s5434_s12, %s5434_s12 }
  0x1c   :  { %p5286_p11 = scmp.ne.s32.totalorder %s5434_s12, %s5285_s13  ;;  %p5291_p13 = scmp.lt.s32.totalorder %s5285_s13, %s5285_s13 }
  0x1e   :  { %p5292_p0 = por %p5291_p13, %p5290_p12 }
  0x20   :  { %p5293_p1 = pnand %p5292_p0, %p5286_p11 }
  0x22   :  { %5296 = shalt.err (!%p5293_p1)
}
  0x23   :  { %33 = dma.hbm_to_vmem [thread:$0]  %s6486_s2, 8192, %s5434_s12, [#allocation5], %s5373_s21, %s5373_s21, %s5374_s22  }
  0x24   :  { %s5375_s14 = smov [#allocation9]   ;;  %s5376_s16 = smov [#allocation10]  }
  0x25   :  { %s53_s15 = sshll.u32 %s5375_s14, 4  ;;  %s67_s17 = sshll.u32 %s5376_s16, 4  ;;  %s54_s15 = int_to_ptr.vmem [resolvable:$true] %s53_s15  ;;  %s5471_s17 = int_to_ptr.vmem [resolvable:$true] %s67_s17 }
  0x26   :  { %s5297_s20 = scalar_lea.hbm %s6489_s5, 8192 }
  0x27   :  { %p5298_p2 = scmp.ne.s32.totalorder %s6489_s5, %s5297_s20  ;;  %p5301_p3 = scmp.lt.u32.totalorder %s5297_s20, %s6489_s5 }
  0x29   :  { %p5303_p4 = pnand %p5301_p3, %p5298_p2 }
  0x2b   :  { %5306 = shalt.err (!%p5303_p4)
}
  0x2c   :  { %s5307_s2 = scalar_lea.vmem %s54_s15, 8192  ;;  %p5312_p6 = scmp.lt.s32.totalorder %s54_s15, %s54_s15 }
  0x2d   :  { %p5308_p5 = scmp.ne.s32.totalorder %s54_s15, %s5307_s2  ;;  %p5313_p7 = scmp.lt.s32.totalorder %s5307_s2, %s5307_s2 }
  0x2f   :  { %p5314_p8 = por %p5313_p7, %p5312_p6 }
  0x31   :  { %p5315_p9 = pnand %p5314_p8, %p5308_p5 }
  0x33   :  { %5318 = shalt.err (!%p5315_p9)
}
  0x34   :  { %59 = dma.hbm_to_vmem [thread:$0]  %s6489_s5, 8192, %s54_s15, [#allocation8], %s5373_s21, %s5373_s21, %s5374_s22  }
  0x35   :  { %s5319_s30 = scalar_lea.hbm %s6491_s7, 2048 }
  0x36   :  { %p5320_p10 = scmp.ne.s32.totalorder %s6491_s7, %s5319_s30  ;;  %p5323_p11 = scmp.lt.u32.totalorder %s5319_s30, %s6491_s7 }
  0x38   :  { %p5325_p12 = pnand %p5323_p11, %p5320_p10 }
  0x3a   :  { %5328 = shalt.err (!%p5325_p12)
}
  0x3b   :  { %s5329_s14 = scalar_lea.vmem %s5471_s17, 2048  ;;  %p5334_p0 = scmp.lt.s32.totalorder %s5471_s17, %s5471_s17 }
  0x3c   :  { %p5330_p13 = scmp.ne.s32.totalorder %s5471_s17, %s5329_s14  ;;  %p5335_p1 = scmp.lt.s32.totalorder %s5329_s14, %s5329_s14 }
  0x3e   :  { %p5336_p2 = por %p5335_p1, %p5334_p0 }
  0x40   :  { %p5337_p3 = pnand %p5336_p2, %p5330_p13 }
  0x42   :  { %5340 = shalt.err (!%p5337_p3)
}
  0x43   :  { %s5377_s5 = smov 128   ;;  %s5378_s21 = smov 8  }
  0x44   :  { %73 = dma.hbm_to_vmem [thread:$0]  %s6491_s7, 2048, %s5471_s17, [#allocation11], %s5377_s5, %s5377_s5, %s5378_s21  }
  0x45   :  { %5363 = dma.done.wait [#allocation5], 8192  }
  0x46   :  { %5364 = vsyncadd [#allocation5], 4294959104 }
  0x47   :  { %5365 = dma.done.wait [#allocation8], 16384  }
  0x48   :  { %5366 = vsyncadd [#allocation8], 4294950912 }
  0x49   :  { %5367 = dma.done.wait [#allocation11], 2048  }
  0x4a   :  { %5368 = vsyncadd [#allocation11], 4294965248  ;;  %v6494_v0 = vmov 0.0   ;;  %v5380_v1 = vmov 0   ;;  %v277_v2 = vld [vmem:[#allocation4 + $0x8] sm:$0xff]  ;;  %v279_v4 = vld [vmem:[#allocation4 + $0x18] sm:$0xff] }
  0x4b   :  { %411 = vmatprep.mubr.f32.mxu0 %v6494_v0  ;;  %482 = vmatprep.mubr.f32.mxu1 %v6494_v0  ;;  %v281_v3 = vld [vmem:[#allocation4 + $0x28] sm:$0xff]  ;;  %v283_v6 = vld [vmem:[#allocation4 + $0x38] sm:$0xff]  ;;  %v276_v7 = vld [vmem:[#allocation4] sm:$0xff]  ;;  %vm5382_vm0 = vmmov 0   ;;  %s5383_s14 = smov [#allocation12]  }
  0x4c   :  { %4995 = vset.pattern.permute.xlu0 %v5380_v1  ;;  %4996 = vset.pattern.permute.xlu1 %v5380_v1  ;;  %v5507_v5 = vpack.c.bf16 %v281_v3, %v277_v2  ;;  %v280_v8 = vld [vmem:[#allocation4 + $0x20] sm:$0xff]  ;;  %v5509_v9 = vpack.c.bf16 %v283_v6, %v279_v4  ;;  %v278_v11 = vld [vmem:[#allocation4 + $0x10] sm:$0xff]  ;;  %v285_v13 = vld [vmem:[#allocation4 + $0x48] sm:$0xff]  ;;  %s3687_s5 = sshll.u32 %s5383_s14, 4  ;;  %s3688_s5 = int_to_ptr.vmem [resolvable:$true] %s3687_s5 }
  0x4d   :  { %v5511_v10 = vpack.c.bf16 %v280_v8, %v276_v7  ;;  %v282_v12 = vld [vmem:[#allocation4 + $0x30] sm:$0xff]  ;;  %v289_v15 = vld [vmem:[#allocation4 + $0x68] sm:$0xff]  ;;  %v287_v16 = vld [vmem:[#allocation4 + $0x58] sm:$0xff]  ;;  %s5341_s21 = scalar_lea.vmem %s3688_s5, 128  ;;  %p5346_p5 = scmp.lt.s32.totalorder %s3688_s5, %s3688_s5 }
  0x4e   :  { %3807 = vmatprep.subr.bf16.mxu0 %v5507_v5  ;;  %v5514_v14 = vpack.c.bf16 %v282_v12, %v278_v11  ;;  %v291_v17 = vld [vmem:[#allocation4 + $0x78] sm:$0xff]  ;;  %3839 = vmatprep.subr.bf16.mxu1 %v5509_v9  ;;  %v5518_v18 = vpack.c.bf16 %v289_v15, %v285_v13  ;;  %v284_v20 = vld [vmem:[#allocation4 + $0x40] sm:$0xff]  ;;  %v286_v22 = vld [vmem:[#allocation4 + $0x50] sm:$0xff]  ;;  %p5342_p4 = scmp.ne.s32.totalorder %s3688_s5, %s5341_s21  ;;  %p5347_p6 = scmp.lt.s32.totalorder %s5341_s21, %s5341_s21 }
  0x4f   :  { %3809 = vmatpush1.bf16.msra.mxu0 %v5511_v10  ;;  %v5520_v19 = vpack.c.bf16 %v291_v17, %v287_v16  ;;  %v288_v21 = vld [vmem:[#allocation4 + $0x60] sm:$0xff]  ;;  %v290_v24 = vld [vmem:[#allocation4 + $0x70] sm:$0xff]  ;;  %v293_v25 = vld [vmem:[#allocation4 + $0x88] sm:$0xff] }
  0x50   :  { %3841 = vmatpush1.bf16.msra.mxu1 %v5514_v14  ;;  %v5523_v23 = vpack.c.bf16 %v288_v21, %v284_v20  ;;  %v297_v26 = vld [vmem:[#allocation4 + $0xa8] sm:$0xff]  ;;  %3811 = vmatprep.subr.bf16.mxu0 %v5518_v18  ;;  %v5527_v27 = vpack.c.bf16 %v290_v24, %v286_v22  ;;  %v295_v29 = vld [vmem:[#allocation4 + $0x98] sm:$0xff]  ;;  %v292_v31 = vld [vmem:[#allocation4 + $0x80] sm:$0xff]  ;;  %p5348_p7 = por %p5347_p6, %p5346_p5 }
  0x51   :  { %3843 = vmatprep.subr.bf16.mxu1 %v5520_v19  ;;  %v5529_v28 = vpack.c.bf16 %v297_v26, %v293_v25  ;;  %v299_v30 = vld [vmem:[#allocation4 + $0xb8] sm:$0xff]  ;;  %v296_v33 = vld [vmem:[#allocation4 + $0xa0] sm:$0xff]  ;;  %v294_v34 = vld [vmem:[#allocation4 + $0x90] sm:$0xff] }
  0x52   :  { %v5531_v32 = vpack.c.bf16 %v299_v30, %v295_v29  ;;  %v298_v35 = vld [vmem:[#allocation4 + $0xb0] sm:$0xff]  ;;  %v5534_v36 = vpack.c.bf16 %v296_v33, %v292_v31  ;;  %v301_v37 = vld [vmem:[#allocation4 + $0xc8] sm:$0xff]  ;;  %v303_v39 = vld [vmem:[#allocation4 + $0xd8] sm:$0xff]  ;;  %p5349_p8 = pnand %p5348_p7, %p5342_p4 }
  0x53   :  { %3813 = vmatpush1.bf16.msra.mxu0 %v5523_v23  ;;  %v305_v38 = vld [vmem:[#allocation4 + $0xe8] sm:$0xff]  ;;  %v5538_v40 = vpack.c.bf16 %v298_v35, %v294_v34  ;;  %v307_v42 = vld [vmem:[#allocation4 + $0xf8] sm:$0xff]  ;;  %v300_v43 = vld [vmem:[#allocation4 + $0xc0] sm:$0xff] }
  0x54   :  { %3845 = vmatpush1.bf16.msra.mxu1 %v5527_v27  ;;  %3815 = vmatprep.subr.bf16.mxu0 %v5529_v28  ;;  %v5540_v41 = vpack.c.bf16 %v305_v38, %v301_v37  ;;  %v304_v44 = vld [vmem:[#allocation4 + $0xe0] sm:$0xff]  ;;  %v5543_v45 = vpack.c.bf16 %v307_v42, %v303_v39  ;;  %v302_v46 = vld [vmem:[#allocation4 + $0xd0] sm:$0xff]  ;;  %v309_v48 = vld [vmem:[#allocation4 + $0x108] sm:$0xff] }
  0x55   :  { %3847 = vmatprep.subr.bf16.mxu1 %v5531_v32  ;;  %v306_v47 = vld [vmem:[#allocation4 + $0xf0] sm:$0xff]  ;;  %v313_v49 = vld [vmem:[#allocation4 + $0x128] sm:$0xff]  ;;  %v311_v50 = vld [vmem:[#allocation4 + $0x118] sm:$0xff]  ;;  %v5546_v52 = vpack.c.bf16 %v304_v44, %v300_v43 }
  0x56   :  { %v315_v51 = vld [vmem:[#allocation4 + $0x138] sm:$0xff]  ;;  %v5550_v53 = vpack.c.bf16 %v306_v47, %v302_v46  ;;  %v5552_v54 = vpack.c.bf16 %v313_v49, %v309_v48  ;;  %v308_v55 = vld [vmem:[#allocation4 + $0x100] sm:$0xff]  ;;  %v310_v57 = vld [vmem:[#allocation4 + $0x110] sm:$0xff] }
  0x57   :  { %3817 = vmatpush1.bf16.msra.mxu0 %v5534_v36  ;;  %v312_v56 = vld [vmem:[#allocation4 + $0x120] sm:$0xff]  ;;  %v5555_v58 = vpack.c.bf16 %v315_v51, %v311_v50  ;;  %v314_v59 = vld [vmem:[#allocation4 + $0x130] sm:$0xff]  ;;  %v317_v60 = vld [vmem:[#allocation4 + $0x148] sm:$0xff] }
  0x58   :  { %3849 = vmatpush1.bf16.msra.mxu1 %v5538_v40  ;;  %3819 = vmatprep.subr.bf16.mxu0 %v5540_v41  ;;  %v321_v61 = vld [vmem:[#allocation4 + $0x168] sm:$0xff]  ;;  %v319_v62 = vld [vmem:[#allocation4 + $0x158] sm:$0xff]  ;;  %v5558_v1 = vpack.c.bf16 %v312_v56, %v308_v55  ;;  %v5562_v2 = vpack.c.bf16 %v314_v59, %v310_v57  ;;  %v316_v4 = vld [vmem:[#allocation4 + $0x140] sm:$0xff]  ;;  %v138_v56 = vlaneseq }
  0x59   :  { %3851 = vmatprep.subr.bf16.mxu1 %v5543_v45  ;;  %v323_v63 = vld [vmem:[#allocation4 + $0x178] sm:$0xff]  ;;  %v5564_v3 = vpack.c.bf16 %v321_v61, %v317_v60  ;;  %v320_v6 = vld [vmem:[#allocation4 + $0x160] sm:$0xff]  ;;  %v318_v7 = vld [vmem:[#allocation4 + $0x150] sm:$0xff] }
  0x5a   :  { %v5567_v8 = vpack.c.bf16 %v323_v63, %v319_v62  ;;  %v322_v11 = vld [vmem:[#allocation4 + $0x170] sm:$0xff]  ;;  %v325_v12 = vld [vmem:[#allocation4 + $0x188] sm:$0xff]  ;;  %v327_v15 = vld [vmem:[#allocation4 + $0x198] sm:$0xff]  ;;  %v5570_v17 = vpack.c.bf16 %v320_v6, %v316_v4  ;;  %v139_v57 = vshrl.u32 %v138_v56, 7 }
  0x5b   :  { %3821 = vmatpush1.bf16.msra.mxu0 %v5546_v52  ;;  %v329_v13 = vld [vmem:[#allocation4 + $0x1a8] sm:$0xff]  ;;  %v331_v16 = vld [vmem:[#allocation4 + $0x1b8] sm:$0xff]  ;;  %v324_v20 = vld [vmem:[#allocation4 + $0x180] sm:$0xff]  ;;  %v5574_v21 = vpack.c.bf16 %v322_v11, %v318_v7 }
  0x5c   :  { %3853 = vmatpush1.bf16.msra.mxu1 %v5550_v53  ;;  %3823 = vmatprep.subr.bf16.mxu0 %v5552_v54  ;;  %v5576_v22 = vpack.c.bf16 %v329_v13, %v325_v12  ;;  %v328_v24 = vld [vmem:[#allocation4 + $0x1a0] sm:$0xff]  ;;  %v326_v25 = vld [vmem:[#allocation4 + $0x190] sm:$0xff]  ;;  %v88_v26 = vld [vmem:[%s6484_s0] sm:$0xff]  ;;  %v5582_v29 = vpack.c.bf16 %v331_v16, %v327_v15  ;;  %v5653_v59 = vsub.s32 0, %v139_v57  ;;  %v5658_v61 = vsub.s32 1, %v139_v57 }
  0x5d   :  { %3855 = vmatprep.subr.bf16.mxu1 %v5555_v58  ;;  %v330_v30 = vld [vmem:[#allocation4 + $0x1b0] sm:$0xff]  ;;  %v333_v31 = vld [vmem:[#allocation4 + $0x1c8] sm:$0xff]  ;;  %99 = vperm.xlu0 %4995, %v88_v26   ;;  %v335_v34 = vld [vmem:[#allocation4 + $0x1d8] sm:$0xff]  ;;  %v5588_v38 = vpack.c.bf16 %v328_v24, %v324_v20  ;;  %v5669_v7 = vsub.s32 3, %v139_v57  ;;  %v5682_v20 = vsub.s32 2, %v139_v57 }
  0x5e   :  { %v337_v33 = vld [vmem:[#allocation4 + $0x1e8] sm:$0xff]  ;;  %v339_v35 = vld [vmem:[#allocation4 + $0x1f8] sm:$0xff]  ;;  %v89_v37 = vld [vmem:[%s6484_s0 + $0x8] sm:$0xff]  ;;  %v5592_v39 = vpack.c.bf16 %v330_v30, %v326_v25  ;;  %6502 = vst [vmem:[#allocation17_spill] sm:$0xff] %v5653_v59 }
  0x5f   :  { %3825 = vmatpush1.bf16.msra.mxu0 %v5558_v1  ;;  %v5594_v42 = vpack.c.bf16 %v337_v33, %v333_v31  ;;  %v332_v43 = vld [vmem:[#allocation4 + $0x1c0] sm:$0xff]  ;;  %v5597_v46 = vpack.c.bf16 %v339_v35, %v335_v34  ;;  %v334_v47 = vld [vmem:[#allocation4 + $0x1d0] sm:$0xff]  ;;  %v92_v49 = vld [vmem:[%s6484_s0 + $0x20] sm:$0xff]  ;;  %6503 = vst [vmem:[#allocation18_spill] sm:$0xff] %v5658_v61 }
  0x60   :  { %3857 = vmatpush1.bf16.msra.mxu1 %v5562_v2  ;;  %3827 = vmatprep.subr.bf16.mxu0 %v5564_v3  ;;  %v336_v44 = vld [vmem:[#allocation4 + $0x1e0] sm:$0xff]  ;;  %v338_v48 = vld [vmem:[#allocation4 + $0x1f0] sm:$0xff]  ;;  %v94_v55 = vld [vmem:[%s6484_s0 + $0x30] sm:$0xff]  ;;  %6504 = vst [vmem:[#allocation19_spill] sm:$0xff] %v5669_v7 }
  0x61   :  { %3859 = vmatprep.subr.bf16.mxu1 %v5567_v8  ;;  %104 = vperm.xlu0 %4995, %v89_v37   ;;  %v5603_v50 = vpack.c.bf16 %v336_v44, %v332_v43  ;;  %v5607_v51 = vpack.c.bf16 %v338_v48, %v334_v47  ;;  %v96_v60 = vld [vmem:[%s6485_s1] sm:$0xf]  ;;  %6505 = vst [vmem:[#allocation20_spill] sm:$0xff] %v5682_v20 }
  0x62   :  { %v5661_v62 = vrot.slane %v96_v60, %v5653_v59  ;;  %v5664_v63 = vrot.slane %v96_v60, %v5658_v61  ;;  %v190_v4 = vld [vmem:[%s6487_s3] sm:$0xf]  ;;  %v5680_v16 = vrot.slane %v96_v60, %v5669_v7  ;;  %v5691_v33 = vrot.slane %v96_v60, %v5682_v20 }
  0x63   :  { %3829 = vmatpush1.bf16.msra.mxu0 %v5570_v17  ;;  %v5673_v12 = vrot.slane %v190_v4, %v5653_v59  ;;  %v5677_v15 = vrot.slane %v190_v4, %v5658_v61  ;;  %v5688_v31 = vrot.slane %v190_v4, %v5669_v7  ;;  %v5696_v56 = vrot.slane %v190_v4, %v5682_v20 }
  0x64   :  { %3861 = vmatpush1.bf16.msra.mxu1 %v5574_v21  ;;  %3831 = vmatprep.subr.bf16.mxu0 %v5576_v22 }
  0x65   :  { %3863 = vmatprep.subr.bf16.mxu1 %v5582_v29  ;;  %119 = vperm.xlu0 %4995, %v92_v49  }
  0x67   :  { %3833 = vmatpush1.bf16.msra.mxu0 %v5588_v38 }
  0x68   :  { %3865 = vmatpush1.bf16.msra.mxu1 %v5592_v39  ;;  %3835 = vmatprep.subr.bf16.mxu0 %v5594_v42 }
  0x69   :  { %3867 = vmatprep.subr.bf16.mxu1 %v5597_v46  ;;  %129 = vperm.xlu0 %4995, %v94_v55  }
  0x6b   :  { %3837 = vmatpush1.bf16.msra.mxu0 %v5603_v50 }
  0x6c   :  { %3869 = vmatpush1.bf16.msra.mxu1 %v5607_v51  ;;  %3871 = vmatprep.subr.bf16.mxu0 %v5507_v5 }
  0x6d   :  { %3903 = vmatprep.subr.bf16.mxu1 %v5509_v9 }
  0x6e   :  { %412 = vmatmul.mubr.f32.vlgmr.msra.gmra.mrb[0].mxu0 %v6494_v0 }
  0x6f   :  { %483 = vmatmul.mubr.f32.vlgmr.msra.gmra.mrb[0].mxu1 %v6494_v0  ;;  %3873 = vmatpush1.bf16.msra.mxu0 %v5511_v10 }
  0x70   :  { %3905 = vmatpush1.bf16.msra.mxu1 %v5514_v14  ;;  %3875 = vmatprep.subr.bf16.mxu0 %v5518_v18 }
  0x71   :  { %3907 = vmatprep.subr.bf16.mxu1 %v5520_v19  ;;  %589 = vmatprep.mubr.f32.mxu0 %v6494_v0 }
  0x72   :  { %660 = vmatprep.mubr.f32.mxu1 %v6494_v0 }
  0x73   :  { %3877 = vmatpush1.bf16.msra.mxu0 %v5523_v23 }
  0x74   :  { %3909 = vmatpush1.bf16.msra.mxu1 %v5527_v27  ;;  %3879 = vmatprep.subr.bf16.mxu0 %v5529_v28 }
  0x75   :  { %3911 = vmatprep.subr.bf16.mxu1 %v5531_v32 }
  0x77   :  { %3881 = vmatpush1.bf16.msra.mxu0 %v5534_v36 }
  0x78   :  { %3913 = vmatpush1.bf16.msra.mxu1 %v5538_v40  ;;  %3883 = vmatprep.subr.bf16.mxu0 %v5540_v41 }
  0x79   :  { %3915 = vmatprep.subr.bf16.mxu1 %v5543_v45 }
  0x7b   :  { %3885 = vmatpush1.bf16.msra.mxu0 %v5546_v52 }
  0x7c   :  { %3917 = vmatpush1.bf16.msra.mxu1 %v5550_v53  ;;  %3887 = vmatprep.subr.bf16.mxu0 %v5552_v54 }
  0x7d   :  { %3919 = vmatprep.subr.bf16.mxu1 %v5555_v58 }
  0x7f   :  { %3889 = vmatpush1.bf16.msra.mxu0 %v5558_v1 }
  0x80   :  { %3921 = vmatpush1.bf16.msra.mxu1 %v5562_v2  ;;  %3891 = vmatprep.subr.bf16.mxu0 %v5564_v3 }
  0x81   :  { %3923 = vmatprep.subr.bf16.mxu1 %v5567_v8 }
  0x83   :  { %3893 = vmatpush1.bf16.msra.mxu0 %v5570_v17 }
  0x84   :  { %3925 = vmatpush1.bf16.msra.mxu1 %v5574_v21  ;;  %3895 = vmatprep.subr.bf16.mxu0 %v5576_v22 }
  0x85   :  { %3927 = vmatprep.subr.bf16.mxu1 %v5582_v29 }
  0x87   :  { %3897 = vmatpush1.bf16.msra.mxu0 %v5588_v38 }
  0x88   :  { %3929 = vmatpush1.bf16.msra.mxu1 %v5592_v39  ;;  %3899 = vmatprep.subr.bf16.mxu0 %v5594_v42 }
  0x89   :  { %3931 = vmatprep.subr.bf16.mxu1 %v5597_v46 }
  0x8b   :  { %3901 = vmatpush1.bf16.msra.mxu0 %v5603_v50 }
  0x8c   :  { %3933 = vmatpush1.bf16.msra.mxu1 %v5607_v51  ;;  %3935 = vmatprep.subr.bf16.mxu0 %v5507_v5 }
  0x8d   :  { %3967 = vmatprep.subr.bf16.mxu1 %v5509_v9 }
  0xdc   :  { %v100_v6 = vpop.permute.xlu0 %99 }
  0xdd   :  { %v158_v11 = vmul.f32 %v5661_v62, %v100_v6  ;;  %v159_v13 = vmul.f32 %v5664_v63, %v100_v6  ;;  %v161_v30 = vmul.f32 %v5680_v16, %v100_v6  ;;  %v160_v55 = vmul.f32 %v5691_v33, %v100_v6 }
  0xdf   :  { %v212_v24 = vadd.f32 %v5673_v12, %v158_v11  ;;  %v213_v25 = vadd.f32 %v5677_v15, %v159_v13  ;;  %v215_v49 = vadd.f32 %v5688_v31, %v161_v30  ;;  %v214_v60 = vadd.f32 %v5696_v56, %v160_v55 }
 0x141   :  { %v413_v26 = vpop.f32.mrb[0].mxu0 }
 0x142   :  { %v489_v34 = vadd.f32 %v413_v26, %v212_v24  ;;  %v484_v35 = vpop.f32.mrb[0].mxu1  ;;  %v415_v37 = vpop.f32.mrb[1].mxu0 }
 0x143   :  { %v490_v43 = vadd.f32 %v415_v37, %v213_v25  ;;  %v486_v44 = vpop.f32.mrb[1].mxu1  ;;  %v491_v13 = vadd.f32 %v484_v35, %v214_v60  ;;  %v91_v60 = vld [vmem:[%s6484_s0 + $0x18] sm:$0xff] }
 0x144   :  { %v3705_v47 = vmul.f32 -1.442695, %v489_v34  ;;  %v492_v57 = vadd.f32 %v486_v44, %v215_v49 }
 0x145   :  { %v3706_v48 = vmul.f32 -1.442695, %v490_v43 }
 0x146   :  { %4997 = vpow2.f32 %v3705_v47  ;;  %v3707_v11 = vmul.f32 -1.442695, %v492_v57  ;;  %v90_v57 = vld [vmem:[%s6484_s0 + $0x10] sm:$0xff] }
 0x147   :  { %4999 = vpow2.f32 %v3706_v48  ;;  %109 = vperm.xlu1 %4996, %v90_v57  }
 0x148   :  { %5001 = vpow2.f32 %v3707_v11  ;;  %v93_v11 = vld [vmem:[%s6484_s0 + $0x28] sm:$0xff] }
 0x149   :  { %5003 = vtanh.f32 %v491_v13  ;;  %v95_v13 = vld [vmem:[%s6484_s0 + $0x38] sm:$0xff] }
 0x14b   :  { %114 = vperm.xlu1 %4996, %v91_v60  }
 0x14f   :  { %124 = vperm.xlu1 %4996, %v93_v11  }
 0x150   :  { %v4998_v24 = vpop.eup %4997 }
 0x151   :  { %v5000_v26 = vpop.eup %4999  ;;  %v496_v25 = vadd.f32 1.0, %v4998_v24  ;;  %v105_v24 = vpop.permute.xlu0 %104 }
 0x152   :  { %v502_v34 = vadd.f32 1.0, %v5000_v26  ;;  %v5002_v30 = vpop.eup %5001  ;;  %v162_v26 = vmul.f32 %v5661_v62, %v105_v24  ;;  %v164_v11 = vmul.f32 %v5691_v33, %v105_v24 }
 0x153   :  { %5005 = vrcp.f32 %v496_v25  ;;  %v5004_v37 = vpop.eup %5003  ;;  %v509_v47 = vadd.f32 1.0, %v5002_v30  ;;  %134 = vperm.xlu1 %4996, %v95_v13   ;;  %v163_v25 = vmul.f32 %v5664_v63, %v105_v24 }
 0x154   :  { %5007 = vrcp.f32 %v502_v34  ;;  %v216_v34 = vadd.f32 %v5673_v12, %v162_v26  ;;  %v218_v26 = vadd.f32 %v5696_v56, %v164_v11 }
 0x155   :  { %5009 = vrcp.f32 %v509_v47 }
 0x15d   :  { %v5006_v6 = vpop.eup %5005 }
 0x15e   :  { %v5008_v43 = vpop.eup %5007  ;;  %v513_v4 = vmul.f32 %v5006_v6, %v5004_v37  ;;  %v217_v6 = vadd.f32 %v5677_v15, %v163_v25 }
 0x15f   :  { %v512_v48 = vmul.f32 0.0, %v5008_v43  ;;  %v5010_v35 = vpop.eup %5009 }
 0x161   :  { %v5699_v44 = vadd.f32 %v513_v4, %v512_v48 }
 0x163   :  { %5011 = vtanh.f32 %v5699_v44 }
 0x16d   :  { %v5012_v49 = vpop.eup %5011 }
 0x16e   :  { %v5702_v55 = vmul.f32 %v5012_v49, %v5010_v35  ;;  %v165_v35 = vmul.f32 %v5680_v16, %v105_v24 }
 0x170   :  { %590 = vmatmul.mubr.f32.vlgmr.msra.gmra.mrb[2].mxu0 %v5702_v55  ;;  %661 = vmatmul.mubr.f32.vlgmr.msra.gmra.mrb[2].mxu1 %v5702_v55  ;;  %v219_v60 = vadd.f32 %v5688_v31, %v165_v35 }
 0x171   :  { %3937 = vmatpush1.bf16.msra.mxu0 %v5511_v10  ;;  %3969 = vmatpush1.bf16.msra.mxu1 %v5514_v14 }
 0x172   :  { %3939 = vmatprep.subr.bf16.mxu0 %v5518_v18  ;;  %3971 = vmatprep.subr.bf16.mxu1 %v5520_v19 }
 0x173   :  { %768 = vmatprep.mubr.f32.mxu0 %v6494_v0  ;;  %839 = vmatprep.mubr.f32.mxu1 %v6494_v0 }
 0x175   :  { %3941 = vmatpush1.bf16.msra.mxu0 %v5523_v23  ;;  %3973 = vmatpush1.bf16.msra.mxu1 %v5527_v27 }
 0x176   :  { %3943 = vmatprep.subr.bf16.mxu0 %v5529_v28  ;;  %3975 = vmatprep.subr.bf16.mxu1 %v5531_v32 }
 0x179   :  { %3945 = vmatpush1.bf16.msra.mxu0 %v5534_v36  ;;  %3977 = vmatpush1.bf16.msra.mxu1 %v5538_v40 }
 0x17a   :  { %3947 = vmatprep.subr.bf16.mxu0 %v5540_v41  ;;  %3979 = vmatprep.subr.bf16.mxu1 %v5543_v45 }
 0x17d   :  { %3949 = vmatpush1.bf16.msra.mxu0 %v5546_v52  ;;  %3981 = vmatpush1.bf16.msra.mxu1 %v5550_v53 }
 0x17e   :  { %3951 = vmatprep.subr.bf16.mxu0 %v5552_v54  ;;  %3983 = vmatprep.subr.bf16.mxu1 %v5555_v58 }
 0x181   :  { %3953 = vmatpush1.bf16.msra.mxu0 %v5558_v1  ;;  %3985 = vmatpush1.bf16.msra.mxu1 %v5562_v2 }
 0x182   :  { %3955 = vmatprep.subr.bf16.mxu0 %v5564_v3  ;;  %3987 = vmatprep.subr.bf16.mxu1 %v5567_v8 }
 0x185   :  { %3957 = vmatpush1.bf16.msra.mxu0 %v5570_v17  ;;  %3989 = vmatpush1.bf16.msra.mxu1 %v5574_v21 }
 0x186   :  { %3959 = vmatprep.subr.bf16.mxu0 %v5576_v22  ;;  %3991 = vmatprep.subr.bf16.mxu1 %v5582_v29 }
 0x189   :  { %3961 = vmatpush1.bf16.msra.mxu0 %v5588_v38  ;;  %3993 = vmatpush1.bf16.msra.mxu1 %v5592_v39 }
 0x18a   :  { %3963 = vmatprep.subr.bf16.mxu0 %v5594_v42  ;;  %3995 = vmatprep.subr.bf16.mxu1 %v5597_v46 }
 0x18d   :  { %3965 = vmatpush1.bf16.msra.mxu0 %v5603_v50  ;;  %3997 = vmatpush1.bf16.msra.mxu1 %v5607_v51 }
 0x18e   :  { %3999 = vmatprep.subr.bf16.mxu0 %v5507_v5  ;;  %4031 = vmatprep.subr.bf16.mxu1 %v5509_v9 }
 0x243   :  { %v591_v30 = vpop.f32.mrb[2].mxu0  ;;  %v662_v37 = vpop.f32.mrb[2].mxu1 }
 0x244   :  { %v667_v43 = vadd.f32 %v591_v30, %v216_v34  ;;  %v593_v4 = vpop.f32.mrb[3].mxu0  ;;  %v664_v47 = vpop.f32.mrb[3].mxu1  ;;  %v669_v20 = vadd.f32 %v662_v37, %v218_v26 }
 0x245   :  { %v668_v48 = vadd.f32 %v593_v4, %v217_v6  ;;  %v670_v13 = vadd.f32 %v664_v47, %v219_v60 }
 0x246   :  { %v3708_v49 = vmul.f32 -1.442695, %v667_v43 }
 0x247   :  { %v3709_v57 = vmul.f32 -1.442695, %v668_v48  ;;  %v3710_v0 = vmul.f32 -1.442695, %v670_v13 }
 0x248   :  { %5013 = vpow2.f32 %v3708_v49 }
 0x249   :  { %5015 = vpow2.f32 %v3709_v57 }
 0x24a   :  { %5017 = vpow2.f32 %v3710_v0 }
 0x24b   :  { %5019 = vtanh.f32 %v669_v20  ;;  %v6507_v20 = vmov 0.0  }
 0x252   :  { %v5014_v25 = vpop.eup %5013 }
 0x253   :  { %v5016_v34 = vpop.eup %5015  ;;  %v674_v30 = vadd.f32 1.0, %v5014_v25 }
 0x254   :  { %v680_v6 = vadd.f32 1.0, %v5016_v34  ;;  %v5018_v43 = vpop.eup %5017 }
 0x255   :  { %5021 = vrcp.f32 %v674_v30  ;;  %v5020_v4 = vpop.eup %5019  ;;  %v687_v57 = vadd.f32 1.0, %v5018_v43 }
 0x256   :  { %5023 = vrcp.f32 %v680_v6 }
 0x257   :  { %5025 = vrcp.f32 %v687_v57 }
 0x25f   :  { %v5022_v48 = vpop.eup %5021 }
 0x260   :  { %v5024_v49 = vpop.eup %5023  ;;  %v691_v35 = vmul.f32 %v5022_v48, %v5020_v4 }
 0x261   :  { %v690_v24 = vmul.f32 %v5024_v49, %v5699_v44  ;;  %v5026_v37 = vpop.eup %5025  ;;  %v110_v44 = vpop.permute.xlu1 %109 }
 0x262   :  { %v166_v11 = vmul.f32 %v5661_v62, %v110_v44  ;;  %v167_v13 = vmul.f32 %v5664_v63, %v110_v44  ;;  %v169_v6 = vmul.f32 %v5680_v16, %v110_v44 }
 0x263   :  { %v5761_v47 = vadd.f32 %v691_v35, %v690_v24 }
 0x264   :  { %v220_v26 = vadd.f32 %v5673_v12, %v166_v11  ;;  %v221_v25 = vadd.f32 %v5677_v15, %v167_v13  ;;  %v223_v24 = vadd.f32 %v5688_v31, %v169_v6 }
 0x265   :  { %5027 = vtanh.f32 %v5761_v47 }
 0x26f   :  { %v5028_v60 = vpop.eup %5027 }
 0x270   :  { %v5764_v0 = vmul.f32 %v5028_v60, %v5026_v37  ;;  %v168_v37 = vmul.f32 %v5691_v33, %v110_v44 }
 0x272   :  { %6506 = vst [vmem:[#allocation21_spill] sm:$0xff] %v5764_v0  ;;  %769 = vmatmul.mubr.f32.vlgmr.msra.gmra.mrb[4].mxu0 %v5764_v0  ;;  %840 = vmatmul.mubr.f32.vlgmr.msra.gmra.mrb[4].mxu1 %v5764_v0  ;;  %v222_v11 = vadd.f32 %v5696_v56, %v168_v37 }
 0x273   :  { %4001 = vmatpush1.bf16.msra.mxu0 %v5511_v10  ;;  %4033 = vmatpush1.bf16.msra.mxu1 %v5514_v14 }
 0x274   :  { %4003 = vmatprep.subr.bf16.mxu0 %v5518_v18  ;;  %4035 = vmatprep.subr.bf16.mxu1 %v5520_v19 }
 0x275   :  { %947 = vmatprep.mubr.f32.mxu0 %v6507_v20  ;;  %1018 = vmatprep.mubr.f32.mxu1 %v6507_v20 }
 0x277   :  { %4005 = vmatpush1.bf16.msra.mxu0 %v5523_v23  ;;  %4037 = vmatpush1.bf16.msra.mxu1 %v5527_v27 }
 0x278   :  { %4007 = vmatprep.subr.bf16.mxu0 %v5529_v28  ;;  %4039 = vmatprep.subr.bf16.mxu1 %v5531_v32 }
 0x27b   :  { %4009 = vmatpush1.bf16.msra.mxu0 %v5534_v36  ;;  %4041 = vmatpush1.bf16.msra.mxu1 %v5538_v40 }
 0x27c   :  { %4011 = vmatprep.subr.bf16.mxu0 %v5540_v41  ;;  %4043 = vmatprep.subr.bf16.mxu1 %v5543_v45 }
 0x27f   :  { %4013 = vmatpush1.bf16.msra.mxu0 %v5546_v52  ;;  %4045 = vmatpush1.bf16.msra.mxu1 %v5550_v53 }
 0x280   :  { %4015 = vmatprep.subr.bf16.mxu0 %v5552_v54  ;;  %4047 = vmatprep.subr.bf16.mxu1 %v5555_v58 }
 0x283   :  { %4017 = vmatpush1.bf16.msra.mxu0 %v5558_v1  ;;  %4049 = vmatpush1.bf16.msra.mxu1 %v5562_v2 }
 0x284   :  { %4019 = vmatprep.subr.bf16.mxu0 %v5564_v3  ;;  %4051 = vmatprep.subr.bf16.mxu1 %v5567_v8 }
 0x287   :  { %4021 = vmatpush1.bf16.msra.mxu0 %v5570_v17  ;;  %4053 = vmatpush1.bf16.msra.mxu1 %v5574_v21 }
 0x288   :  { %4023 = vmatprep.subr.bf16.mxu0 %v5576_v22  ;;  %4055 = vmatprep.subr.bf16.mxu1 %v5582_v29 }
 0x28b   :  { %4025 = vmatpush1.bf16.msra.mxu0 %v5588_v38  ;;  %4057 = vmatpush1.bf16.msra.mxu1 %v5592_v39 }
 0x28c   :  { %4027 = vmatprep.subr.bf16.mxu0 %v5594_v42  ;;  %4059 = vmatprep.subr.bf16.mxu1 %v5597_v46 }
 0x28f   :  { %4029 = vmatpush1.bf16.msra.mxu0 %v5603_v50  ;;  %4061 = vmatpush1.bf16.msra.mxu1 %v5607_v51 }
 0x290   :  { %4063 = vmatprep.subr.bf16.mxu0 %v5507_v5  ;;  %4095 = vmatprep.subr.bf16.mxu1 %v5509_v9 }
 0x345   :  { %v770_v34 = vpop.f32.mrb[4].mxu0  ;;  %v841_v30 = vpop.f32.mrb[4].mxu1 }
 0x346   :  { %v846_v43 = vadd.f32 %v770_v34, %v220_v26  ;;  %v772_v4 = vpop.f32.mrb[5].mxu0  ;;  %v843_v48 = vpop.f32.mrb[5].mxu1  ;;  %v848_v7 = vadd.f32 %v841_v30, %v222_v11 }
 0x347   :  { %v847_v49 = vadd.f32 %v772_v4, %v221_v25  ;;  %v849_v60 = vadd.f32 %v843_v48, %v223_v24 }
 0x348   :  { %v3711_v35 = vmul.f32 -1.442695, %v846_v43 }
 0x349   :  { %v3712_v57 = vmul.f32 -1.442695, %v847_v49  ;;  %v3713_v13 = vmul.f32 -1.442695, %v849_v60 }
 0x34a   :  { %5029 = vpow2.f32 %v3711_v35 }
 0x34b   :  { %5031 = vpow2.f32 %v3712_v57 }
 0x34c   :  { %5033 = vpow2.f32 %v3713_v13 }
 0x34d   :  { %5035 = vtanh.f32 %v848_v7 }
 0x354   :  { %v5030_v61 = vpop.eup %5029 }
 0x355   :  { %v5032_v59 = vpop.eup %5031  ;;  %v853_v0 = vadd.f32 1.0, %v5030_v61 }
 0x356   :  { %v859_v26 = vadd.f32 1.0, %v5032_v59  ;;  %v5034_v25 = vpop.eup %5033  ;;  %v115_v59 = vpop.permute.xlu1 %114 }
 0x357   :  { %5037 = vrcp.f32 %v853_v0  ;;  %v5036_v34 = vpop.eup %5035  ;;  %v866_v44 = vadd.f32 1.0, %v5034_v25  ;;  %v170_v7 = vmul.f32 %v5661_v62, %v115_v59  ;;  %v173_v25 = vmul.f32 %v5680_v16, %v115_v59 }
 0x358   :  { %5039 = vrcp.f32 %v859_v26 }
 0x359   :  { %5041 = vrcp.f32 %v866_v44  ;;  %v224_v0 = vadd.f32 %v5673_v12, %v170_v7 }
 0x361   :  { %v5038_v6 = vpop.eup %5037 }
 0x362   :  { %v5040_v43 = vpop.eup %5039  ;;  %v870_v4 = vmul.f32 %v5038_v6, %v5036_v34 }
 0x363   :  { %v869_v48 = vmul.f32 %v5040_v43, %v5761_v47  ;;  %v5042_v30 = vpop.eup %5041  ;;  %v171_v47 = vmul.f32 %v5664_v63, %v115_v59  ;;  %v227_v43 = vadd.f32 %v5688_v31, %v173_v25 }
 0x365   :  { %v5811_v49 = vadd.f32 %v870_v4, %v869_v48  ;;  %v225_v37 = vadd.f32 %v5677_v15, %v171_v47  ;;  %v172_v4 = vmul.f32 %v5691_v33, %v115_v59 }
 0x367   :  { %5043 = vtanh.f32 %v5811_v49  ;;  %v226_v48 = vadd.f32 %v5696_v56, %v172_v4 }
 0x371   :  { %v5044_v61 = vpop.eup %5043 }
 0x372   :  { %v5814_v35 = vmul.f32 %v5044_v61, %v5042_v30 }
 0x374   :  { %948 = vmatmul.mubr.f32.vlgmr.msra.gmra.mrb[6].mxu0 %v5814_v35  ;;  %1019 = vmatmul.mubr.f32.vlgmr.msra.gmra.mrb[6].mxu1 %v5814_v35 }
 0x375   :  { %4065 = vmatpush1.bf16.msra.mxu0 %v5511_v10  ;;  %4097 = vmatpush1.bf16.msra.mxu1 %v5514_v14 }
 0x376   :  { %4067 = vmatprep.subr.bf16.mxu0 %v5518_v18  ;;  %4099 = vmatprep.subr.bf16.mxu1 %v5520_v19 }
 0x377   :  { %1126 = vmatprep.mubr.f32.mxu0 %v6507_v20  ;;  %1197 = vmatprep.mubr.f32.mxu1 %v6507_v20 }
 0x379   :  { %4069 = vmatpush1.bf16.msra.mxu0 %v5523_v23  ;;  %4101 = vmatpush1.bf16.msra.mxu1 %v5527_v27 }
 0x37a   :  { %4071 = vmatprep.subr.bf16.mxu0 %v5529_v28  ;;  %4103 = vmatprep.subr.bf16.mxu1 %v5531_v32 }
 0x37d   :  { %4073 = vmatpush1.bf16.msra.mxu0 %v5534_v36  ;;  %4105 = vmatpush1.bf16.msra.mxu1 %v5538_v40 }
 0x37e   :  { %4075 = vmatprep.subr.bf16.mxu0 %v5540_v41  ;;  %4107 = vmatprep.subr.bf16.mxu1 %v5543_v45 }
 0x381   :  { %4077 = vmatpush1.bf16.msra.mxu0 %v5546_v52  ;;  %4109 = vmatpush1.bf16.msra.mxu1 %v5550_v53 }
 0x382   :  { %4079 = vmatprep.subr.bf16.mxu0 %v5552_v54  ;;  %4111 = vmatprep.subr.bf16.mxu1 %v5555_v58 }
 0x385   :  { %4081 = vmatpush1.bf16.msra.mxu0 %v5558_v1  ;;  %4113 = vmatpush1.bf16.msra.mxu1 %v5562_v2 }
 0x386   :  { %4083 = vmatprep.subr.bf16.mxu0 %v5564_v3  ;;  %4115 = vmatprep.subr.bf16.mxu1 %v5567_v8 }
 0x389   :  { %4085 = vmatpush1.bf16.msra.mxu0 %v5570_v17  ;;  %4117 = vmatpush1.bf16.msra.mxu1 %v5574_v21 }
 0x38a   :  { %4087 = vmatprep.subr.bf16.mxu0 %v5576_v22  ;;  %4119 = vmatprep.subr.bf16.mxu1 %v5582_v29 }
 0x38d   :  { %4089 = vmatpush1.bf16.msra.mxu0 %v5588_v38  ;;  %4121 = vmatpush1.bf16.msra.mxu1 %v5592_v39 }
 0x38e   :  { %4091 = vmatprep.subr.bf16.mxu0 %v5594_v42  ;;  %4123 = vmatprep.subr.bf16.mxu1 %v5597_v46 }
 0x391   :  { %4093 = vmatpush1.bf16.msra.mxu0 %v5603_v50  ;;  %4125 = vmatpush1.bf16.msra.mxu1 %v5607_v51 }
 0x392   :  { %4127 = vmatprep.subr.bf16.mxu0 %v5507_v5  ;;  %4159 = vmatprep.subr.bf16.mxu1 %v5509_v9 }
 0x447   :  { %v949_v57 = vpop.f32.mrb[6].mxu0  ;;  %v1020_v24 = vpop.f32.mrb[6].mxu1 }
 0x448   :  { %v1025_v60 = vadd.f32 %v949_v57, %v224_v0  ;;  %v951_v11 = vpop.f32.mrb[7].mxu0  ;;  %v1022_v13 = vpop.f32.mrb[7].mxu1  ;;  %v1027_v61 = vadd.f32 %v1020_v24, %v226_v48 }
 0x449   :  { %v1026_v26 = vadd.f32 %v951_v11, %v225_v37  ;;  %v1028_v44 = vadd.f32 %v1022_v13, %v227_v43 }
 0x44a   :  { %v3714_v34 = vmul.f32 -1.442695, %v1025_v60 }
 0x44b   :  { %v3715_v6 = vmul.f32 -1.442695, %v1026_v26  ;;  %v3716_v30 = vmul.f32 -1.442695, %v1028_v44 }
 0x44c   :  { %5045 = vpow2.f32 %v3714_v34 }
 0x44d   :  { %5047 = vpow2.f32 %v3715_v6 }
 0x44e   :  { %5049 = vpow2.f32 %v3716_v30 }
 0x44f   :  { %5051 = vtanh.f32 %v1027_v61 }
 0x456   :  { %v5046_v7 = vpop.eup %5045 }
 0x457   :  { %v5048_v47 = vpop.eup %5047  ;;  %v1032_v0 = vadd.f32 1.0, %v5046_v7 }
 0x458   :  { %v1038_v57 = vadd.f32 1.0, %v5048_v47  ;;  %v5050_v37 = vpop.eup %5049 }
 0x459   :  { %5053 = vrcp.f32 %v1032_v0  ;;  %v5052_v60 = vpop.eup %5051  ;;  %v1045_v34 = vadd.f32 1.0, %v5050_v37 }
 0x45a   :  { %5055 = vrcp.f32 %v1038_v57 }
 0x45b   :  { %5057 = vrcp.f32 %v1045_v34 }
 0x463   :  { %v5054_v11 = vpop.eup %5053 }
 0x464   :  { %v5056_v26 = vpop.eup %5055  ;;  %v1049_v25 = vmul.f32 %v5054_v11, %v5052_v60 }
 0x465   :  { %v1048_v59 = vmul.f32 %v5056_v26, %v5811_v49  ;;  %v5058_v24 = vpop.eup %5057  ;;  %v120_v49 = vpop.permute.xlu0 %119 }
 0x466   :  { %v174_v4 = vmul.f32 %v5661_v62, %v120_v49  ;;  %v175_v44 = vmul.f32 %v5664_v63, %v120_v49  ;;  %v177_v60 = vmul.f32 %v5680_v16, %v120_v49  ;;  %v176_v34 = vmul.f32 %v5691_v33, %v120_v49 }
 0x467   :  { %v5861_v13 = vadd.f32 %v1049_v25, %v1048_v59 }
 0x468   :  { %v228_v48 = vadd.f32 %v5673_v12, %v174_v4  ;;  %v229_v7 = vadd.f32 %v5677_v15, %v175_v44  ;;  %v231_v25 = vadd.f32 %v5688_v31, %v177_v60 }
 0x469   :  { %5059 = vtanh.f32 %v5861_v13 }
 0x473   :  { %v5060_v6 = vpop.eup %5059 }
 0x474   :  { %v5864_v43 = vmul.f32 %v5060_v6, %v5058_v24  ;;  %v230_v24 = vadd.f32 %v5696_v56, %v176_v34 }
 0x476   :  { %1127 = vmatmul.mubr.f32.vlgmr.msra.gmra.mrb[8].mxu0 %v5864_v43  ;;  %1198 = vmatmul.mubr.f32.vlgmr.msra.gmra.mrb[8].mxu1 %v5864_v43 }
 0x477   :  { %4129 = vmatpush1.bf16.msra.mxu0 %v5511_v10  ;;  %4161 = vmatpush1.bf16.msra.mxu1 %v5514_v14 }
 0x478   :  { %4131 = vmatprep.subr.bf16.mxu0 %v5518_v18  ;;  %4163 = vmatprep.subr.bf16.mxu1 %v5520_v19 }
 0x479   :  { %1305 = vmatprep.mubr.f32.mxu0 %v6507_v20  ;;  %1376 = vmatprep.mubr.f32.mxu1 %v6507_v20 }
 0x47b   :  { %4133 = vmatpush1.bf16.msra.mxu0 %v5523_v23  ;;  %4165 = vmatpush1.bf16.msra.mxu1 %v5527_v27 }
 0x47c   :  { %4135 = vmatprep.subr.bf16.mxu0 %v5529_v28  ;;  %4167 = vmatprep.subr.bf16.mxu1 %v5531_v32 }
 0x47f   :  { %4137 = vmatpush1.bf16.msra.mxu0 %v5534_v36  ;;  %4169 = vmatpush1.bf16.msra.mxu1 %v5538_v40 }
 0x480   :  { %4139 = vmatprep.subr.bf16.mxu0 %v5540_v41  ;;  %4171 = vmatprep.subr.bf16.mxu1 %v5543_v45 }
 0x483   :  { %4141 = vmatpush1.bf16.msra.mxu0 %v5546_v52  ;;  %4173 = vmatpush1.bf16.msra.mxu1 %v5550_v53 }
 0x484   :  { %4143 = vmatprep.subr.bf16.mxu0 %v5552_v54  ;;  %4175 = vmatprep.subr.bf16.mxu1 %v5555_v58 }
 0x487   :  { %4145 = vmatpush1.bf16.msra.mxu0 %v5558_v1  ;;  %4177 = vmatpush1.bf16.msra.mxu1 %v5562_v2 }
 0x488   :  { %4147 = vmatprep.subr.bf16.mxu0 %v5564_v3  ;;  %4179 = vmatprep.subr.bf16.mxu1 %v5567_v8 }
 0x48b   :  { %4149 = vmatpush1.bf16.msra.mxu0 %v5570_v17  ;;  %4181 = vmatpush1.bf16.msra.mxu1 %v5574_v21 }
 0x48c   :  { %4151 = vmatprep.subr.bf16.mxu0 %v5576_v22  ;;  %4183 = vmatprep.subr.bf16.mxu1 %v5582_v29 }
 0x48f   :  { %4153 = vmatpush1.bf16.msra.mxu0 %v5588_v38  ;;  %4185 = vmatpush1.bf16.msra.mxu1 %v5592_v39 }
 0x490   :  { %4155 = vmatprep.subr.bf16.mxu0 %v5594_v42  ;;  %4187 = vmatprep.subr.bf16.mxu1 %v5597_v46 }
 0x493   :  { %4157 = vmatpush1.bf16.msra.mxu0 %v5603_v50  ;;  %4189 = vmatpush1.bf16.msra.mxu1 %v5607_v51 }
 0x494   :  { %4191 = vmatprep.subr.bf16.mxu0 %v5507_v5  ;;  %4223 = vmatprep.subr.bf16.mxu1 %v5509_v9 }
 0x549   :  { %v1128_v30 = vpop.f32.mrb[8].mxu0  ;;  %v1199_v61 = vpop.f32.mrb[8].mxu1 }
 0x54a   :  { %v1204_v47 = vadd.f32 %v1128_v30, %v228_v48  ;;  %v1130_v0 = vpop.f32.mrb[9].mxu0  ;;  %v1201_v57 = vpop.f32.mrb[9].mxu1  ;;  %v1206_v4 = vadd.f32 %v1199_v61, %v230_v24 }
 0x54b   :  { %v1205_v37 = vadd.f32 %v1130_v0, %v229_v7  ;;  %v1207_v59 = vadd.f32 %v1201_v57, %v231_v25 }
 0x54c   :  { %v3717_v11 = vmul.f32 -1.442695, %v1204_v47 }
 0x54d   :  { %v3718_v26 = vmul.f32 -1.442695, %v1205_v37  ;;  %v3719_v6 = vmul.f32 -1.442695, %v1207_v59 }
 0x54e   :  { %5061 = vpow2.f32 %v3717_v11 }
 0x54f   :  { %5063 = vpow2.f32 %v3718_v26 }
 0x550   :  { %5065 = vpow2.f32 %v3719_v6 }
 0x551   :  { %5067 = vtanh.f32 %v1206_v4 }
 0x558   :  { %v5062_v44 = vpop.eup %5061 }
 0x559   :  { %v5064_v48 = vpop.eup %5063  ;;  %v1211_v30 = vadd.f32 1.0, %v5062_v44 }
 0x55a   :  { %v1217_v7 = vadd.f32 1.0, %v5064_v48  ;;  %v5066_v47 = vpop.eup %5065 }
 0x55b   :  { %5069 = vrcp.f32 %v1211_v30  ;;  %v5068_v0 = vpop.eup %5067  ;;  %v1224_v26 = vadd.f32 1.0, %v5066_v47 }
 0x55c   :  { %5071 = vrcp.f32 %v1217_v7 }
 0x55d   :  { %5073 = vrcp.f32 %v1224_v26 }
 0x565   :  { %v5070_v37 = vpop.eup %5069 }
 0x566   :  { %v5072_v11 = vpop.eup %5071  ;;  %v1228_v60 = vmul.f32 %v5070_v37, %v5068_v0 }
 0x567   :  { %v1227_v49 = vmul.f32 %v5072_v11, %v5861_v13  ;;  %v5074_v61 = vpop.eup %5073  ;;  %v125_v13 = vpop.permute.xlu1 %124 }
 0x568   :  { %v178_v59 = vmul.f32 %v5661_v62, %v125_v13  ;;  %v179_v24 = vmul.f32 %v5664_v63, %v125_v13  ;;  %v181_v37 = vmul.f32 %v5680_v16, %v125_v13 }
 0x569   :  { %v5911_v57 = vadd.f32 %v1228_v60, %v1227_v49  ;;  %v180_v60 = vmul.f32 %v5691_v33, %v125_v13 }
 0x56a   :  { %v232_v6 = vadd.f32 %v5673_v12, %v178_v59  ;;  %v233_v48 = vadd.f32 %v5677_v15, %v179_v24 }
 0x56b   :  { %5075 = vtanh.f32 %v5911_v57  ;;  %v234_v49 = vadd.f32 %v5696_v56, %v180_v60 }
 0x575   :  { %v5076_v25 = vpop.eup %5075 }
 0x576   :  { %v5914_v34 = vmul.f32 %v5076_v25, %v5074_v61 }
 0x578   :  { %1306 = vmatmul.mubr.f32.vlgmr.msra.gmra.mrb[10].mxu0 %v5914_v34  ;;  %1377 = vmatmul.mubr.f32.vlgmr.msra.gmra.mrb[10].mxu1 %v5914_v34 }
 0x579   :  { %4193 = vmatpush1.bf16.msra.mxu0 %v5511_v10  ;;  %4225 = vmatpush1.bf16.msra.mxu1 %v5514_v14 }
 0x57a   :  { %4195 = vmatprep.subr.bf16.mxu0 %v5518_v18  ;;  %4227 = vmatprep.subr.bf16.mxu1 %v5520_v19 }
 0x57b   :  { %1484 = vmatprep.mubr.f32.mxu0 %v6507_v20  ;;  %1555 = vmatprep.mubr.f32.mxu1 %v6507_v20 }
 0x57d   :  { %4197 = vmatpush1.bf16.msra.mxu0 %v5523_v23  ;;  %4229 = vmatpush1.bf16.msra.mxu1 %v5527_v27 }
 0x57e   :  { %4199 = vmatprep.subr.bf16.mxu0 %v5529_v28  ;;  %4231 = vmatprep.subr.bf16.mxu1 %v5531_v32 }
 0x581   :  { %4201 = vmatpush1.bf16.msra.mxu0 %v5534_v36  ;;  %4233 = vmatpush1.bf16.msra.mxu1 %v5538_v40 }
 0x582   :  { %4203 = vmatprep.subr.bf16.mxu0 %v5540_v41  ;;  %4235 = vmatprep.subr.bf16.mxu1 %v5543_v45 }
 0x585   :  { %4205 = vmatpush1.bf16.msra.mxu0 %v5546_v52  ;;  %4237 = vmatpush1.bf16.msra.mxu1 %v5550_v53 }
 0x586   :  { %4207 = vmatprep.subr.bf16.mxu0 %v5552_v54  ;;  %4239 = vmatprep.subr.bf16.mxu1 %v5555_v58 }
 0x589   :  { %4209 = vmatpush1.bf16.msra.mxu0 %v5558_v1  ;;  %4241 = vmatpush1.bf16.msra.mxu1 %v5562_v2 }
 0x58a   :  { %4211 = vmatprep.subr.bf16.mxu0 %v5564_v3  ;;  %4243 = vmatprep.subr.bf16.mxu1 %v5567_v8 }
 0x58d   :  { %4213 = vmatpush1.bf16.msra.mxu0 %v5570_v17  ;;  %4245 = vmatpush1.bf16.msra.mxu1 %v5574_v21 }
 0x58e   :  { %4215 = vmatprep.subr.bf16.mxu0 %v5576_v22  ;;  %4247 = vmatprep.subr.bf16.mxu1 %v5582_v29 }
 0x591   :  { %4217 = vmatpush1.bf16.msra.mxu0 %v5588_v38  ;;  %4249 = vmatpush1.bf16.msra.mxu1 %v5592_v39 }
 0x592   :  { %4219 = vmatprep.subr.bf16.mxu0 %v5594_v42  ;;  %4251 = vmatprep.subr.bf16.mxu1 %v5597_v46 }
 0x595   :  { %4221 = vmatpush1.bf16.msra.mxu0 %v5603_v50  ;;  %4253 = vmatpush1.bf16.msra.mxu1 %v5607_v51 }
 0x596   :  { %4255 = vmatprep.subr.bf16.mxu0 %v5507_v5  ;;  %4287 = vmatprep.subr.bf16.mxu1 %v5509_v9  ;;  %v235_v9 = vadd.f32 %v5688_v31, %v181_v37 }
 0x64b   :  { %v1307_v4 = vpop.f32.mrb[10].mxu0  ;;  %v1378_v44 = vpop.f32.mrb[10].mxu1 }
 0x64c   :  { %v1383_v30 = vadd.f32 %v1307_v4, %v232_v6  ;;  %v1309_v7 = vpop.f32.mrb[11].mxu0  ;;  %v1380_v47 = vpop.f32.mrb[11].mxu1  ;;  %v1385_v25 = vadd.f32 %v1378_v44, %v234_v49 }
 0x64d   :  { %v1384_v0 = vadd.f32 %v1309_v7, %v233_v48  ;;  %v1386_v26 = vadd.f32 %v1380_v47, %v235_v9 }
 0x64e   :  { %v3720_v5 = vmul.f32 -1.442695, %v1383_v30 }
 0x64f   :  { %v3721_v11 = vmul.f32 -1.442695, %v1384_v0  ;;  %v3722_v61 = vmul.f32 -1.442695, %v1386_v26 }
 0x650   :  { %5077 = vpow2.f32 %v3720_v5 }
 0x651   :  { %5079 = vpow2.f32 %v3721_v11 }
 0x652   :  { %5081 = vpow2.f32 %v3722_v61 }
 0x653   :  { %5083 = vtanh.f32 %v1385_v25 }
 0x65a   :  { %v5078_v59 = vpop.eup %5077 }
 0x65b   :  { %v5080_v24 = vpop.eup %5079  ;;  %v1390_v6 = vadd.f32 1.0, %v5078_v59 }
 0x65c   :  { %v1396_v4 = vadd.f32 1.0, %v5080_v24  ;;  %v5082_v48 = vpop.eup %5081 }
 0x65d   :  { %5085 = vrcp.f32 %v1390_v6  ;;  %v5084_v30 = vpop.eup %5083  ;;  %v1403_v5 = vadd.f32 1.0, %v5082_v48  ;;  %v1779_v6 = vld [vmem:[#allocation7] sm:$0xff]  ;;  %v1781_v48 = vld [vmem:[#allocation7 + $0x10] sm:$0xff] }
 0x65e   :  { %5087 = vrcp.f32 %v1396_v4  ;;  %v1783_v4 = vld [vmem:[#allocation7 + $0x20] sm:$0xff] }
 0x65f   :  { %5089 = vrcp.f32 %v1403_v5  ;;  %v1794_v5 = vld [vmem:[#allocation7 + $0x78] sm:$0xff] }
 0x667   :  { %v5086_v7 = vpop.eup %5085 }
 0x668   :  { %v5088_v0 = vpop.eup %5087  ;;  %v1407_v37 = vmul.f32 %v5086_v7, %v5084_v30  ;;  %v1785_v30 = vld [vmem:[#allocation7 + $0x30] sm:$0xff]  ;;  %v1788_v7 = vld [vmem:[#allocation7 + $0x48] sm:$0xff] }
 0x669   :  { %v1406_v13 = vmul.f32 %v5088_v0, %v5911_v57  ;;  %v5090_v44 = vpop.eup %5089  ;;  %v1792_v0 = vld [vmem:[#allocation7 + $0x68] sm:$0xff] }
 0x66b   :  { %v5961_v47 = vadd.f32 %v1407_v37, %v1406_v13  ;;  %v1790_v37 = vld [vmem:[#allocation7 + $0x58] sm:$0xff] }
 0x66d   :  { %5091 = vtanh.f32 %v5961_v47 }
 0x677   :  { %v5092_v11 = vpop.eup %5091 }
 0x678   :  { %v5964_v9 = vmul.f32 %v5092_v11, %v5090_v44  ;;  %v4320_v11 = vpack.c.bf16 %v1783_v4, %v1779_v6  ;;  %v1811_v6 = vld [vmem:[#allocation7 + $0x100] sm:$0xff] }
 0x679   :  { %v1815_v4 = vld [vmem:[#allocation7 + $0x120] sm:$0xff] }
 0x67a   :  { %1485 = vmatmul.mubr.f32.vlgmr.msra.gmra.mrb[12].mxu0 %v5964_v9  ;;  %1556 = vmatmul.mubr.f32.vlgmr.msra.gmra.mrb[12].mxu1 %v5964_v9 }
 0x67b   :  { %4257 = vmatpush1.bf16.msra.mxu0 %v5511_v10  ;;  %4289 = vmatpush1.bf16.msra.mxu1 %v5514_v14  ;;  %v1780_v10 = vld [vmem:[#allocation7 + $0x8] sm:$0xff] }
 0x67c   :  { %4259 = vmatprep.subr.bf16.mxu0 %v5518_v18  ;;  %4291 = vmatprep.subr.bf16.mxu1 %v5520_v19  ;;  %v1784_v14 = vld [vmem:[#allocation7 + $0x28] sm:$0xff]  ;;  %v1782_v18 = vld [vmem:[#allocation7 + $0x18] sm:$0xff] }
 0x67d   :  { %1663 = vmatprep.mubr.f32.mxu0 %v6507_v20  ;;  %1734 = vmatprep.mubr.f32.mxu1 %v6507_v20  ;;  %v4318_v19 = vpack.c.bf16 %v1784_v14, %v1780_v10  ;;  %v4352_v10 = vpack.c.bf16 %v1785_v30, %v1781_v48  ;;  %v1787_v14 = vld [vmem:[#allocation7 + $0x40] sm:$0xff] }
 0x67f   :  { %4261 = vmatpush1.bf16.msra.mxu0 %v5523_v23  ;;  %4293 = vmatpush1.bf16.msra.mxu1 %v5527_v27  ;;  %v1786_v23 = vld [vmem:[#allocation7 + $0x38] sm:$0xff] }
 0x680   :  { %4263 = vmatprep.subr.bf16.mxu0 %v5529_v28  ;;  %4295 = vmatprep.subr.bf16.mxu1 %v5531_v32  ;;  %v4350_v27 = vpack.c.bf16 %v1786_v23, %v1782_v18  ;;  %v130_v28 = vpop.permute.xlu0 %129  ;;  %v1791_v18 = vld [vmem:[#allocation7 + $0x60] sm:$0xff]  ;;  %v4354_v23 = vpack.c.bf16 %v1794_v5, %v1790_v37  ;;  %v1820_v37 = vld [vmem:[#allocation7 + $0x148] sm:$0xff] }
 0x681   :  { %v182_v32 = vmul.f32 %v5661_v62, %v130_v28  ;;  %v1824_v5 = vld [vmem:[#allocation7 + $0x168] sm:$0xff] }
 0x683   :  { %4265 = vmatpush1.bf16.msra.mxu0 %v5534_v36  ;;  %4297 = vmatpush1.bf16.msra.mxu1 %v5538_v40  ;;  %v183_v36 = vmul.f32 %v5664_v63, %v130_v28  ;;  %v236_v40 = vadd.f32 %v5673_v12, %v182_v32  ;;  %v1796_v32 = vld [vmem:[#allocation7 + $0x88] sm:$0xff] }
 0x684   :  { %4267 = vmatprep.subr.bf16.mxu0 %v5540_v41  ;;  %4299 = vmatprep.subr.bf16.mxu1 %v5543_v45 }
 0x687   :  { %4269 = vmatpush1.bf16.msra.mxu0 %v5546_v52  ;;  %4301 = vmatpush1.bf16.msra.mxu1 %v5550_v53  ;;  %v237_v52 = vadd.f32 %v5677_v15, %v183_v36  ;;  %v1800_v36 = vld [vmem:[#allocation7 + $0xa8] sm:$0xff] }
 0x688   :  { %4271 = vmatprep.subr.bf16.mxu0 %v5552_v54  ;;  %4303 = vmatprep.subr.bf16.mxu1 %v5555_v58 }
 0x68b   :  { %4273 = vmatpush1.bf16.msra.mxu0 %v5558_v1  ;;  %4305 = vmatpush1.bf16.msra.mxu1 %v5562_v2  ;;  %v185_v1 = vmul.f32 %v5680_v16, %v130_v28 }
 0x68c   :  { %4275 = vmatprep.subr.bf16.mxu0 %v5564_v3  ;;  %4307 = vmatprep.subr.bf16.mxu1 %v5567_v8 }
 0x68f   :  { %4277 = vmatpush1.bf16.msra.mxu0 %v5570_v17  ;;  %4309 = vmatpush1.bf16.msra.mxu1 %v5574_v21  ;;  %v239_v17 = vadd.f32 %v5688_v31, %v185_v1  ;;  %v184_v21 = vmul.f32 %v5691_v33, %v130_v28  ;;  %v1793_v28 = vld [vmem:[#allocation7 + $0x70] sm:$0xff] }
 0x690   :  { %4279 = vmatprep.subr.bf16.mxu0 %v5576_v22  ;;  %4311 = vmatprep.subr.bf16.mxu1 %v5582_v29 }
 0x691   :  { %v238_v29 = vadd.f32 %v5696_v56, %v184_v21  ;;  %v1806_v21 = vld [vmem:[#allocation7 + $0xd8] sm:$0xff] }
 0x693   :  { %4281 = vmatpush1.bf16.msra.mxu0 %v5588_v38  ;;  %4313 = vmatpush1.bf16.msra.mxu1 %v5592_v39 }
 0x694   :  { %4283 = vmatprep.subr.bf16.mxu0 %v5594_v42  ;;  %4315 = vmatprep.subr.bf16.mxu1 %v5597_v46 }
 0x697   :  { %4285 = vmatpush1.bf16.msra.mxu0 %v5603_v50  ;;  %4317 = vmatpush1.bf16.msra.mxu1 %v5607_v51 }
 0x698   :  { %4319 = vmatprep.subr.bf16.mxu0 %v4318_v19  ;;  %4351 = vmatprep.subr.bf16.mxu1 %v4350_v27  ;;  %v4322_v19 = vpack.c.bf16 %v1792_v0, %v1788_v7  ;;  %v1789_v27 = vld [vmem:[#allocation7 + $0x50] sm:$0xff] }
 0x699   :  { %v1813_v7 = vld [vmem:[#allocation7 + $0x110] sm:$0xff] }
 0x69a   :  { %v1817_v0 = vld [vmem:[#allocation7 + $0x130] sm:$0xff] }
 0x74d   :  { %v1486_v41 = vpop.f32.mrb[12].mxu0  ;;  %v1557_v45 = vpop.f32.mrb[12].mxu1 }
 0x74e   :  { %v1562_v53 = vadd.f32 %v1486_v41, %v236_v40  ;;  %v1488_v54 = vpop.f32.mrb[13].mxu0  ;;  %v1559_v58 = vpop.f32.mrb[13].mxu1  ;;  %v1564_v39 = vadd.f32 %v1557_v45, %v238_v29  ;;  %v1798_v40 = vld [vmem:[#allocation7 + $0x98] sm:$0xff]  ;;  %v4324_v45 = vpack.c.bf16 %v1791_v18, %v1787_v14  ;;  %v1819_v14 = vld [vmem:[#allocation7 + $0x140] sm:$0xff] }
 0x74f   :  { %v1563_v2 = vadd.f32 %v1488_v54, %v237_v52  ;;  %v1565_v22 = vadd.f32 %v1559_v58, %v239_v17  ;;  %v1802_v41 = vld [vmem:[#allocation7 + $0xb8] sm:$0xff]  ;;  %v4356_v52 = vpack.c.bf16 %v1793_v28, %v1789_v27  ;;  %v1799_v54 = vld [vmem:[#allocation7 + $0xa0] sm:$0xff]  ;;  %v4326_v58 = vpack.c.bf16 %v1800_v36, %v1796_v32  ;;  %v1808_v17 = vld [vmem:[#allocation7 + $0xe8] sm:$0xff] }
 0x750   :  { %v3723_v3 = vmul.f32 -1.442695, %v1562_v53  ;;  %v1795_v53 = vld [vmem:[#allocation7 + $0x80] sm:$0xff]  ;;  %v4358_v1 = vpack.c.bf16 %v1802_v41, %v1798_v40  ;;  %v1821_v27 = vld [vmem:[#allocation7 + $0x150] sm:$0xff]  ;;  %v1828_v32 = vld [vmem:[#allocation7 + $0x188] sm:$0xff] }
 0x751   :  { %v3724_v8 = vmul.f32 -1.442695, %v1563_v2  ;;  %v3725_v38 = vmul.f32 -1.442695, %v1565_v22  ;;  %v1797_v2 = vld [vmem:[#allocation7 + $0x90] sm:$0xff]  ;;  %v1810_v22 = vld [vmem:[#allocation7 + $0xf8] sm:$0xff]  ;;  %v4328_v29 = vpack.c.bf16 %v1799_v54, %v1795_v53 }
 0x752   :  { %5093 = vpow2.f32 %v3723_v3  ;;  %v1801_v3 = vld [vmem:[#allocation7 + $0xb0] sm:$0xff]  ;;  %v1823_v18 = vld [vmem:[#allocation7 + $0x160] sm:$0xff]  ;;  %v1832_v36 = vld [vmem:[#allocation7 + $0x1a8] sm:$0xff] }
 0x753   :  { %5095 = vpow2.f32 %v3724_v8  ;;  %v1804_v8 = vld [vmem:[#allocation7 + $0xc8] sm:$0xff]  ;;  %v1825_v28 = vld [vmem:[#allocation7 + $0x170] sm:$0xff]  ;;  %v1830_v40 = vld [vmem:[#allocation7 + $0x198] sm:$0xff] }
 0x754   :  { %5097 = vpow2.f32 %v3725_v38  ;;  %v4360_v38 = vpack.c.bf16 %v1801_v3, %v1797_v2  ;;  %v1834_v41 = vld [vmem:[#allocation7 + $0x1b8] sm:$0xff]  ;;  %v1827_v53 = vld [vmem:[#allocation7 + $0x180] sm:$0xff]  ;;  %v1829_v2 = vld [vmem:[#allocation7 + $0x190] sm:$0xff] }
 0x755   :  { %5099 = vtanh.f32 %v1564_v39  ;;  %v1803_v39 = vld [vmem:[#allocation7 + $0xc0] sm:$0xff]  ;;  %v1833_v3 = vld [vmem:[#allocation7 + $0x1b0] sm:$0xff] }
 0x756   :  { %v1831_v54 = vld [vmem:[#allocation7 + $0x1a0] sm:$0xff] }
 0x75c   :  { %v5094_v42 = vpop.eup %5093 }
 0x75d   :  { %v5096_v46 = vpop.eup %5095  ;;  %v1569_v50 = vadd.f32 1.0, %v5094_v42  ;;  %v1807_v42 = vld [vmem:[#allocation7 + $0xe0] sm:$0xff] }
 0x75e   :  { %v1575_v51 = vadd.f32 1.0, %v5096_v46  ;;  %v5098_v57 = vpop.eup %5097  ;;  %v4330_v46 = vpack.c.bf16 %v1808_v17, %v1804_v8  ;;  %v1836_v8 = vld [vmem:[#allocation7 + $0x1c8] sm:$0xff] }
 0x75f   :  { %5101 = vrcp.f32 %v1569_v50  ;;  %v5100_v60 = vpop.eup %5099  ;;  %v1582_v25 = vadd.f32 1.0, %v5098_v57  ;;  %v4362_v50 = vpack.c.bf16 %v1810_v22, %v1806_v21  ;;  %v1809_v57 = vld [vmem:[#allocation7 + $0xf0] sm:$0xff]  ;;  %v1840_v17 = vld [vmem:[#allocation7 + $0x1e8] sm:$0xff]  ;;  %v1838_v21 = vld [vmem:[#allocation7 + $0x1d8] sm:$0xff] }
 0x760   :  { %5103 = vrcp.f32 %v1575_v51  ;;  %v1805_v51 = vld [vmem:[#allocation7 + $0xd0] sm:$0xff]  ;;  %v1842_v22 = vld [vmem:[#allocation7 + $0x1f8] sm:$0xff] }
 0x761   :  { %5105 = vrcp.f32 %v1582_v25  ;;  %v4332_v25 = vpack.c.bf16 %v1807_v42, %v1803_v39  ;;  %v1835_v39 = vld [vmem:[#allocation7 + $0x1c0] sm:$0xff]  ;;  %v4346_v42 = vpack.c.bf16 %v1840_v17, %v1836_v8 }
 0x762   :  { %v2147_v17 = vld [vmem:[#allocation9 + $0xc0] sm:$0xff] }
 0x769   :  { %v5102_v26 = vpop.eup %5101 }
 0x76a   :  { %v5104_v49 = vpop.eup %5103  ;;  %v1586_v61 = vmul.f32 %v5102_v26, %v5100_v60  ;;  %v1812_v60 = vld [vmem:[#allocation7 + $0x108] sm:$0xff] }
 0x76b   :  { %v1585_v59 = vmul.f32 %v5104_v49, %v5961_v47  ;;  %v5106_v13 = vpop.eup %5105  ;;  %v1816_v26 = vld [vmem:[#allocation7 + $0x128] sm:$0xff]  ;;  %v1814_v49 = vld [vmem:[#allocation7 + $0x118] sm:$0xff] }
 0x76c   :  { %v4334_v48 = vpack.c.bf16 %v1816_v26, %v1812_v60 }
 0x76d   :  { %v6009_v24 = vadd.f32 %v1586_v61, %v1585_v59  ;;  %v1818_v61 = vld [vmem:[#allocation7 + $0x138] sm:$0xff]  ;;  %v4364_v59 = vpack.c.bf16 %v1809_v57, %v1805_v51  ;;  %v1837_v51 = vld [vmem:[#allocation7 + $0x1d0] sm:$0xff] }
 0x76e   :  { %v4366_v30 = vpack.c.bf16 %v1818_v61, %v1814_v49  ;;  %v1841_v57 = vld [vmem:[#allocation7 + $0x1f0] sm:$0xff]  ;;  %v6508_v49 = vld [vmem:[#allocation21_spill] sm:$0xff]  ;;  %v2123_v61 = vld [vmem:[#allocation9] sm:$0xff] }
 0x76f   :  { %5107 = vtanh.f32 %v6009_v24  ;;  %v4380_v26 = vpack.c.bf16 %v1841_v57, %v1837_v51  ;;  %v2160_v51 = vld [vmem:[#allocation9 + $0x128] sm:$0xff]  ;;  %v2155_v57 = vld [vmem:[#allocation9 + $0x100] sm:$0xff] }
 0x779   :  { %v5108_v44 = vpop.eup %5107 }
 0x77a   :  { %v6012_v47 = vmul.f32 %v5108_v44, %v5106_v13  ;;  %v1822_v13 = vld [vmem:[#allocation7 + $0x158] sm:$0xff] }
 0x77b   :  { %v1826_v44 = vld [vmem:[#allocation7 + $0x178] sm:$0xff] }
 0x77c   :  { %1664 = vmatmul.mubr.f32.vlgmr.msra.gmra.mrb[14].mxu0 %v6012_v47  ;;  %1735 = vmatmul.mubr.f32.vlgmr.msra.gmra.mrb[14].mxu1 %v6012_v47 }
 0x77d   :  { %4321 = vmatpush1.bf16.msra.mxu0 %v4320_v11  ;;  %4353 = vmatpush1.bf16.msra.mxu1 %v4352_v10  ;;  %v4336_v11 = vpack.c.bf16 %v1815_v4, %v1811_v6  ;;  %v4368_v10 = vpack.c.bf16 %v1817_v0, %v1813_v7  ;;  %v2125_v4 = vld [vmem:[#allocation9 + $0x10] sm:$0xff]  ;;  %v2136_v7 = vld [vmem:[#allocation9 + $0x68] sm:$0xff]  ;;  %v2134_v0 = vld [vmem:[#allocation9 + $0x58] sm:$0xff] }
 0x77e   :  { %4323 = vmatprep.subr.bf16.mxu0 %v4322_v19  ;;  %4355 = vmatprep.subr.bf16.mxu1 %v4354_v23  ;;  %v4338_v19 = vpack.c.bf16 %v1824_v5, %v1820_v37  ;;  %v4370_v23 = vpack.c.bf16 %v1826_v44, %v1822_v13  ;;  %v2131_v5 = vld [vmem:[#allocation9 + $0x40] sm:$0xff]  ;;  %v2138_v44 = vld [vmem:[#allocation9 + $0x78] sm:$0xff] }
 0x77f   :  { %1929 = vmatprep.mubr.f32.mxu0 %v6507_v20  ;;  %2042 = vmatprep.mubr.f32.mxu1 %v6507_v20  ;;  %v2135_v13 = vld [vmem:[#allocation9 + $0x60] sm:$0xff] }
 0x781   :  { %4325 = vmatpush1.bf16.msra.mxu0 %v4324_v45  ;;  %4357 = vmatpush1.bf16.msra.mxu1 %v4356_v52  ;;  %v4340_v45 = vpack.c.bf16 %v1823_v18, %v1819_v14  ;;  %v4372_v52 = vpack.c.bf16 %v1825_v28, %v1821_v27  ;;  %v2133_v14 = vld [vmem:[#allocation9 + $0x50] sm:$0xff]  ;;  %v2144_v27 = vld [vmem:[#allocation9 + $0xa8] sm:$0xff]  ;;  %v2142_v28 = vld [vmem:[#allocation9 + $0x98] sm:$0xff] }
 0x782   :  { %4327 = vmatprep.subr.bf16.mxu0 %v4326_v58  ;;  %4359 = vmatprep.subr.bf16.mxu1 %v4358_v1  ;;  %v4342_v58 = vpack.c.bf16 %v1832_v36, %v1828_v32  ;;  %v4374_v1 = vpack.c.bf16 %v1834_v41, %v1830_v40  ;;  %v2137_v18 = vld [vmem:[#allocation9 + $0x70] sm:$0xff]  ;;  %v2139_v36 = vld [vmem:[#allocation9 + $0x80] sm:$0xff]  ;;  %v2146_v41 = vld [vmem:[#allocation9 + $0xb8] sm:$0xff] }
 0x783   :  { %v2143_v40 = vld [vmem:[#allocation9 + $0xa0] sm:$0xff] }
 0x785   :  { %4329 = vmatpush1.bf16.msra.mxu0 %v4328_v29  ;;  %4361 = vmatpush1.bf16.msra.mxu1 %v4360_v38  ;;  %v4344_v29 = vpack.c.bf16 %v1831_v54, %v1827_v53  ;;  %v4376_v38 = vpack.c.bf16 %v1833_v3, %v1829_v2  ;;  %v2141_v53 = vld [vmem:[#allocation9 + $0x90] sm:$0xff]  ;;  %v2152_v2 = vld [vmem:[#allocation9 + $0xe8] sm:$0xff]  ;;  %v2150_v3 = vld [vmem:[#allocation9 + $0xd8] sm:$0xff] }
 0x786   :  { %4331 = vmatprep.subr.bf16.mxu0 %v4330_v46  ;;  %4363 = vmatprep.subr.bf16.mxu1 %v4362_v50  ;;  %v4378_v46 = vpack.c.bf16 %v1842_v22, %v1838_v21  ;;  %v1839_v50 = vld [vmem:[#allocation7 + $0x1e0] sm:$0xff]  ;;  %v2145_v54 = vld [vmem:[#allocation9 + $0xb0] sm:$0xff]  ;;  %v2154_v22 = vld [vmem:[#allocation9 + $0xf8] sm:$0xff] }
 0x787   :  { %v4348_v60 = vpack.c.bf16 %v1839_v50, %v1835_v39  ;;  %v2151_v21 = vld [vmem:[#allocation9 + $0xe0] sm:$0xff]  ;;  %v2149_v39 = vld [vmem:[#allocation9 + $0xd0] sm:$0xff] }
 0x789   :  { %4333 = vmatpush1.bf16.msra.mxu0 %v4332_v25  ;;  %4365 = vmatpush1.bf16.msra.mxu1 %v4364_v59  ;;  %v2127_v25 = vld [vmem:[#allocation9 + $0x20] sm:$0xff] }
 0x78a   :  { %4335 = vmatprep.subr.bf16.mxu0 %v4334_v48  ;;  %4367 = vmatprep.subr.bf16.mxu1 %v4366_v30  ;;  %v6048_v59 = vpack.c.bf16 %v2127_v25, %v2123_v61  ;;  %v2129_v48 = vld [vmem:[#allocation9 + $0x30] sm:$0xff]  ;;  %v2132_v30 = vld [vmem:[#allocation9 + $0x48] sm:$0xff] }
 0x78b   :  { %v6058_v37 = vpack.c.bf16 %v2136_v7, %v2132_v30  ;;  %v2161_v25 = vld [vmem:[#allocation9 + $0x130] sm:$0xff]  ;;  %v2163_v7 = vld [vmem:[#allocation9 + $0x140] sm:$0xff] }
 0x78d   :  { %4337 = vmatpush1.bf16.msra.mxu0 %v4336_v11  ;;  %4369 = vmatpush1.bf16.msra.mxu1 %v4368_v10  ;;  %v6060_v11 = vpack.c.bf16 %v2135_v13, %v2131_v5  ;;  %v6062_v10 = vpack.c.bf16 %v2138_v44, %v2134_v0  ;;  %v2167_v0 = vld [vmem:[#allocation9 + $0x160] sm:$0xff]  ;;  %v2166_v5 = vld [vmem:[#allocation9 + $0x158] sm:$0xff]  ;;  %v2165_v44 = vld [vmem:[#allocation9 + $0x150] sm:$0xff] }
 0x78e   :  { %4339 = vmatprep.subr.bf16.mxu0 %v4338_v19  ;;  %4371 = vmatprep.subr.bf16.mxu1 %v4370_v23  ;;  %v6065_v19 = vpack.c.bf16 %v2137_v18, %v2133_v14  ;;  %v2140_v23 = vld [vmem:[#allocation9 + $0x88] sm:$0xff]  ;;  %v2170_v13 = vld [vmem:[#allocation9 + $0x178] sm:$0xff]  ;;  %v2169_v14 = vld [vmem:[#allocation9 + $0x170] sm:$0xff]  ;;  %v6107_v18 = vpack.c.bf16 %v2167_v0, %v2163_v7  ;;  %v135_v7 = vpop.permute.xlu1 %134 }
 0x78f   :  { %v6070_v32 = vpack.c.bf16 %v2144_v27, %v2140_v23  ;;  %v6109_v23 = vpack.c.bf16 %v2170_v13, %v2166_v5  ;;  %v2172_v27 = vld [vmem:[#allocation9 + $0x188] sm:$0xff]  ;;  %v186_v0 = vmul.f32 %v5661_v62, %v135_v7  ;;  %v187_v5 = vmul.f32 %v5664_v63, %v135_v7 }
 0x790   :  { %v188_v63 = vmul.f32 %v5691_v33, %v135_v7 }
 0x791   :  { %4341 = vmatpush1.bf16.msra.mxu0 %v4340_v45  ;;  %4373 = vmatpush1.bf16.msra.mxu1 %v4372_v52  ;;  %v6072_v45 = vpack.c.bf16 %v2143_v40, %v2139_v36  ;;  %v6074_v52 = vpack.c.bf16 %v2146_v41, %v2142_v28  ;;  %v2176_v28 = vld [vmem:[#allocation9 + $0x1a8] sm:$0xff]  ;;  %v2171_v36 = vld [vmem:[#allocation9 + $0x180] sm:$0xff]  ;;  %v6113_v40 = vpack.c.bf16 %v2169_v14, %v2165_v44 }
 0x792   :  { %4343 = vmatprep.subr.bf16.mxu0 %v4342_v58  ;;  %4375 = vmatprep.subr.bf16.mxu1 %v4374_v1  ;;  %v6077_v58 = vpack.c.bf16 %v2145_v54, %v2141_v53  ;;  %v2148_v1 = vld [vmem:[#allocation9 + $0xc8] sm:$0xff]  ;;  %v6115_v41 = vpack.c.bf16 %v2176_v28, %v2172_v27  ;;  %v2175_v53 = vld [vmem:[#allocation9 + $0x1a0] sm:$0xff]  ;;  %v2174_v54 = vld [vmem:[#allocation9 + $0x198] sm:$0xff]  ;;  %v240_v13 = vadd.f32 %v5673_v12, %v186_v0 }
 0x793   :  { %v6082_v8 = vpack.c.bf16 %v2152_v2, %v2148_v1  ;;  %v2178_v1 = vld [vmem:[#allocation9 + $0x1b8] sm:$0xff]  ;;  %v241_v27 = vadd.f32 %v5677_v15, %v187_v5  ;;  %v242_v12 = vadd.f32 %v5696_v56, %v188_v63 }
 0x794   :  { %v6118_v2 = vpack.c.bf16 %v2178_v1, %v2174_v54  ;;  %v189_v54 = vmul.f32 %v5680_v16, %v135_v7 }
 0x795   :  { %4345 = vmatpush1.bf16.msra.mxu0 %v4344_v29  ;;  %4377 = vmatpush1.bf16.msra.mxu1 %v4376_v38  ;;  %v6084_v29 = vpack.c.bf16 %v2151_v21, %v2147_v17  ;;  %v6086_v38 = vpack.c.bf16 %v2154_v22, %v2150_v3  ;;  %v2173_v3 = vld [vmem:[#allocation9 + $0x190] sm:$0xff]  ;;  %v2180_v21 = vld [vmem:[#allocation9 + $0x1c8] sm:$0xff] }
 0x796   :  { %4347 = vmatprep.subr.bf16.mxu0 %v4346_v42  ;;  %4379 = vmatprep.subr.bf16.mxu1 %v4378_v46  ;;  %v2153_v42 = vld [vmem:[#allocation9 + $0xf0] sm:$0xff]  ;;  %v2156_v46 = vld [vmem:[#allocation9 + $0x108] sm:$0xff]  ;;  %v243_v62 = vadd.f32 %v5688_v31, %v189_v54 }
 0x797   :  { %v6089_v50 = vpack.c.bf16 %v2153_v42, %v2149_v39  ;;  %v2177_v17 = vld [vmem:[#allocation9 + $0x1b0] sm:$0xff]  ;;  %v2184_v22 = vld [vmem:[#allocation9 + $0x1e8] sm:$0xff]  ;;  %v6121_v39 = vpack.c.bf16 %v2175_v53, %v2171_v36 }
 0x798   :  { %v6125_v42 = vpack.c.bf16 %v2177_v17, %v2173_v3 }
 0x799   :  { %4349 = vmatpush1.bf16.msra.mxu0 %v4348_v60  ;;  %4381 = vmatpush1.bf16.msra.mxu1 %v4380_v26  ;;  %v2159_v60 = vld [vmem:[#allocation9 + $0x120] sm:$0xff]  ;;  %v6093_v26 = vpack.c.bf16 %v2160_v51, %v2156_v46  ;;  %v6127_v46 = vpack.c.bf16 %v2184_v22, %v2180_v21  ;;  %v2182_v51 = vld [vmem:[#allocation9 + $0x1d8] sm:$0xff] }
 0x79c   :  { %1930 = vmatmul.mubr.f32.vlgmr.msra.gmra.mrb[16].mxu0 %v5702_v55  ;;  %2043 = vmatmul.mubr.f32.vlgmr.msra.gmra.mrb[16].mxu1 %v5702_v55  ;;  %v2124_v55 = vld [vmem:[#allocation9 + $0x8] sm:$0xff] }
 0x79d   :  { %1935 = vmatprep.mubr.f32.mxu0 %v6507_v20  ;;  %2048 = vmatprep.mubr.f32.mxu1 %v6507_v20 }
 0x7a0   :  { %1936 = vmatmul.mubr.f32.gmra.mrb[18].mxu0 %v6508_v49  ;;  %2049 = vmatmul.mubr.f32.gmra.mrb[18].mxu1 %v6508_v49  ;;  %v6095_v49 = vpack.c.bf16 %v2159_v60, %v2155_v57  ;;  %v2186_v57 = vld [vmem:[#allocation9 + $0x1f8] sm:$0xff]  ;;  %v2179_v60 = vld [vmem:[#allocation9 + $0x1c0] sm:$0xff] }
 0x7a1   :  { %1941 = vmatprep.mubr.f32.mxu0 %v6507_v20  ;;  %2054 = vmatprep.mubr.f32.mxu1 %v6507_v20 }
 0x7a4   :  { %1942 = vmatmul.mubr.f32.gmra.mrb[20].mxu0 %v5814_v35  ;;  %2055 = vmatmul.mubr.f32.gmra.mrb[20].mxu1 %v5814_v35  ;;  %v2128_v35 = vld [vmem:[#allocation9 + $0x28] sm:$0xff] }
 0x7a5   :  { %1947 = vmatprep.mubr.f32.mxu0 %v6507_v20  ;;  %2060 = vmatprep.mubr.f32.mxu1 %v6507_v20 }
 0x7a8   :  { %1948 = vmatmul.mubr.f32.gmra.mrb[22].mxu0 %v5864_v43  ;;  %2061 = vmatmul.mubr.f32.gmra.mrb[22].mxu1 %v5864_v43  ;;  %v2126_v43 = vld [vmem:[#allocation9 + $0x18] sm:$0xff] }
 0x7a9   :  { %1953 = vmatprep.mubr.f32.mxu0 %v6507_v20  ;;  %2066 = vmatprep.mubr.f32.mxu1 %v6507_v20 }
 0x7ac   :  { %1954 = vmatmul.mubr.f32.gmra.mrb[24].mxu0 %v5914_v34  ;;  %2067 = vmatmul.mubr.f32.gmra.mrb[24].mxu1 %v5914_v34  ;;  %v6046_v34 = vpack.c.bf16 %v2128_v35, %v2124_v55  ;;  %v2158_v55 = vld [vmem:[#allocation9 + $0x118] sm:$0xff] }
 0x7ad   :  { %1959 = vmatprep.mubr.f32.mxu0 %v6507_v20  ;;  %2072 = vmatprep.mubr.f32.mxu1 %v6507_v20  ;;  %v2162_v35 = vld [vmem:[#allocation9 + $0x138] sm:$0xff] }
 0x7ae   :  { %4383 = vmatprep.subr.bf16.mxu0 %v6046_v34  ;;  %v6098_v61 = vpack.c.bf16 %v2162_v35, %v2158_v55  ;;  %v2183_v55 = vld [vmem:[#allocation9 + $0x1e0] sm:$0xff]  ;;  %v6133_v35 = vpack.c.bf16 %v2186_v57, %v2182_v51 }
 0x7af   :  { %4385 = vmatpush1.bf16.msra.mxu0 %v6048_v59 }
 0x7b0   :  { %1960 = vmatmul.mubr.f32.gmra.mrb[26].mxu0 %v5964_v9  ;;  %2073 = vmatmul.mubr.f32.gmra.mrb[26].mxu1 %v5964_v9  ;;  %v2130_v9 = vld [vmem:[#allocation9 + $0x38] sm:$0xff] }
 0x7b1   :  { %1965 = vmatprep.mubr.f32.mxu0 %v6507_v20  ;;  %2078 = vmatprep.mubr.f32.mxu1 %v6507_v20  ;;  %v6050_v6 = vpack.c.bf16 %v2130_v9, %v2126_v43  ;;  %v2157_v43 = vld [vmem:[#allocation9 + $0x110] sm:$0xff]  ;;  %v2164_v9 = vld [vmem:[#allocation9 + $0x148] sm:$0xff] }
 0x7b2   :  { %4387 = vmatprep.subr.bf16.mxu0 %v6058_v37 }
 0x7b3   :  { %4415 = vmatprep.subr.bf16.mxu1 %v6050_v6  ;;  %4389 = vmatpush1.bf16.msra.mxu0 %v6060_v11 }
 0x7b4   :  { %1966 = vmatmul.mubr.f32.gmra.mrb[28].mxu0 %v6012_v47  ;;  %2079 = vmatmul.mubr.f32.gmra.mrb[28].mxu1 %v6012_v47  ;;  %v6053_v47 = vpack.c.bf16 %v2129_v48, %v2125_v4  ;;  %v2168_v4 = vld [vmem:[#allocation9 + $0x168] sm:$0xff]  ;;  %v6101_v48 = vpack.c.bf16 %v2161_v25, %v2157_v43  ;;  %v2181_v43 = vld [vmem:[#allocation9 + $0x1d0] sm:$0xff]  ;;  %v6135_v25 = vpack.c.bf16 %v2183_v55, %v2179_v60 }
 0x7b5   :  { %1971 = vmatprep.mubr.f32.mxu0 %v6507_v20  ;;  %2084 = vmatprep.mubr.f32.mxu1 %v6507_v20  ;;  %v6103_v30 = vpack.c.bf16 %v2168_v4, %v2164_v9  ;;  %v2185_v9 = vld [vmem:[#allocation9 + $0x1f0] sm:$0xff] }
 0x7b6   :  { %4417 = vmatpush1.bf16.msra.mxu1 %v6053_v47  ;;  %4391 = vmatprep.subr.bf16.mxu0 %v6070_v32  ;;  %v6138_v4 = vpack.c.bf16 %v2185_v9, %v2181_v43 }
 0x7b7   :  { %4419 = vmatprep.subr.bf16.mxu1 %v6062_v10  ;;  %4393 = vmatpush1.bf16.msra.mxu0 %v6072_v45 }
 0x7b8   :  { %4395 = vmatprep.subr.bf16.mxu0 %v6082_v8 }
 0x7ba   :  { %4421 = vmatpush1.bf16.msra.mxu1 %v6065_v19 }
 0x7bb   :  { %4423 = vmatprep.subr.bf16.mxu1 %v6074_v52  ;;  %4397 = vmatpush1.bf16.msra.mxu0 %v6084_v29 }
 0x7bc   :  { %4399 = vmatprep.subr.bf16.mxu0 %v6093_v26 }
 0x7be   :  { %4425 = vmatpush1.bf16.msra.mxu1 %v6077_v58 }
 0x7bf   :  { %4427 = vmatprep.subr.bf16.mxu1 %v6086_v38  ;;  %4401 = vmatpush1.bf16.msra.mxu0 %v6095_v49 }
 0x7c0   :  { %4403 = vmatprep.subr.bf16.mxu0 %v6103_v30 }
 0x7c2   :  { %4429 = vmatpush1.bf16.msra.mxu1 %v6089_v50 }
 0x7c3   :  { %4431 = vmatprep.subr.bf16.mxu1 %v6098_v61  ;;  %4405 = vmatpush1.bf16.msra.mxu0 %v6107_v18 }
 0x7c4   :  { %4407 = vmatprep.subr.bf16.mxu0 %v6115_v41 }
 0x7c6   :  { %4433 = vmatpush1.bf16.msra.mxu1 %v6101_v48 }
 0x7c7   :  { %4435 = vmatprep.subr.bf16.mxu1 %v6109_v23  ;;  %4409 = vmatpush1.bf16.msra.mxu0 %v6121_v39 }
 0x7c8   :  { %4411 = vmatprep.subr.bf16.mxu0 %v6127_v46 }
 0x7ca   :  { %4437 = vmatpush1.bf16.msra.mxu1 %v6113_v40 }
 0x7cb   :  { %4439 = vmatprep.subr.bf16.mxu1 %v6118_v2  ;;  %4413 = vmatpush1.bf16.msra.mxu0 %v6135_v25 }
 0x7cc   :  { %4447 = vmatprep.subr.bf16.mxu0 %v6046_v34 }
 0x7ce   :  { %4441 = vmatpush1.bf16.msra.mxu1 %v6125_v42 }
 0x7cf   :  { %4443 = vmatprep.subr.bf16.mxu1 %v6133_v35 }
 0x7d2   :  { %4445 = vmatpush1.bf16.msra.mxu1 %v6138_v4 }
 0x7d3   :  { %4479 = vmatprep.subr.bf16.mxu1 %v6050_v6 }
 0x84f   :  { %v1665_v44 = vpop.f32.mrb[14].mxu0  ;;  %v1736_v14 = vpop.f32.mrb[14].mxu1 }
 0x850   :  { %v1741_v28 = vadd.f32 %v1665_v44, %v240_v13  ;;  %v1667_v36 = vpop.f32.mrb[15].mxu0  ;;  %v1738_v53 = vpop.f32.mrb[15].mxu1  ;;  %v1743_v51 = vadd.f32 %v1736_v14, %v242_v12  ;;  %v6509_v14 = vld [vmem:[#allocation17_spill] sm:$0xff]  ;;  %v6511_v12 = vld [vmem:[#allocation19_spill] sm:$0xff] }
 0x851   :  { %v1742_v1 = vadd.f32 %v1667_v36, %v241_v27  ;;  %v1744_v21 = vadd.f32 %v1738_v53, %v243_v62 }
 0x852   :  { %v3726_v3 = vmul.f32 -1.442695, %v1741_v28  ;;  %v6510_v28 = vld [vmem:[#allocation18_spill] sm:$0xff] }
 0x853   :  { %v3727_v17 = vmul.f32 -1.442695, %v1742_v1  ;;  %v3728_v22 = vmul.f32 -1.442695, %v1744_v21 }
 0x854   :  { %5109 = vpow2.f32 %v3726_v3 }
 0x855   :  { %5111 = vpow2.f32 %v3727_v17 }
 0x856   :  { %5113 = vpow2.f32 %v3728_v22 }
 0x857   :  { %5115 = vtanh.f32 %v1743_v51 }
 0x85e   :  { %v5110_v15 = vpop.eup %5109 }
 0x85f   :  { %v5112_v57 = vpop.eup %5111  ;;  %v1748_v60 = vadd.f32 1.0, %v5110_v15  ;;  %v6512_v15 = vld [vmem:[#allocation20_spill] sm:$0xff] }
 0x860   :  { %v1754_v16 = vadd.f32 1.0, %v5112_v57  ;;  %v5114_v55 = vpop.eup %5113 }
 0x861   :  { %5117 = vrcp.f32 %v1748_v60  ;;  %v5116_v43 = vpop.eup %5115  ;;  %v1761_v5 = vadd.f32 1.0, %v5114_v55 }
 0x862   :  { %5119 = vrcp.f32 %v1754_v16 }
 0x863   :  { %5121 = vrcp.f32 %v1761_v5 }
 0x86b   :  { %v5118_v9 = vpop.eup %5117 }
 0x86c   :  { %v5120_v0 = vpop.eup %5119  ;;  %v1765_v31 = vmul.f32 %v5118_v9, %v5116_v43 }
 0x86d   :  { %v1764_v33 = vmul.f32 %v5120_v0, %v6009_v24  ;;  %v5122_v56 = vpop.eup %5121  ;;  %v1843_v24 = vld [vmem:[%s6490_s6] sm:$0xf] }
 0x86e   :  { %v6195_v27 = vrot.slane %v1843_v24, %v6509_v14  ;;  %v6198_v36 = vrot.slane %v1843_v24, %v6510_v28  ;;  %v6203_v22 = vrot.slane %v1843_v24, %v6511_v12  ;;  %v6207_v57 = vrot.slane %v1843_v24, %v6512_v15 }
 0x86f   :  { %v1766_v7 = vadd.f32 %v1765_v31, %v1764_v33 }
 0x871   :  { %5123 = vtanh.f32 %v1766_v7 }
 0x87b   :  { %v5124_v13 = vpop.eup %5123 }
 0x87c   :  { %v1768_v44 = vmul.f32 %v5124_v13, %v5122_v56 }
 0x87e   :  { %1972 = vmatmul.mubr.f32.gmra.mrb[30].mxu0 %v1768_v44  ;;  %2085 = vmatmul.mubr.f32.gmra.mrb[30].mxu1 %v1768_v44 }
 0x87f   :  { %2255 = vmatprep.mubr.f32.mxu0 %v6507_v20  ;;  %2326 = vmatprep.mubr.f32.mxu1 %v6507_v20 }
 0x882   :  { %2256 = vmatmul.mubr.f32.vlgmr.msra.gmra.mrb[16].mxu0 %v6507_v20  ;;  %2327 = vmatmul.mubr.f32.vlgmr.msra.gmra.mrb[16].mxu1 %v6507_v20 }
 0x883   :  { %4449 = vmatpush1.bf16.msra.mxu0 %v6048_v59  ;;  %4481 = vmatpush1.bf16.msra.mxu1 %v6053_v47 }
 0x884   :  { %4451 = vmatprep.subr.bf16.mxu0 %v6058_v37  ;;  %4483 = vmatprep.subr.bf16.mxu1 %v6062_v10 }
 0x885   :  { %2430 = vmatprep.mubr.f32.mxu0 %v6507_v20  ;;  %2501 = vmatprep.mubr.f32.mxu1 %v6507_v20 }
 0x887   :  { %4453 = vmatpush1.bf16.msra.mxu0 %v6060_v11  ;;  %4485 = vmatpush1.bf16.msra.mxu1 %v6065_v19 }
 0x888   :  { %4455 = vmatprep.subr.bf16.mxu0 %v6070_v32  ;;  %4487 = vmatprep.subr.bf16.mxu1 %v6074_v52 }
 0x88b   :  { %4457 = vmatpush1.bf16.msra.mxu0 %v6072_v45  ;;  %4489 = vmatpush1.bf16.msra.mxu1 %v6077_v58 }
 0x88c   :  { %4459 = vmatprep.subr.bf16.mxu0 %v6082_v8  ;;  %4491 = vmatprep.subr.bf16.mxu1 %v6086_v38 }
 0x88f   :  { %4461 = vmatpush1.bf16.msra.mxu0 %v6084_v29  ;;  %4493 = vmatpush1.bf16.msra.mxu1 %v6089_v50 }
 0x890   :  { %4463 = vmatprep.subr.bf16.mxu0 %v6093_v26  ;;  %4495 = vmatprep.subr.bf16.mxu1 %v6098_v61 }
 0x893   :  { %4465 = vmatpush1.bf16.msra.mxu0 %v6095_v49  ;;  %4497 = vmatpush1.bf16.msra.mxu1 %v6101_v48 }
 0x894   :  { %4467 = vmatprep.subr.bf16.mxu0 %v6103_v30  ;;  %4499 = vmatprep.subr.bf16.mxu1 %v6109_v23 }
 0x897   :  { %4469 = vmatpush1.bf16.msra.mxu0 %v6107_v18  ;;  %4501 = vmatpush1.bf16.msra.mxu1 %v6113_v40 }
 0x898   :  { %4471 = vmatprep.subr.bf16.mxu0 %v6115_v41  ;;  %4503 = vmatprep.subr.bf16.mxu1 %v6118_v2 }
 0x89b   :  { %4473 = vmatpush1.bf16.msra.mxu0 %v6121_v39  ;;  %4505 = vmatpush1.bf16.msra.mxu1 %v6125_v42 }
 0x89c   :  { %4475 = vmatprep.subr.bf16.mxu0 %v6127_v46  ;;  %4507 = vmatprep.subr.bf16.mxu1 %v6133_v35 }
 0x89f   :  { %4477 = vmatpush1.bf16.msra.mxu0 %v6135_v25  ;;  %4509 = vmatpush1.bf16.msra.mxu1 %v6138_v4 }
 0x8a0   :  { %4511 = vmatprep.subr.bf16.mxu0 %v6046_v34  ;;  %4543 = vmatprep.subr.bf16.mxu1 %v6050_v6 }
 0x955   :  { %v2257_v53 = vpop.f32.mrb[16].mxu0  ;;  %v2328_v54 = vpop.f32.mrb[16].mxu1 }
 0x956   :  { %v4918_v1 = vadd.f32 %v2257_v53, %v6195_v27  ;;  %v2259_v3 = vpop.f32.mrb[17].mxu0  ;;  %v2330_v17 = vpop.f32.mrb[17].mxu1  ;;  %v4934_v16 = vadd.f32 %v2328_v54, %v6207_v57 }
 0x957   :  { %v4919_v62 = vadd.f32 %v2259_v3, %v6198_v36  ;;  %v4935_v51 = vadd.f32 %v2330_v17, %v6203_v22 }
 0x958   :  { %v3729_v63 = vmul.f32 -1.442695, %v4918_v1 }
 0x959   :  { %v3730_v21 = vmul.f32 -1.442695, %v4919_v62  ;;  %v3731_v60 = vmul.f32 -1.442695, %v4935_v51 }
 0x95a   :  { %5125 = vpow2.f32 %v3729_v63 }
 0x95b   :  { %5127 = vpow2.f32 %v3730_v21 }
 0x95c   :  { %5129 = vpow2.f32 %v3731_v60 }
 0x95d   :  { %5131 = vtanh.f32 %v4934_v16 }
 0x964   :  { %v5126_v55 = vpop.eup %5125 }
 0x965   :  { %v5128_v43 = vpop.eup %5127  ;;  %v2340_v9 = vadd.f32 1.0, %v5126_v55 }
 0x966   :  { %v2346_v0 = vadd.f32 1.0, %v5128_v43  ;;  %v5130_v31 = vpop.eup %5129 }
 0x967   :  { %5133 = vrcp.f32 %v2340_v9  ;;  %v5132_v5 = vpop.eup %5131  ;;  %v2353_v13 = vadd.f32 1.0, %v5130_v31 }
 0x968   :  { %5135 = vrcp.f32 %v2346_v0 }
 0x969   :  { %5137 = vrcp.f32 %v2353_v13 }
 0x971   :  { %v5134_v33 = vpop.eup %5133 }
 0x972   :  { %v5136_v7 = vpop.eup %5135  ;;  %v2357_v56 = vmul.f32 %v5134_v33, %v5132_v5 }
 0x973   :  { %v2356_v44 = vmul.f32 0.0, %v5136_v7  ;;  %v5138_v14 = vpop.eup %5137 }
 0x975   :  { %v6210_v24 = vadd.f32 %v2357_v56, %v2356_v44 }
 0x977   :  { %5139 = vtanh.f32 %v6210_v24 }
 0x981   :  { %v5140_v28 = vpop.eup %5139 }
 0x982   :  { %v2360_v53 = vmul.f32 %v5140_v28, %v5138_v14 }
 0x984   :  { %2431 = vmatmul.mubr.f32.vlgmr.msra.gmra.mrb[18].mxu0 %v2360_v53  ;;  %2502 = vmatmul.mubr.f32.vlgmr.msra.gmra.mrb[18].mxu1 %v2360_v53 }
 0x985   :  { %4513 = vmatpush1.bf16.msra.mxu0 %v6048_v59  ;;  %4545 = vmatpush1.bf16.msra.mxu1 %v6053_v47 }
 0x986   :  { %4515 = vmatprep.subr.bf16.mxu0 %v6058_v37  ;;  %4547 = vmatprep.subr.bf16.mxu1 %v6062_v10 }
 0x987   :  { %2605 = vmatprep.mubr.f32.mxu0 %v6507_v20  ;;  %2676 = vmatprep.mubr.f32.mxu1 %v6507_v20 }
 0x989   :  { %4517 = vmatpush1.bf16.msra.mxu0 %v6060_v11  ;;  %4549 = vmatpush1.bf16.msra.mxu1 %v6065_v19 }
 0x98a   :  { %4519 = vmatprep.subr.bf16.mxu0 %v6070_v32  ;;  %4551 = vmatprep.subr.bf16.mxu1 %v6074_v52 }
 0x98d   :  { %4521 = vmatpush1.bf16.msra.mxu0 %v6072_v45  ;;  %4553 = vmatpush1.bf16.msra.mxu1 %v6077_v58 }
 0x98e   :  { %4523 = vmatprep.subr.bf16.mxu0 %v6082_v8  ;;  %4555 = vmatprep.subr.bf16.mxu1 %v6086_v38 }
 0x991   :  { %4525 = vmatpush1.bf16.msra.mxu0 %v6084_v29  ;;  %4557 = vmatpush1.bf16.msra.mxu1 %v6089_v50 }
 0x992   :  { %4527 = vmatprep.subr.bf16.mxu0 %v6093_v26  ;;  %4559 = vmatprep.subr.bf16.mxu1 %v6098_v61 }
 0x995   :  { %4529 = vmatpush1.bf16.msra.mxu0 %v6095_v49  ;;  %4561 = vmatpush1.bf16.msra.mxu1 %v6101_v48 }
 0x996   :  { %4531 = vmatprep.subr.bf16.mxu0 %v6103_v30  ;;  %4563 = vmatprep.subr.bf16.mxu1 %v6109_v23 }
 0x999   :  { %4533 = vmatpush1.bf16.msra.mxu0 %v6107_v18  ;;  %4565 = vmatpush1.bf16.msra.mxu1 %v6113_v40 }
 0x99a   :  { %4535 = vmatprep.subr.bf16.mxu0 %v6115_v41  ;;  %4567 = vmatprep.subr.bf16.mxu1 %v6118_v2 }
 0x99d   :  { %4537 = vmatpush1.bf16.msra.mxu0 %v6121_v39  ;;  %4569 = vmatpush1.bf16.msra.mxu1 %v6125_v42 }
 0x99e   :  { %4539 = vmatprep.subr.bf16.mxu0 %v6127_v46  ;;  %4571 = vmatprep.subr.bf16.mxu1 %v6133_v35 }
 0x9a1   :  { %4541 = vmatpush1.bf16.msra.mxu0 %v6135_v25  ;;  %4573 = vmatpush1.bf16.msra.mxu1 %v6138_v4 }
 0x9a2   :  { %4575 = vmatprep.subr.bf16.mxu0 %v6046_v34  ;;  %4607 = vmatprep.subr.bf16.mxu1 %v6050_v6 }
 0xa57   :  { %v2432_v54 = vpop.f32.mrb[18].mxu0  ;;  %v2503_v1 = vpop.f32.mrb[18].mxu1 }
 0xa58   :  { %v4920_v3 = vadd.f32 %v2432_v54, %v6195_v27  ;;  %v2434_v17 = vpop.f32.mrb[19].mxu0  ;;  %v2505_v62 = vpop.f32.mrb[19].mxu1  ;;  %v4936_v60 = vadd.f32 %v2503_v1, %v6207_v57 }
 0xa59   :  { %v4921_v63 = vadd.f32 %v2434_v17, %v6198_v36  ;;  %v4937_v51 = vadd.f32 %v2505_v62, %v6203_v22 }
 0xa5a   :  { %v3732_v21 = vmul.f32 -1.442695, %v4920_v3 }
 0xa5b   :  { %v3733_v12 = vmul.f32 -1.442695, %v4921_v63  ;;  %v3734_v15 = vmul.f32 -1.442695, %v4937_v51 }
 0xa5c   :  { %5141 = vpow2.f32 %v3732_v21 }
 0xa5d   :  { %5143 = vpow2.f32 %v3733_v12 }
 0xa5e   :  { %5145 = vpow2.f32 %v3734_v15 }
 0xa5f   :  { %5147 = vtanh.f32 %v4936_v60 }
 0xa66   :  { %v5142_v16 = vpop.eup %5141 }
 0xa67   :  { %v5144_v55 = vpop.eup %5143  ;;  %v2515_v43 = vadd.f32 1.0, %v5142_v16 }
 0xa68   :  { %v2521_v9 = vadd.f32 1.0, %v5144_v55  ;;  %v5146_v0 = vpop.eup %5145 }
 0xa69   :  { %5149 = vrcp.f32 %v2515_v43  ;;  %v5148_v31 = vpop.eup %5147  ;;  %v2528_v56 = vadd.f32 1.0, %v5146_v0 }
 0xa6a   :  { %5151 = vrcp.f32 %v2521_v9 }
 0xa6b   :  { %5153 = vrcp.f32 %v2528_v56 }
 0xa73   :  { %v5150_v5 = vpop.eup %5149 }
 0xa74   :  { %v5152_v33 = vpop.eup %5151  ;;  %v2532_v7 = vmul.f32 %v5150_v5, %v5148_v31 }
 0xa75   :  { %v2531_v13 = vmul.f32 %v5152_v33, %v6210_v24  ;;  %v5154_v14 = vpop.eup %5153 }
 0xa77   :  { %v6252_v44 = vadd.f32 %v2532_v7, %v2531_v13 }
 0xa79   :  { %5155 = vtanh.f32 %v6252_v44 }
 0xa83   :  { %v5156_v28 = vpop.eup %5155 }
 0xa84   :  { %v2535_v53 = vmul.f32 %v5156_v28, %v5154_v14 }
 0xa86   :  { %2606 = vmatmul.mubr.f32.vlgmr.msra.gmra.mrb[20].mxu0 %v2535_v53  ;;  %2677 = vmatmul.mubr.f32.vlgmr.msra.gmra.mrb[20].mxu1 %v2535_v53 }
 0xa87   :  { %4577 = vmatpush1.bf16.msra.mxu0 %v6048_v59  ;;  %4609 = vmatpush1.bf16.msra.mxu1 %v6053_v47 }
 0xa88   :  { %4579 = vmatprep.subr.bf16.mxu0 %v6058_v37  ;;  %4611 = vmatprep.subr.bf16.mxu1 %v6062_v10 }
 0xa89   :  { %2780 = vmatprep.mubr.f32.mxu0 %v6507_v20  ;;  %2851 = vmatprep.mubr.f32.mxu1 %v6507_v20 }
 0xa8b   :  { %4581 = vmatpush1.bf16.msra.mxu0 %v6060_v11  ;;  %4613 = vmatpush1.bf16.msra.mxu1 %v6065_v19 }
 0xa8c   :  { %4583 = vmatprep.subr.bf16.mxu0 %v6070_v32  ;;  %4615 = vmatprep.subr.bf16.mxu1 %v6074_v52 }
 0xa8f   :  { %4585 = vmatpush1.bf16.msra.mxu0 %v6072_v45  ;;  %4617 = vmatpush1.bf16.msra.mxu1 %v6077_v58 }
 0xa90   :  { %4587 = vmatprep.subr.bf16.mxu0 %v6082_v8  ;;  %4619 = vmatprep.subr.bf16.mxu1 %v6086_v38 }
 0xa93   :  { %4589 = vmatpush1.bf16.msra.mxu0 %v6084_v29  ;;  %4621 = vmatpush1.bf16.msra.mxu1 %v6089_v50 }
 0xa94   :  { %4591 = vmatprep.subr.bf16.mxu0 %v6093_v26  ;;  %4623 = vmatprep.subr.bf16.mxu1 %v6098_v61 }
 0xa97   :  { %4593 = vmatpush1.bf16.msra.mxu0 %v6095_v49  ;;  %4625 = vmatpush1.bf16.msra.mxu1 %v6101_v48 }
 0xa98   :  { %4595 = vmatprep.subr.bf16.mxu0 %v6103_v30  ;;  %4627 = vmatprep.subr.bf16.mxu1 %v6109_v23 }
 0xa9b   :  { %4597 = vmatpush1.bf16.msra.mxu0 %v6107_v18  ;;  %4629 = vmatpush1.bf16.msra.mxu1 %v6113_v40 }
 0xa9c   :  { %4599 = vmatprep.subr.bf16.mxu0 %v6115_v41  ;;  %4631 = vmatprep.subr.bf16.mxu1 %v6118_v2 }
 0xa9f   :  { %4601 = vmatpush1.bf16.msra.mxu0 %v6121_v39  ;;  %4633 = vmatpush1.bf16.msra.mxu1 %v6125_v42 }
 0xaa0   :  { %4603 = vmatprep.subr.bf16.mxu0 %v6127_v46  ;;  %4635 = vmatprep.subr.bf16.mxu1 %v6133_v35 }
 0xaa3   :  { %4605 = vmatpush1.bf16.msra.mxu0 %v6135_v25  ;;  %4637 = vmatpush1.bf16.msra.mxu1 %v6138_v4 }
 0xaa4   :  { %4639 = vmatprep.subr.bf16.mxu0 %v6046_v34  ;;  %4671 = vmatprep.subr.bf16.mxu1 %v6050_v6 }
 0xb59   :  { %v2607_v24 = vpop.f32.mrb[20].mxu0  ;;  %v2678_v54 = vpop.f32.mrb[20].mxu1 }
 0xb5a   :  { %v4922_v1 = vadd.f32 %v2607_v24, %v6195_v27  ;;  %v2609_v3 = vpop.f32.mrb[21].mxu0  ;;  %v2680_v17 = vpop.f32.mrb[21].mxu1  ;;  %v4938_v15 = vadd.f32 %v2678_v54, %v6207_v57 }
 0xb5b   :  { %v4923_v62 = vadd.f32 %v2609_v3, %v6198_v36  ;;  %v4939_v12 = vadd.f32 %v2680_v17, %v6203_v22 }
 0xb5c   :  { %v3735_v63 = vmul.f32 -1.442695, %v4922_v1 }
 0xb5d   :  { %v3736_v21 = vmul.f32 -1.442695, %v4923_v62  ;;  %v3737_v51 = vmul.f32 -1.442695, %v4939_v12 }
 0xb5e   :  { %5157 = vpow2.f32 %v3735_v63 }
 0xb5f   :  { %5159 = vpow2.f32 %v3736_v21 }
 0xb60   :  { %5161 = vpow2.f32 %v3737_v51 }
 0xb61   :  { %5163 = vtanh.f32 %v4938_v15 }
 0xb68   :  { %v5158_v60 = vpop.eup %5157 }
 0xb69   :  { %v5160_v16 = vpop.eup %5159  ;;  %v2690_v55 = vadd.f32 1.0, %v5158_v60 }
 0xb6a   :  { %v2696_v43 = vadd.f32 1.0, %v5160_v16  ;;  %v5162_v9 = vpop.eup %5161 }
 0xb6b   :  { %5165 = vrcp.f32 %v2690_v55  ;;  %v5164_v0 = vpop.eup %5163  ;;  %v2703_v7 = vadd.f32 1.0, %v5162_v9 }
 0xb6c   :  { %5167 = vrcp.f32 %v2696_v43 }
 0xb6d   :  { %5169 = vrcp.f32 %v2703_v7 }
 0xb75   :  { %v5166_v31 = vpop.eup %5165 }
 0xb76   :  { %v5168_v5 = vpop.eup %5167  ;;  %v2707_v33 = vmul.f32 %v5166_v31, %v5164_v0 }
 0xb77   :  { %v2706_v56 = vmul.f32 %v5168_v5, %v6252_v44  ;;  %v5170_v14 = vpop.eup %5169 }
 0xb79   :  { %v6294_v13 = vadd.f32 %v2707_v33, %v2706_v56 }
 0xb7b   :  { %5171 = vtanh.f32 %v6294_v13 }
 0xb85   :  { %v5172_v28 = vpop.eup %5171 }
 0xb86   :  { %v2710_v53 = vmul.f32 %v5172_v28, %v5170_v14 }
 0xb88   :  { %2781 = vmatmul.mubr.f32.vlgmr.msra.gmra.mrb[22].mxu0 %v2710_v53  ;;  %2852 = vmatmul.mubr.f32.vlgmr.msra.gmra.mrb[22].mxu1 %v2710_v53 }
 0xb89   :  { %4641 = vmatpush1.bf16.msra.mxu0 %v6048_v59  ;;  %4673 = vmatpush1.bf16.msra.mxu1 %v6053_v47 }
 0xb8a   :  { %4643 = vmatprep.subr.bf16.mxu0 %v6058_v37  ;;  %4675 = vmatprep.subr.bf16.mxu1 %v6062_v10 }
 0xb8b   :  { %2955 = vmatprep.mubr.f32.mxu0 %v6507_v20  ;;  %3026 = vmatprep.mubr.f32.mxu1 %v6507_v20 }
 0xb8d   :  { %4645 = vmatpush1.bf16.msra.mxu0 %v6060_v11  ;;  %4677 = vmatpush1.bf16.msra.mxu1 %v6065_v19 }
 0xb8e   :  { %4647 = vmatprep.subr.bf16.mxu0 %v6070_v32  ;;  %4679 = vmatprep.subr.bf16.mxu1 %v6074_v52 }
 0xb91   :  { %4649 = vmatpush1.bf16.msra.mxu0 %v6072_v45  ;;  %4681 = vmatpush1.bf16.msra.mxu1 %v6077_v58 }
 0xb92   :  { %4651 = vmatprep.subr.bf16.mxu0 %v6082_v8  ;;  %4683 = vmatprep.subr.bf16.mxu1 %v6086_v38 }
 0xb95   :  { %4653 = vmatpush1.bf16.msra.mxu0 %v6084_v29  ;;  %4685 = vmatpush1.bf16.msra.mxu1 %v6089_v50 }
 0xb96   :  { %4655 = vmatprep.subr.bf16.mxu0 %v6093_v26  ;;  %4687 = vmatprep.subr.bf16.mxu1 %v6098_v61 }
 0xb99   :  { %4657 = vmatpush1.bf16.msra.mxu0 %v6095_v49  ;;  %4689 = vmatpush1.bf16.msra.mxu1 %v6101_v48 }
 0xb9a   :  { %4659 = vmatprep.subr.bf16.mxu0 %v6103_v30  ;;  %4691 = vmatprep.subr.bf16.mxu1 %v6109_v23 }
 0xb9d   :  { %4661 = vmatpush1.bf16.msra.mxu0 %v6107_v18  ;;  %4693 = vmatpush1.bf16.msra.mxu1 %v6113_v40 }
 0xb9e   :  { %4663 = vmatprep.subr.bf16.mxu0 %v6115_v41  ;;  %4695 = vmatprep.subr.bf16.mxu1 %v6118_v2 }
 0xba1   :  { %4665 = vmatpush1.bf16.msra.mxu0 %v6121_v39  ;;  %4697 = vmatpush1.bf16.msra.mxu1 %v6125_v42 }
 0xba2   :  { %4667 = vmatprep.subr.bf16.mxu0 %v6127_v46  ;;  %4699 = vmatprep.subr.bf16.mxu1 %v6133_v35 }
 0xba5   :  { %4669 = vmatpush1.bf16.msra.mxu0 %v6135_v25  ;;  %4701 = vmatpush1.bf16.msra.mxu1 %v6138_v4 }
 0xba6   :  { %4703 = vmatprep.subr.bf16.mxu0 %v6046_v34  ;;  %4735 = vmatprep.subr.bf16.mxu1 %v6050_v6 }
 0xc5b   :  { %v2782_v44 = vpop.f32.mrb[22].mxu0  ;;  %v2853_v24 = vpop.f32.mrb[22].mxu1 }
 0xc5c   :  { %v4924_v54 = vadd.f32 %v2782_v44, %v6195_v27  ;;  %v2784_v1 = vpop.f32.mrb[23].mxu0  ;;  %v2855_v3 = vpop.f32.mrb[23].mxu1  ;;  %v4940_v51 = vadd.f32 %v2853_v24, %v6207_v57 }
 0xc5d   :  { %v4925_v17 = vadd.f32 %v2784_v1, %v6198_v36  ;;  %v4941_v21 = vadd.f32 %v2855_v3, %v6203_v22 }
 0xc5e   :  { %v3738_v62 = vmul.f32 -1.442695, %v4924_v54 }
 0xc5f   :  { %v3739_v63 = vmul.f32 -1.442695, %v4925_v17  ;;  %v3740_v12 = vmul.f32 -1.442695, %v4941_v21 }
 0xc60   :  { %5173 = vpow2.f32 %v3738_v62 }
 0xc61   :  { %5175 = vpow2.f32 %v3739_v63 }
 0xc62   :  { %5177 = vpow2.f32 %v3740_v12 }
 0xc63   :  { %5179 = vtanh.f32 %v4940_v51 }
 0xc6a   :  { %v5174_v15 = vpop.eup %5173 }
 0xc6b   :  { %v5176_v60 = vpop.eup %5175  ;;  %v2865_v16 = vadd.f32 1.0, %v5174_v15 }
 0xc6c   :  { %v2871_v55 = vadd.f32 1.0, %v5176_v60  ;;  %v5178_v43 = vpop.eup %5177 }
 0xc6d   :  { %5181 = vrcp.f32 %v2865_v16  ;;  %v5180_v9 = vpop.eup %5179  ;;  %v2878_v33 = vadd.f32 1.0, %v5178_v43 }
 0xc6e   :  { %5183 = vrcp.f32 %v2871_v55 }
 0xc6f   :  { %5185 = vrcp.f32 %v2878_v33 }
 0xc77   :  { %v5182_v0 = vpop.eup %5181 }
 0xc78   :  { %v5184_v31 = vpop.eup %5183  ;;  %v2882_v5 = vmul.f32 %v5182_v0, %v5180_v9 }
 0xc79   :  { %v2881_v7 = vmul.f32 %v5184_v31, %v6294_v13  ;;  %v5186_v14 = vpop.eup %5185 }
 0xc7b   :  { %v6336_v56 = vadd.f32 %v2882_v5, %v2881_v7 }
 0xc7d   :  { %5187 = vtanh.f32 %v6336_v56 }
 0xc87   :  { %v5188_v28 = vpop.eup %5187 }
 0xc88   :  { %v2885_v53 = vmul.f32 %v5188_v28, %v5186_v14 }
 0xc8a   :  { %2956 = vmatmul.mubr.f32.vlgmr.msra.gmra.mrb[24].mxu0 %v2885_v53  ;;  %3027 = vmatmul.mubr.f32.vlgmr.msra.gmra.mrb[24].mxu1 %v2885_v53 }
 0xc8b   :  { %4705 = vmatpush1.bf16.msra.mxu0 %v6048_v59  ;;  %4737 = vmatpush1.bf16.msra.mxu1 %v6053_v47 }
 0xc8c   :  { %4707 = vmatprep.subr.bf16.mxu0 %v6058_v37  ;;  %4739 = vmatprep.subr.bf16.mxu1 %v6062_v10 }
 0xc8d   :  { %3130 = vmatprep.mubr.f32.mxu0 %v6507_v20  ;;  %3201 = vmatprep.mubr.f32.mxu1 %v6507_v20 }
 0xc8f   :  { %4709 = vmatpush1.bf16.msra.mxu0 %v6060_v11  ;;  %4741 = vmatpush1.bf16.msra.mxu1 %v6065_v19 }
 0xc90   :  { %4711 = vmatprep.subr.bf16.mxu0 %v6070_v32  ;;  %4743 = vmatprep.subr.bf16.mxu1 %v6074_v52 }
 0xc93   :  { %4713 = vmatpush1.bf16.msra.mxu0 %v6072_v45  ;;  %4745 = vmatpush1.bf16.msra.mxu1 %v6077_v58 }
 0xc94   :  { %4715 = vmatprep.subr.bf16.mxu0 %v6082_v8  ;;  %4747 = vmatprep.subr.bf16.mxu1 %v6086_v38 }
 0xc97   :  { %4717 = vmatpush1.bf16.msra.mxu0 %v6084_v29  ;;  %4749 = vmatpush1.bf16.msra.mxu1 %v6089_v50 }
 0xc98   :  { %4719 = vmatprep.subr.bf16.mxu0 %v6093_v26  ;;  %4751 = vmatprep.subr.bf16.mxu1 %v6098_v61 }
 0xc9b   :  { %4721 = vmatpush1.bf16.msra.mxu0 %v6095_v49  ;;  %4753 = vmatpush1.bf16.msra.mxu1 %v6101_v48 }
 0xc9c   :  { %4723 = vmatprep.subr.bf16.mxu0 %v6103_v30  ;;  %4755 = vmatprep.subr.bf16.mxu1 %v6109_v23 }
 0xc9f   :  { %4725 = vmatpush1.bf16.msra.mxu0 %v6107_v18  ;;  %4757 = vmatpush1.bf16.msra.mxu1 %v6113_v40 }
 0xca0   :  { %4727 = vmatprep.subr.bf16.mxu0 %v6115_v41  ;;  %4759 = vmatprep.subr.bf16.mxu1 %v6118_v2 }
 0xca3   :  { %4729 = vmatpush1.bf16.msra.mxu0 %v6121_v39  ;;  %4761 = vmatpush1.bf16.msra.mxu1 %v6125_v42 }
 0xca4   :  { %4731 = vmatprep.subr.bf16.mxu0 %v6127_v46  ;;  %4763 = vmatprep.subr.bf16.mxu1 %v6133_v35 }
 0xca7   :  { %4733 = vmatpush1.bf16.msra.mxu0 %v6135_v25  ;;  %4765 = vmatpush1.bf16.msra.mxu1 %v6138_v4 }
 0xca8   :  { %4767 = vmatprep.subr.bf16.mxu0 %v6046_v34  ;;  %4799 = vmatprep.subr.bf16.mxu1 %v6050_v6 }
 0xd5d   :  { %v2957_v13 = vpop.f32.mrb[24].mxu0  ;;  %v3028_v44 = vpop.f32.mrb[24].mxu1 }
 0xd5e   :  { %v4926_v24 = vadd.f32 %v2957_v13, %v6195_v27  ;;  %v2959_v54 = vpop.f32.mrb[25].mxu0  ;;  %v3030_v1 = vpop.f32.mrb[25].mxu1  ;;  %v4942_v12 = vadd.f32 %v3028_v44, %v6207_v57 }
 0xd5f   :  { %v4927_v3 = vadd.f32 %v2959_v54, %v6198_v36  ;;  %v4943_v63 = vadd.f32 %v3030_v1, %v6203_v22 }
 0xd60   :  { %v3741_v17 = vmul.f32 -1.442695, %v4926_v24 }
 0xd61   :  { %v3742_v62 = vmul.f32 -1.442695, %v4927_v3  ;;  %v3743_v21 = vmul.f32 -1.442695, %v4943_v63 }
 0xd62   :  { %5189 = vpow2.f32 %v3741_v17 }
 0xd63   :  { %5191 = vpow2.f32 %v3742_v62 }
 0xd64   :  { %5193 = vpow2.f32 %v3743_v21 }
 0xd65   :  { %5195 = vtanh.f32 %v4942_v12 }
 0xd6c   :  { %v5190_v51 = vpop.eup %5189 }
 0xd6d   :  { %v5192_v15 = vpop.eup %5191  ;;  %v3040_v60 = vadd.f32 1.0, %v5190_v51 }
 0xd6e   :  { %v3046_v16 = vadd.f32 1.0, %v5192_v15  ;;  %v5194_v55 = vpop.eup %5193 }
 0xd6f   :  { %5197 = vrcp.f32 %v3040_v60  ;;  %v5196_v43 = vpop.eup %5195  ;;  %v3053_v5 = vadd.f32 1.0, %v5194_v55 }
 0xd70   :  { %5199 = vrcp.f32 %v3046_v16 }
 0xd71   :  { %5201 = vrcp.f32 %v3053_v5 }
 0xd79   :  { %v5198_v9 = vpop.eup %5197 }
 0xd7a   :  { %v5200_v0 = vpop.eup %5199  ;;  %v3057_v31 = vmul.f32 %v5198_v9, %v5196_v43 }
 0xd7b   :  { %v3056_v33 = vmul.f32 %v5200_v0, %v6336_v56  ;;  %v5202_v14 = vpop.eup %5201 }
 0xd7d   :  { %v6378_v7 = vadd.f32 %v3057_v31, %v3056_v33 }
 0xd7f   :  { %5203 = vtanh.f32 %v6378_v7 }
 0xd89   :  { %v5204_v28 = vpop.eup %5203 }
 0xd8a   :  { %v3060_v53 = vmul.f32 %v5204_v28, %v5202_v14  ;;  %v3590_v28 = vld [vmem:[#allocation10 + $0x18] sm:$0xff] }
 0xd8c   :  { %3131 = vmatmul.mubr.f32.vlgmr.msra.gmra.mrb[26].mxu0 %v3060_v53  ;;  %3202 = vmatmul.mubr.f32.vlgmr.msra.gmra.mrb[26].mxu1 %v3060_v53 }
 0xd8d   :  { %4769 = vmatpush1.bf16.msra.mxu0 %v6048_v59  ;;  %4801 = vmatpush1.bf16.msra.mxu1 %v6053_v47 }
 0xd8e   :  { %4771 = vmatprep.subr.bf16.mxu0 %v6058_v37  ;;  %4803 = vmatprep.subr.bf16.mxu1 %v6062_v10 }
 0xd8f   :  { %3305 = vmatprep.mubr.f32.mxu0 %v6507_v20  ;;  %3376 = vmatprep.mubr.f32.mxu1 %v6507_v20 }
 0xd91   :  { %4773 = vmatpush1.bf16.msra.mxu0 %v6060_v11  ;;  %4805 = vmatpush1.bf16.msra.mxu1 %v6065_v19 }
 0xd92   :  { %4775 = vmatprep.subr.bf16.mxu0 %v6070_v32  ;;  %4807 = vmatprep.subr.bf16.mxu1 %v6074_v52 }
 0xd95   :  { %4777 = vmatpush1.bf16.msra.mxu0 %v6072_v45  ;;  %4809 = vmatpush1.bf16.msra.mxu1 %v6077_v58 }
 0xd96   :  { %4779 = vmatprep.subr.bf16.mxu0 %v6082_v8  ;;  %4811 = vmatprep.subr.bf16.mxu1 %v6086_v38 }
 0xd99   :  { %4781 = vmatpush1.bf16.msra.mxu0 %v6084_v29  ;;  %4813 = vmatpush1.bf16.msra.mxu1 %v6089_v50 }
 0xd9a   :  { %4783 = vmatprep.subr.bf16.mxu0 %v6093_v26  ;;  %4815 = vmatprep.subr.bf16.mxu1 %v6098_v61 }
 0xd9d   :  { %4785 = vmatpush1.bf16.msra.mxu0 %v6095_v49  ;;  %4817 = vmatpush1.bf16.msra.mxu1 %v6101_v48 }
 0xd9e   :  { %4787 = vmatprep.subr.bf16.mxu0 %v6103_v30  ;;  %4819 = vmatprep.subr.bf16.mxu1 %v6109_v23 }
 0xda1   :  { %4789 = vmatpush1.bf16.msra.mxu0 %v6107_v18  ;;  %4821 = vmatpush1.bf16.msra.mxu1 %v6113_v40 }
 0xda2   :  { %4791 = vmatprep.subr.bf16.mxu0 %v6115_v41  ;;  %4823 = vmatprep.subr.bf16.mxu1 %v6118_v2 }
 0xda5   :  { %4793 = vmatpush1.bf16.msra.mxu0 %v6121_v39  ;;  %4825 = vmatpush1.bf16.msra.mxu1 %v6125_v42 }
 0xda6   :  { %4795 = vmatprep.subr.bf16.mxu0 %v6127_v46  ;;  %4827 = vmatprep.subr.bf16.mxu1 %v6133_v35 }
 0xda9   :  { %4797 = vmatpush1.bf16.msra.mxu0 %v6135_v25  ;;  %4829 = vmatpush1.bf16.msra.mxu1 %v6138_v4 }
 0xdaa   :  { %4831 = vmatprep.subr.bf16.mxu0 %v6046_v34  ;;  %4863 = vmatprep.subr.bf16.mxu1 %v6050_v6 }
 0xe5f   :  { %v3132_v56 = vpop.f32.mrb[26].mxu0  ;;  %v3203_v13 = vpop.f32.mrb[26].mxu1 }
 0xe60   :  { %v4928_v44 = vadd.f32 %v3132_v56, %v6195_v27  ;;  %v3134_v24 = vpop.f32.mrb[27].mxu0  ;;  %v3205_v54 = vpop.f32.mrb[27].mxu1  ;;  %v4944_v21 = vadd.f32 %v3203_v13, %v6207_v57  ;;  %v3591_v56 = vld [vmem:[#allocation10 + $0x20] sm:$0xff]  ;;  %v3592_v13 = vld [vmem:[#allocation10 + $0x28] sm:$0xff] }
 0xe61   :  { %v4929_v1 = vadd.f32 %v3134_v24, %v6198_v36  ;;  %v4945_v62 = vadd.f32 %v3205_v54, %v6203_v22  ;;  %v3593_v24 = vld [vmem:[#allocation10 + $0x30] sm:$0xff]  ;;  %v3594_v54 = vld [vmem:[#allocation10 + $0x38] sm:$0xff] }
 0xe62   :  { %v3744_v3 = vmul.f32 -1.442695, %v4928_v44  ;;  %v4901_v44 = vpack.c.bf16 %v3592_v13, %v3591_v56 }
 0xe63   :  { %v3745_v17 = vmul.f32 -1.442695, %v4929_v1  ;;  %v3746_v63 = vmul.f32 -1.442695, %v4945_v62  ;;  %v4904_v1 = vpack.c.bf16 %v3594_v54, %v3593_v24 }
 0xe64   :  { %5205 = vpow2.f32 %v3744_v3  ;;  %v3595_v3 = vld [vmem:[#allocation10 + $0x40] sm:$0xff] }
 0xe65   :  { %5207 = vpow2.f32 %v3745_v17  ;;  %v3596_v17 = vld [vmem:[#allocation10 + $0x48] sm:$0xff] }
 0xe66   :  { %5209 = vpow2.f32 %v3746_v63  ;;  %v4907_v62 = vpack.c.bf16 %v3596_v17, %v3595_v3  ;;  %v3597_v63 = vld [vmem:[#allocation10 + $0x50] sm:$0xff] }
 0xe67   :  { %5211 = vtanh.f32 %v4944_v21  ;;  %v3598_v21 = vld [vmem:[#allocation10 + $0x58] sm:$0xff] }
 0xe6e   :  { %v5206_v34 = vpop.eup %5205 }
 0xe6f   :  { %v5208_v12 = vpop.eup %5207  ;;  %v3215_v6 = vadd.f32 1.0, %v5206_v34  ;;  %v3599_v34 = vld [vmem:[#allocation10 + $0x60] sm:$0xff] }
 0xe70   :  { %v3221_v51 = vadd.f32 1.0, %v5208_v12  ;;  %v5210_v15 = vpop.eup %5209  ;;  %v4910_v12 = vpack.c.bf16 %v3598_v21, %v3597_v63 }
 0xe71   :  { %5213 = vrcp.f32 %v3215_v6  ;;  %v5212_v60 = vpop.eup %5211  ;;  %v3228_v9 = vadd.f32 1.0, %v5210_v15  ;;  %v3600_v6 = vld [vmem:[#allocation10 + $0x68] sm:$0xff]  ;;  %v3601_v15 = vld [vmem:[#allocation10 + $0x70] sm:$0xff] }
 0xe72   :  { %5215 = vrcp.f32 %v3221_v51  ;;  %v4913_v51 = vpack.c.bf16 %v3600_v6, %v3599_v34 }
 0xe73   :  { %5217 = vrcp.f32 %v3228_v9 }
 0xe7b   :  { %v5214_v16 = vpop.eup %5213 }
 0xe7c   :  { %v5216_v55 = vpop.eup %5215  ;;  %v3232_v43 = vmul.f32 %v5214_v16, %v5212_v60  ;;  %v3602_v60 = vld [vmem:[#allocation10 + $0x78] sm:$0xff] }
 0xe7d   :  { %v3231_v0 = vmul.f32 %v5216_v55, %v6378_v7  ;;  %v5218_v5 = vpop.eup %5217  ;;  %v3589_v7 = vld [vmem:[#allocation10 + $0x10] sm:$0xff]  ;;  %v4916_v16 = vpack.c.bf16 %v3602_v60, %v3601_v15 }
 0xe7e   :  { %v4898_v53 = vpack.c.bf16 %v3590_v28, %v3589_v7 }
 0xe7f   :  { %v6420_v31 = vadd.f32 %v3232_v43, %v3231_v0 }
 0xe81   :  { %5219 = vtanh.f32 %v6420_v31 }
 0xe8b   :  { %v5220_v33 = vpop.eup %5219 }
 0xe8c   :  { %v3235_v14 = vmul.f32 %v5220_v33, %v5218_v5 }
 0xe8e   :  { %3306 = vmatmul.mubr.f32.vlgmr.msra.gmra.mrb[28].mxu0 %v3235_v14  ;;  %3377 = vmatmul.mubr.f32.vlgmr.msra.gmra.mrb[28].mxu1 %v3235_v14 }
 0xe8f   :  { %4833 = vmatpush1.bf16.msra.mxu0 %v6048_v59  ;;  %4865 = vmatpush1.bf16.msra.mxu1 %v6053_v47 }
 0xe90   :  { %4835 = vmatprep.subr.bf16.mxu0 %v6058_v37  ;;  %4867 = vmatprep.subr.bf16.mxu1 %v6062_v10 }
 0xe91   :  { %3480 = vmatprep.mubr.f32.mxu0 %v6507_v20  ;;  %3551 = vmatprep.mubr.f32.mxu1 %v6507_v20 }
 0xe93   :  { %4837 = vmatpush1.bf16.msra.mxu0 %v6060_v11  ;;  %4869 = vmatpush1.bf16.msra.mxu1 %v6065_v19 }
 0xe94   :  { %4839 = vmatprep.subr.bf16.mxu0 %v6070_v32  ;;  %4871 = vmatprep.subr.bf16.mxu1 %v6074_v52 }
 0xe97   :  { %4841 = vmatpush1.bf16.msra.mxu0 %v6072_v45  ;;  %4873 = vmatpush1.bf16.msra.mxu1 %v6077_v58 }
 0xe98   :  { %4843 = vmatprep.subr.bf16.mxu0 %v6082_v8  ;;  %4875 = vmatprep.subr.bf16.mxu1 %v6086_v38 }
 0xe9b   :  { %4845 = vmatpush1.bf16.msra.mxu0 %v6084_v29  ;;  %4877 = vmatpush1.bf16.msra.mxu1 %v6089_v50 }
 0xe9c   :  { %4847 = vmatprep.subr.bf16.mxu0 %v6093_v26  ;;  %4879 = vmatprep.subr.bf16.mxu1 %v6098_v61 }
 0xe9f   :  { %4849 = vmatpush1.bf16.msra.mxu0 %v6095_v49  ;;  %4881 = vmatpush1.bf16.msra.mxu1 %v6101_v48 }
 0xea0   :  { %4851 = vmatprep.subr.bf16.mxu0 %v6103_v30  ;;  %4883 = vmatprep.subr.bf16.mxu1 %v6109_v23 }
 0xea3   :  { %4853 = vmatpush1.bf16.msra.mxu0 %v6107_v18  ;;  %4885 = vmatpush1.bf16.msra.mxu1 %v6113_v40 }
 0xea4   :  { %4855 = vmatprep.subr.bf16.mxu0 %v6115_v41  ;;  %4887 = vmatprep.subr.bf16.mxu1 %v6118_v2 }
 0xea7   :  { %4857 = vmatpush1.bf16.msra.mxu0 %v6121_v39  ;;  %4889 = vmatpush1.bf16.msra.mxu1 %v6125_v42 }
 0xea8   :  { %4859 = vmatprep.subr.bf16.mxu0 %v6127_v46  ;;  %4891 = vmatprep.subr.bf16.mxu1 %v6133_v35  ;;  %v3587_v46 = vld [vmem:[#allocation10] sm:$0xff]  ;;  %v3588_v35 = vld [vmem:[#allocation10 + $0x8] sm:$0xff] }
 0xeab   :  { %4861 = vmatpush1.bf16.msra.mxu0 %v6135_v25  ;;  %4893 = vmatpush1.bf16.msra.mxu1 %v6138_v4  ;;  %v4895_v25 = vpack.c.bf16 %v3588_v35, %v3587_v46  ;;  %v5381_v4 = vmov 0.0|0.0  }
 0xeac   :  { %4894 = vmatprep.subr.bf16.mxu0 %v5381_v4 }
 0xf61   :  { %v3307_v59 = vpop.f32.mrb[28].mxu0  ;;  %v3378_v47 = vpop.f32.mrb[28].mxu1 }
 0xf62   :  { %v4930_v37 = vadd.f32 %v3307_v59, %v6195_v27  ;;  %v3309_v11 = vpop.f32.mrb[29].mxu0  ;;  %v3380_v10 = vpop.f32.mrb[29].mxu1  ;;  %v4946_v8 = vadd.f32 %v3378_v47, %v6207_v57 }
 0xf63   :  { %v4931_v19 = vadd.f32 %v3309_v11, %v6198_v36  ;;  %v4947_v52 = vadd.f32 %v3380_v10, %v6203_v22 }
 0xf64   :  { %v3747_v32 = vmul.f32 -1.442695, %v4930_v37 }
 0xf65   :  { %v3748_v45 = vmul.f32 -1.442695, %v4931_v19  ;;  %v3749_v58 = vmul.f32 -1.442695, %v4947_v52 }
 0xf66   :  { %5221 = vpow2.f32 %v3747_v32 }
 0xf67   :  { %5223 = vpow2.f32 %v3748_v45 }
 0xf68   :  { %5225 = vpow2.f32 %v3749_v58 }
 0xf69   :  { %5227 = vtanh.f32 %v4946_v8 }
 0xf70   :  { %v5222_v29 = vpop.eup %5221 }
 0xf71   :  { %v5224_v38 = vpop.eup %5223  ;;  %v3390_v50 = vadd.f32 1.0, %v5222_v29 }
 0xf72   :  { %v3396_v26 = vadd.f32 1.0, %v5224_v38  ;;  %v5226_v49 = vpop.eup %5225 }
 0xf73   :  { %5229 = vrcp.f32 %v3390_v50  ;;  %v5228_v61 = vpop.eup %5227  ;;  %v3403_v23 = vadd.f32 1.0, %v5226_v49  ;;  %v3753_v50 = vld [vmem:[%s6492_s8] ss:$0 sm:$0xff] }
 0xf74   :  { %5231 = vrcp.f32 %v3396_v26 }
 0xf75   :  { %5233 = vrcp.f32 %v3403_v23 }
 0xf7d   :  { %v5230_v48 = vpop.eup %5229 }
 0xf7e   :  { %v5232_v30 = vpop.eup %5231  ;;  %v3407_v18 = vmul.f32 %v5230_v48, %v5228_v61 }
 0xf7f   :  { %v3406_v40 = vmul.f32 %v5232_v30, %v6420_v31  ;;  %v5234_v2 = vpop.eup %5233 }
 0xf81   :  { %v6460_v41 = vadd.f32 %v3407_v18, %v3406_v40 }
 0xf83   :  { %5235 = vtanh.f32 %v6460_v41 }
 0xf8d   :  { %v5236_v39 = vpop.eup %5235 }
 0xf8e   :  { %v3410_v42 = vmul.f32 %v5236_v39, %v5234_v2 }
 0xf90   :  { %3481 = vmatmul.mubr.f32.vlgmr.msra.gmra.mrb[30].mxu0 %v3410_v42  ;;  %3552 = vmatmul.mubr.f32.vlgmr.msra.gmra.mrb[30].mxu1 %v3410_v42 }
 0xf91   :  { %4896 = vmatpush3.bf16.msra.mxu0 %v4895_v25  ;;  %3803 = vmatprep.mubr.msk.f32.mxu0 %vm5382_vm0, %v6507_v20 }
 0xf92   :  { %4897 = vmatprep.subr.bf16.mxu0 %v5381_v4 }
 0xf95   :  { %4899 = vmatpush3.bf16.msra.mxu0 %v4898_v53 }
 0xf96   :  { %4900 = vmatprep.subr.bf16.mxu0 %v5381_v4 }
 0xf99   :  { %4902 = vmatpush3.bf16.msra.mxu0 %v4901_v44 }
 0xf9a   :  { %4903 = vmatprep.subr.bf16.mxu0 %v5381_v4 }
 0xf9d   :  { %4905 = vmatpush3.bf16.msra.mxu0 %v4904_v1 }
 0xf9e   :  { %4906 = vmatprep.subr.bf16.mxu0 %v5381_v4 }
 0xfa1   :  { %4908 = vmatpush3.bf16.msra.mxu0 %v4907_v62 }
 0xfa2   :  { %4909 = vmatprep.subr.bf16.mxu0 %v5381_v4 }
 0xfa5   :  { %4911 = vmatpush3.bf16.msra.mxu0 %v4910_v12 }
 0xfa6   :  { %4912 = vmatprep.subr.bf16.mxu0 %v5381_v4 }
 0xfa9   :  { %4914 = vmatpush3.bf16.msra.mxu0 %v4913_v51 }
 0xfaa   :  { %4915 = vmatprep.subr.bf16.mxu0 %v5381_v4 }
 0xfad   :  { %4917 = vmatpush3.bf16.msra.mxu0 %v4916_v16 }
0x1063   :  { %v3482_v55 = vpop.f32.mrb[30].mxu0  ;;  %v3553_v43 = vpop.f32.mrb[30].mxu1 }
0x1064   :  { %v4932_v9 = vadd.f32 %v3482_v55, %v6195_v27  ;;  %v3484_v0 = vpop.f32.mrb[31].mxu0  ;;  %v3555_v31 = vpop.f32.mrb[31].mxu1  ;;  %v4948_v47 = vadd.f32 %v3553_v43, %v6207_v57 }
0x1065   :  { %v4933_v5 = vadd.f32 %v3484_v0, %v6198_v36  ;;  %v4949_v20 = vadd.f32 %v3555_v31, %v6203_v22 }
0x1066   :  { %v3750_v33 = vmul.f32 -1.442695, %v4932_v9 }
0x1067   :  { %v3751_v14 = vmul.f32 -1.442695, %v4933_v5  ;;  %v3752_v59 = vmul.f32 -1.442695, %v4949_v20 }
0x1068   :  { %5237 = vpow2.f32 %v3750_v33 }
0x1069   :  { %5239 = vpow2.f32 %v3751_v14 }
0x106a   :  { %5241 = vpow2.f32 %v3752_v59 }
0x106b   :  { %5243 = vtanh.f32 %v4948_v47 }
0x1072   :  { %v5238_v37 = vpop.eup %5237 }
0x1073   :  { %v5240_v11 = vpop.eup %5239  ;;  %v3565_v10 = vadd.f32 1.0, %v5238_v37 }
0x1074   :  { %v3571_v19 = vadd.f32 1.0, %v5240_v11  ;;  %v5242_v27 = vpop.eup %5241 }
0x1075   :  { %5245 = vrcp.f32 %v3565_v10  ;;  %v5244_v32 = vpop.eup %5243  ;;  %v3578_v58 = vadd.f32 1.0, %v5242_v27 }
0x1076   :  { %5247 = vrcp.f32 %v3571_v19 }
0x1077   :  { %5249 = vrcp.f32 %v3578_v58 }
0x107f   :  { %v5246_v36 = vpop.eup %5245 }
0x1080   :  { %v5248_v45 = vpop.eup %5247  ;;  %v3582_v52 = vmul.f32 %v5246_v36, %v5244_v32 }
0x1081   :  { %v3581_v8 = vmul.f32 %v5248_v45, %v6460_v41  ;;  %v5250_v57 = vpop.eup %5249 }
0x1083   :  { %v3583_v22 = vadd.f32 %v3582_v52, %v3581_v8 }
0x1085   :  { %5251 = vtanh.f32 %v3583_v22 }
0x108f   :  { %v5252_v29 = vpop.eup %5251 }
0x1090   :  { %v3585_v38 = vmul.f32 %v5252_v29, %v5250_v57 }
0x1092   :  { %3804 = vmatmul.mubr.f32.vlgmr.msra.gmra.mrb[32].mxu0 %v3585_v38 }
0x1165   :  { %v3676_v26 = vpop.f32.mrb[32].mxu0 }
0x1166   :  { %v3677_v49 = vadd.f32 %v3753_v50, %v3676_v26  ;;  %v3805_v61 = vpop.f32.mrb[33].mxu0 }
0x1168   :  { %3680 = vst [vmem:[#allocation12] sm:$0xff] %v3677_v49 }
0x1169   :  { %5352 = shalt.err (!%p5349_p8)
}
0x116a   :  { %s5353_s7 = scalar_lea.hbm %s6493_s9, 128 }
0x116b   :  { %p5354_p9 = scmp.ne.s32.totalorder %s6493_s9, %s5353_s7  ;;  %p5357_p10 = scmp.lt.u32.totalorder %s5353_s7, %s6493_s9 }
0x116d   :  { %p5359_p11 = pnand %p5357_p10, %p5354_p9 }
0x116f   :  { %5362 = shalt.err (!%p5359_p11)
}
0x1170   :  { %3690 = dma.vmem_to_hbm [thread:$0]  %s3688_s5, 128, %s6493_s9, [#allocation6]  }
0x1171   :  { %5369 = dma.done.wait [#allocation6], 128  }
0x1172   :  { %5370 = vsyncadd [#allocation6], 4294967168 }
0x1173   :  { %3694 = vsyncpa [#allocation5], 1 }
0x1174   :  { %3695 = vsyncpa [#allocation8], 1 }
0x1175   :  { %3696 = vsyncpa [#allocation11], 1 }
0x1176   :  { %3697 = vsyncpa [#allocation6], 1 }

</bundles_post_ra>
